<compile_context>
chip_gen: v7x
topology: tpu7x:2x2x1
jax: 0.10.0
libtpu: 0.0.40
codegen_flags: <defaults>
</compile_context>

<pallas_src>
import functools

import jax
import jax.numpy as jnp
from jax.experimental import pallas as pl
from jax.experimental.pallas import tpu as pltpu


# Scoped VMEM limit: above the v5e default (16 MiB), equal to v6e/v7x default,
# safely below physical VMEM on all supported generations.
VMEM_LIMIT = 32 * 1024 * 1024


# ---------------------------------------------------------------------------
# Pallas kernels
# ---------------------------------------------------------------------------

def _mha_addnorm_kernel(*refs, heads, eps, causal, emit_attn):
    """Fused multi-head attention + O projection + residual Add&Norm.

    One grid step = one batch element, all heads processed inside.
      causal=True  : single shared input ref (Q=K=V=residual), mask built
                     in-kernel from iota (lower triangular).
      causal=False : separate Q / KV / residual refs plus a (1,1,1,Lk) padding
                     mask block broadcast over query rows.
      emit_attn    : additionally store the raw attention output (bf16).
    """
    if causal:
        x_ref = refs[0]
        xq_ref = xkv_ref = res_ref = x_ref
        mask_ref = None
        w_off = 1
    else:
        xq_ref, xkv_ref, res_ref, mask_ref = refs[:4]
        w_off = 4
    (wq_ref, bq_ref, wkv_ref, bkv_ref,
     wo_ref, bo_ref, g_ref, bln_ref) = refs[w_off:w_off + 8]
    outs = refs[w_off + 8:]
    if emit_attn:
        attn_ref, out_ref = outs
    else:
        (out_ref,) = outs

    res = res_ref[0].astype(jnp.float32)            # (Lq, E)
    xq = xq_ref[0].astype(jnp.bfloat16)             # (Lq, E)
    xkv = xkv_ref[0].astype(jnp.bfloat16)           # (Lk, E)

    # Q projection (1/sqrt(Dh) pre-folded into wq/bq) + fused K|V projection.
    q = jnp.dot(xq, wq_ref[...], preferred_element_type=jnp.float32) + bq_ref[...]
    kv = jnp.dot(xkv, wkv_ref[...], preferred_element_type=jnp.float32) + bkv_ref[...]
    e = q.shape[-1]
    lq = q.shape[0]
    lk = kv.shape[0]
    k = kv[:, :e]
    v = kv[:, e:]
    dh = e // heads

    # Additive mask (never materialized in HBM).
    if causal:
        row = jax.lax.broadcasted_iota(jnp.int32, (lq, lk), 0)
        col = jax.lax.broadcasted_iota(jnp.int32, (lq, lk), 1)
        add_mask = jnp.where(row >= col, 0.0, -1e9).astype(jnp.float32)
    else:
        # mask_ref block is (1, 1, 1, Lk): 1 = keep, 0 = pad  ->  0 / -1e9.
        add_mask = (mask_ref[0, 0].astype(jnp.float32) - 1.0) * 1e9   # (1, Lk)

    # Per-head attention, accumulated straight into the O projection
    # (no lane-axis concatenate; per-head intermediates stay short-lived).
    acc = jnp.zeros((lq, e), jnp.float32)
    for h in range(heads):                           # static unroll over heads
        lo = h * dh
        hi = lo + dh
        qh = q[:, lo:hi].astype(jnp.bfloat16)        # (Lq, Dh)
        kh = k[:, lo:hi].astype(jnp.bfloat16)        # (Lk, Dh)
        vh = v[:, lo:hi].astype(jnp.bfloat16)        # (Lk, Dh)
        # scores = qh @ kh.T (contract Dh), f32 accumulation on the MXU.
        s = jax.lax.dot_general(qh, kh, (((1,), (1,)), ((), ())),
                                preferred_element_type=jnp.float32)
        s = s + add_mask
        s = s - jnp.max(s, axis=-1, keepdims=True)
        p = jnp.exp(s)
        p = p * pl.reciprocal(jnp.sum(p, axis=-1, keepdims=True), approx=True)
        ctx_h = jnp.dot(p.astype(jnp.bfloat16), vh,
                        preferred_element_type=jnp.float32)           # (Lq, Dh)
        acc = acc + jnp.dot(ctx_h.astype(jnp.bfloat16), wo_ref[lo:hi, :],
                            preferred_element_type=jnp.float32)       # (Lq, E)
    attn = acc + bo_ref[...]                          # (Lq, E) f32

    if emit_attn:
        attn_ref[0] = attn.astype(attn_ref.dtype)     # bf16 inter-kernel tensor

    # Residual add + LayerNorm (f32 elementwise).
    z = res + attn
    mu = jnp.mean(z, axis=-1, keepdims=True)
    var = jnp.mean((z - mu) * (z - mu), axis=-1, keepdims=True)
    out_ref[0] = ((z - mu) * jax.lax.rsqrt(var + eps)
                  * g_ref[...] + bln_ref[...]).astype(out_ref.dtype)


def _ffn_addnorm_kernel(x_ref, w1_ref, b1_ref, w2_ref, b2_ref,
                        g_ref, bln_ref, o_ref, *, eps):
    """Fused position-wise FFN (Linear -> ReLU -> Linear) + residual Add&Norm."""
    x = x_ref[...].astype(jnp.float32)                               # (T, E)
    h = jnp.dot(x.astype(jnp.bfloat16), w1_ref[...],
                preferred_element_type=jnp.float32) + b1_ref[...]
    h = jnp.maximum(h, 0.0)
    y = jnp.dot(h.astype(jnp.bfloat16), w2_ref[...],
                preferred_element_type=jnp.float32) + b2_ref[...]
    z = x + y
    mu = jnp.mean(z, axis=-1, keepdims=True)
    var = jnp.mean((z - mu) * (z - mu), axis=-1, keepdims=True)
    o_ref[...] = ((z - mu) * jax.lax.rsqrt(var + eps)
                  * g_ref[...] + bln_ref[...]).astype(o_ref.dtype)


# ---------------------------------------------------------------------------
# Wrappers
# ---------------------------------------------------------------------------

def mha_addnorm(mp, lnp, x_q, x_kv, residual, heads, *,
                pad_mask=None, causal=False, emit_attn=False, eps=1e-5):
    B, Lq, E = x_q.shape
    Lk = x_kv.shape[1]
    kernel = functools.partial(_mha_addnorm_kernel, heads=heads, eps=eps,
                               causal=causal, emit_attn=emit_attn)

    in_specs = []
    args = []
    if causal:
        # Self-attention: Q = K = V = residual -> one shared HBM read.
        in_specs.append(pl.BlockSpec((1, Lq, E), lambda b: (b, 0, 0)))
        args.append(x_q)
    else:
        in_specs += [pl.BlockSpec((1, Lq, E), lambda b: (b, 0, 0)),        # x_q
                     pl.BlockSpec((1, Lk, E), lambda b: (b, 0, 0)),        # x_kv
                     pl.BlockSpec((1, Lq, E), lambda b: (b, 0, 0)),        # residual
                     pl.BlockSpec((1, 1, 1, Lk), lambda b: (b, 0, 0, 0))]  # pad mask
        args += [x_q, x_kv, residual, pad_mask]

    in_specs += [
        pl.BlockSpec((E, E), lambda b: (0, 0)),          # wq (bf16, pre-scaled)
        pl.BlockSpec((1, E), lambda b: (0, 0)),          # bq
        pl.BlockSpec((E, 2 * E), lambda b: (0, 0)),      # wkv (bf16)
        pl.BlockSpec((1, 2 * E), lambda b: (0, 0)),      # bkv
        pl.BlockSpec((E, E), lambda b: (0, 0)),          # wo (bf16)
        pl.BlockSpec((1, E), lambda b: (0, 0)),          # bo
        pl.BlockSpec((1, E), lambda b: (0, 0)),          # gamma
        pl.BlockSpec((1, E), lambda b: (0, 0)),          # beta
    ]
    args += [mp["wq"], mp["bq"], mp["wkv"], mp["bkv"], mp["wo"], mp["bo"],
             lnp["gamma"], lnp["beta"]]

    if emit_attn:
        out_specs = [pl.BlockSpec((1, Lq, E), lambda b: (b, 0, 0)),
                     pl.BlockSpec((1, Lq, E), lambda b: (b, 0, 0))]
        out_shape = [jax.ShapeDtypeStruct((B, Lq, E), jnp.bfloat16),  # raw attn (bf16)
                     jax.ShapeDtypeStruct((B, Lq, E), jnp.float32)]   # Add&Norm out
    else:
        out_specs = pl.BlockSpec((1, Lq, E), lambda b: (b, 0, 0))
        out_shape = jax.ShapeDtypeStruct((B, Lq, E), jnp.float32)

    return pl.pallas_call(
        kernel,
        grid=(B,),
        in_specs=in_specs,
        out_specs=out_specs,
        out_shape=out_shape,
        compiler_params=pltpu.CompilerParams(
            dimension_semantics=("parallel",),
            vmem_limit_bytes=VMEM_LIMIT),
    )(*args)


def ffn_addnorm(fp, lnp, x, eps=1e-5, max_row_tile=256):
    B, L, E = x.shape
    N = B * L
    Hd = fp["w1"].shape[1]
    x2 = x.reshape(N, E)
    # Row tile: the whole (small) N, or a fixed multiple-of-8 tile with a
    # partial last block handled by Pallas (never the old rt == N blow-up).
    rt = N if N <= max_row_tile else max_row_tile
    out = pl.pallas_call(
        functools.partial(_ffn_addnorm_kernel, eps=eps),
        grid=(pl.cdiv(N, rt),),
        in_specs=[
            pl.BlockSpec((rt, E), lambda i: (i, 0)),     # x (also the residual)
            pl.BlockSpec((E, Hd), lambda i: (0, 0)),     # w1 (bf16, weight-stationary)
            pl.BlockSpec((1, Hd), lambda i: (0, 0)),     # b1
            pl.BlockSpec((Hd, E), lambda i: (0, 0)),     # w2 (bf16)
            pl.BlockSpec((1, E), lambda i: (0, 0)),      # b2
            pl.BlockSpec((1, E), lambda i: (0, 0)),      # gamma
            pl.BlockSpec((1, E), lambda i: (0, 0)),      # beta
        ],
        out_specs=pl.BlockSpec((rt, E), lambda i: (i, 0)),
        out_shape=jax.ShapeDtypeStruct((N, E), jnp.float32),
        compiler_params=pltpu.CompilerParams(
            dimension_semantics=("parallel",),
            vmem_limit_bytes=VMEM_LIMIT),
    )(x2, fp["w1"], fp["b1"], fp["w2"], fp["b2"], lnp["gamma"], lnp["beta"])
    return out.reshape(B, L, E)


def decoder_layer(params, trg_data, trg_tri_mask, encoder_out, src_mask, heads):
    """Mirrors Decoder_Layer.forward:
      * cross-attention Q is the RAW masked-attention output (not output1),
      * a single shared Add&Norm (gamma/beta) serves all three residual blocks,
      * trg_tri_mask is accepted for interface parity but the standard causal
        mask is regenerated in-kernel (no O(L^2) mask tensor crosses HBM),
      * src_mask is consumed in its natural (B, 1, 1, L_src) padding shape.
    """
    del trg_tri_mask  # assumed to be the standard causal mask; built in-kernel.

    masked_out, output1 = mha_addnorm(
        params["mha1"], params["ln"],
        x_q=trg_data, x_kv=trg_data, residual=trg_data,
        heads=heads, causal=True, emit_attn=True)

    output2 = mha_addnorm(
        params["mha2"], params["ln"],
        x_q=masked_out, x_kv=encoder_out, residual=output1,
        heads=heads, pad_mask=src_mask.astype(jnp.float32),
        causal=False, emit_attn=False)

    output3 = ffn_addnorm(params["ffn"], params["ln"], output2)
    return output3


# ---------------------------------------------------------------------------
# Deterministic parameter construction (pre-fused / pre-scaled / bf16 weights)
# ---------------------------------------------------------------------------

def init_params(key, embedding_size, heads, ff_mult=4):
    E = embedding_size
    Hd = ff_mult * E
    dh = E // heads
    scale = 1.0 / (dh ** 0.5)
    ks = jax.random.split(key, 10)

    def lin(k, e_in, e_out, std=0.02):
        kw, kb = jax.random.split(k)
        w = std * jax.random.normal(kw, (e_in, e_out), jnp.float32)
        b = std * jax.random.normal(kb, (e_out,), jnp.float32)
        return w, b

    def mha(k4):
        wq, bq = lin(k4[0], E, E)
        wk, bk = lin(k4[1], E, E)
        wv, bv = lin(k4[2], E, E)
        wo, bo = lin(k4[3], E, E)
        return dict(
            # 1/sqrt(Dh) folded into Q projection; K|V fused into one matmul.
            wq=(wq * scale).astype(jnp.bfloat16),
            bq=(bq * scale).reshape(1, E),
            wkv=jnp.concatenate([wk, wv], axis=1).astype(jnp.bfloat16),
            bkv=jnp.concatenate([bk, bv]).reshape(1, 2 * E),
            wo=wo.astype(jnp.bfloat16),
            bo=bo.reshape(1, E),
        )

    w1, b1 = lin(ks[8], E, Hd)
    w2, b2 = lin(ks[9], Hd, E)
    return {
        "mha1": mha(ks[0:4]),
        "mha2": mha(ks[4:8]),
        "ffn": dict(w1=w1.astype(jnp.bfloat16), b1=b1.reshape(1, Hd),
                    w2=w2.astype(jnp.bfloat16), b2=b2.reshape(1, E)),
        "ln": dict(gamma=jnp.ones((1, E), jnp.float32),
                   beta=jnp.zeros((1, E), jnp.float32)),
    }


# ---------------------------------------------------------------------------
# Main
# ---------------------------------------------------------------------------

if __name__ == "__main__":
    # Small but lane-dense demo shapes (E multiple of 128 keeps stores unmasked).
    B, L_trg, L_src, E, HEADS = 2, 8, 8, 128, 4

    key = jax.random.PRNGKey(0)
    k_p, k_trg, k_enc = jax.random.split(key, 3)

    params = init_params(k_p, E, HEADS)
    trg_data = jax.random.normal(k_trg, (B, L_trg, E), jnp.float32)
    encoder_out = jax.random.normal(k_enc, (B, L_src, E), jnp.float32)

    # Causal (lower-triangular) mask, kept for interface parity with the module.
    trg_tri_mask = jnp.broadcast_to(
        jnp.tril(jnp.ones((L_trg, L_trg), jnp.float32))[None, None],
        (B, 1, L_trg, L_trg))
    # Source padding mask for cross-attention: (B, 1, 1, L_src), all valid here.
    src_mask = jnp.ones((B, 1, 1, L_src), jnp.float32)

    fwd = jax.jit(functools.partial(decoder_layer, heads=HEADS))
    out = fwd(params, trg_data, trg_tri_mask, encoder_out, src_mask)
    jax.block_until_ready(out)

    assert out.shape == (B, L_trg, E) and out.dtype == jnp.float32
    print("KERNEL_OK")
</pallas_src>

<mosaic_0001>
module attributes {stable_mosaic.version = 11 : i64} {
  func.func @_ffn_addnorm_kernel(%arg0: i32, %arg1: memref<16x128xf32, #tpu.memory_space<vmem>>, %arg2: memref<128x512xbf16, #tpu.memory_space<vmem>>, %arg3: memref<1x512xf32, #tpu.memory_space<vmem>>, %arg4: memref<512x128xbf16, #tpu.memory_space<vmem>>, %arg5: memref<1x128xf32, #tpu.memory_space<vmem>>, %arg6: memref<1x128xf32, #tpu.memory_space<vmem>>, %arg7: memref<1x128xf32, #tpu.memory_space<vmem>>, %arg8: memref<16x128xf32, #tpu.memory_space<vmem>>) attributes {dimension_semantics = [#tpu.dimension_semantics<parallel>], iteration_bounds = array<i64: 1>, scalar_prefetch = 0 : i64, scratch_operands = 0 : i64, tpu.core_type = #tpu.core_type<tc>, window_params = [{transform_indices = @transform_0, window_bounds = array<i64: 16, 128>}, {pipeline_mode = #tpu.pipeline_mode<synchronous>, transform_indices = @transform_1, window_bounds = array<i64: 128, 512>}, {pipeline_mode = #tpu.pipeline_mode<synchronous>, transform_indices = @transform_2, window_bounds = array<i64: 1, 512>}, {pipeline_mode = #tpu.pipeline_mode<synchronous>, transform_indices = @transform_3, window_bounds = array<i64: 512, 128>}, {pipeline_mode = #tpu.pipeline_mode<synchronous>, transform_indices = @transform_4, window_bounds = array<i64: 1, 128>}, {pipeline_mode = #tpu.pipeline_mode<synchronous>, transform_indices = @transform_5, window_bounds = array<i64: 1, 128>}, {pipeline_mode = #tpu.pipeline_mode<synchronous>, transform_indices = @transform_6, window_bounds = array<i64: 1, 128>}, {transform_indices = @transform_7, window_bounds = array<i64: 16, 128>}]} {
    %c0 = arith.constant 0 : index
    %c0_0 = arith.constant 0 : index
    %0 = vector.load %arg1[%c0, %c0_0] : memref<16x128xf32, #tpu.memory_space<vmem>>, vector<16x128xf32>
    %1 = arith.truncf %0 : vector<16x128xf32> to vector<16x128xbf16>
    %c0_1 = arith.constant 0 : index
    %c0_2 = arith.constant 0 : index
    %2 = vector.load %arg2[%c0_1, %c0_2] : memref<128x512xbf16, #tpu.memory_space<vmem>>, vector<128x512xbf16>
    %cst = arith.constant dense<0.000000e+00> : vector<16x512xf32>
    %3 = tpu.matmul %1, %2, %cst {dimension_numbers = #tpu.dot_dimension_numbers<[1], [0], [0], [1], [0, 0, 1, 1], [], []>} : vector<16x128xbf16>, vector<128x512xbf16>, vector<16x512xf32> -> vector<16x512xf32>
    %c0_3 = arith.constant 0 : index
    %c0_4 = arith.constant 0 : index
    %4 = vector.load %arg3[%c0_3, %c0_4] : memref<1x512xf32, #tpu.memory_space<vmem>>, vector<1x512xf32>
    %5 = vector.broadcast %4 : vector<1x512xf32> to vector<16x512xf32>
    %6 = arith.addf %3, %5 : vector<16x512xf32>
    %cst_5 = arith.constant 0.000000e+00 : f32
    %7 = vector.broadcast %cst_5 : f32 to vector<16x512xf32>
    %8 = arith.maximumf %6, %7 : vector<16x512xf32>
    %9 = arith.truncf %8 : vector<16x512xf32> to vector<16x512xbf16>
    %c0_6 = arith.constant 0 : index
    %c0_7 = arith.constant 0 : index
    %10 = vector.load %arg4[%c0_6, %c0_7] : memref<512x128xbf16, #tpu.memory_space<vmem>>, vector<512x128xbf16>
    %cst_8 = arith.constant dense<0.000000e+00> : vector<16x128xf32>
    %11 = tpu.matmul %9, %10, %cst_8 {dimension_numbers = #tpu.dot_dimension_numbers<[1], [0], [0], [1], [0, 0, 1, 1], [], []>} : vector<16x512xbf16>, vector<512x128xbf16>, vector<16x128xf32> -> vector<16x128xf32>
    %c0_9 = arith.constant 0 : index
    %c0_10 = arith.constant 0 : index
    %12 = vector.load %arg5[%c0_9, %c0_10] : memref<1x128xf32, #tpu.memory_space<vmem>>, vector<1x128xf32>
    %13 = vector.broadcast %12 : vector<1x128xf32> to vector<16x128xf32>
    %14 = arith.addf %11, %13 : vector<16x128xf32>
    %15 = arith.addf %0, %14 : vector<16x128xf32>
    %cst_11 = arith.constant dense<0.000000e+00> : vector<16xf32>
    %16 = vector.multi_reduction <add>, %15, %cst_11 [1] : vector<16x128xf32> to vector<16xf32>
    %17 = vector.shape_cast %16 : vector<16xf32> to vector<16x1xf32>
    %cst_12 = arith.constant 1.280000e+02 : f32
    %18 = vector.broadcast %cst_12 : f32 to vector<16x1xf32>
    %19 = arith.divf %17, %18 : vector<16x1xf32>
    %20 = vector.broadcast %19 : vector<16x1xf32> to vector<16x128xf32>
    %21 = arith.subf %15, %20 : vector<16x128xf32>
    %22 = vector.broadcast %19 : vector<16x1xf32> to vector<16x128xf32>
    %23 = arith.subf %15, %22 : vector<16x128xf32>
    %24 = arith.mulf %21, %23 : vector<16x128xf32>
    %cst_13 = arith.constant dense<0.000000e+00> : vector<16xf32>
    %25 = vector.multi_reduction <add>, %24, %cst_13 [1] : vector<16x128xf32> to vector<16xf32>
    %26 = vector.shape_cast %25 : vector<16xf32> to vector<16x1xf32>
    %cst_14 = arith.constant 1.280000e+02 : f32
    %27 = vector.broadcast %cst_14 : f32 to vector<16x1xf32>
    %28 = arith.divf %26, %27 : vector<16x1xf32>
    %29 = vector.broadcast %19 : vector<16x1xf32> to vector<16x128xf32>
    %30 = arith.subf %15, %29 : vector<16x128xf32>
    %cst_15 = arith.constant 9.99999974E-6 : f32
    %31 = vector.broadcast %cst_15 : f32 to vector<16x1xf32>
    %32 = arith.addf %28, %31 : vector<16x1xf32>
    %33 = math.rsqrt %32 : vector<16x1xf32>
    %34 = vector.broadcast %33 : vector<16x1xf32> to vector<16x128xf32>
    %35 = arith.mulf %30, %34 : vector<16x128xf32>
    %c0_16 = arith.constant 0 : index
    %c0_17 = arith.constant 0 : index
    %36 = vector.load %arg6[%c0_16, %c0_17] : memref<1x128xf32, #tpu.memory_space<vmem>>, vector<1x128xf32>
    %37 = vector.broadcast %36 : vector<1x128xf32> to vector<16x128xf32>
    %38 = arith.mulf %35, %37 : vector<16x128xf32>
    %c0_18 = arith.constant 0 : index
    %c0_19 = arith.constant 0 : index
    %39 = vector.load %arg7[%c0_18, %c0_19] : memref<1x128xf32, #tpu.memory_space<vmem>>, vector<1x128xf32>
    %40 = vector.broadcast %39 : vector<1x128xf32> to vector<16x128xf32>
    %41 = arith.addf %38, %40 : vector<16x128xf32>
    %c0_20 = arith.constant 0 : index
    %c0_21 = arith.constant 0 : index
    %42 = vector.load %arg8[%c0_20, %c0_21] : memref<16x128xf32, #tpu.memory_space<vmem>>, vector<16x128xf32>
    tpu.vector_store %arg8[%c0_20, %c0_21], %41 {strides = array<i32>} : memref<16x128xf32, #tpu.memory_space<vmem>>, vector<16x128xf32>,
    return
  }
  func.func @transform_0(%arg0: i32) -> (i32, i32) {
    %c0_i32 = arith.constant 0 : i32
    %c0_i32_0 = arith.constant 0 : i32
    return %arg0, %c0_i32 : i32, i32
  }
  func.func @transform_1(%arg0: i32) -> (i32, i32) {
    %c0_i32 = arith.constant 0 : i32
    %c0_i32_0 = arith.constant 0 : i32
    %c0_i32_1 = arith.constant 0 : i32
    return %c0_i32, %c0_i32_0 : i32, i32
  }
  func.func @transform_2(%arg0: i32) -> (i32, i32) {
    %c0_i32 = arith.constant 0 : i32
    %c0_i32_0 = arith.constant 0 : i32
    %c0_i32_1 = arith.constant 0 : i32
    return %c0_i32, %c0_i32_0 : i32, i32
  }
  func.func @transform_3(%arg0: i32) -> (i32, i32) {
    %c0_i32 = arith.constant 0 : i32
    %c0_i32_0 = arith.constant 0 : i32
    %c0_i32_1 = arith.constant 0 : i32
    return %c0_i32, %c0_i32_0 : i32, i32
  }
  func.func @transform_4(%arg0: i32) -> (i32, i32) {
    %c0_i32 = arith.constant 0 : i32
    %c0_i32_0 = arith.constant 0 : i32
    %c0_i32_1 = arith.constant 0 : i32
    return %c0_i32, %c0_i32_0 : i32, i32
  }
  func.func @transform_5(%arg0: i32) -> (i32, i32) {
    %c0_i32 = arith.constant 0 : i32
    %c0_i32_0 = arith.constant 0 : i32
    %c0_i32_1 = arith.constant 0 : i32
    return %c0_i32, %c0_i32_0 : i32, i32
  }
  func.func @transform_6(%arg0: i32) -> (i32, i32) {
    %c0_i32 = arith.constant 0 : i32
    %c0_i32_0 = arith.constant 0 : i32
    %c0_i32_1 = arith.constant 0 : i32
    return %c0_i32, %c0_i32_0 : i32, i32
  }
  func.func @transform_7(%arg0: i32) -> (i32, i32) {
    %c0_i32 = arith.constant 0 : i32
    %c0_i32_0 = arith.constant 0 : i32
    return %arg0, %c0_i32 : i32, i32
  }
}

module attributes {stable_mosaic.version = 11 : i64} {
  func.func @_mha_addnorm_kernel(%arg0: i32, %arg1: memref<1x8x128xbf16, #tpu.memory_space<vmem>>, %arg2: memref<1x8x128xf32, #tpu.memory_space<vmem>>, %arg3: memref<1x8x128xf32, #tpu.memory_space<vmem>>, %arg4: memref<1x1x1x8xf32, #tpu.memory_space<vmem>>, %arg5: memref<128x128xbf16, #tpu.memory_space<vmem>>, %arg6: memref<1x128xf32, #tpu.memory_space<vmem>>, %arg7: memref<128x256xbf16, #tpu.memory_space<vmem>>, %arg8: memref<1x256xf32, #tpu.memory_space<vmem>>, %arg9: memref<128x128xbf16, #tpu.memory_space<vmem>>, %arg10: memref<1x128xf32, #tpu.memory_space<vmem>>, %arg11: memref<1x128xf32, #tpu.memory_space<vmem>>, %arg12: memref<1x128xf32, #tpu.memory_space<vmem>>, %arg13: memref<1x8x128xf32, #tpu.memory_space<vmem>>) attributes {dimension_semantics = [#tpu.dimension_semantics<parallel>], iteration_bounds = array<i64: 2>, scalar_prefetch = 0 : i64, scratch_operands = 0 : i64, tpu.core_type = #tpu.core_type<tc>, window_params = [{transform_indices = @transform_0, window_bounds = array<i64: 1, 8, 128>}, {transform_indices = @transform_1, window_bounds = array<i64: 1, 8, 128>}, {transform_indices = @transform_2, window_bounds = array<i64: 1, 8, 128>}, {transform_indices = @transform_3, window_bounds = array<i64: 1, 1, 1, 8>}, {pipeline_mode = #tpu.pipeline_mode<synchronous>, transform_indices = @transform_4, window_bounds = array<i64: 128, 128>}, {pipeline_mode = #tpu.pipeline_mode<synchronous>, transform_indices = @transform_5, window_bounds = array<i64: 1, 128>}, {pipeline_mode = #tpu.pipeline_mode<synchronous>, transform_indices = @transform_6, window_bounds = array<i64: 128, 256>}, {pipeline_mode = #tpu.pipeline_mode<synchronous>, transform_indices = @transform_7, window_bounds = array<i64: 1, 256>}, {pipeline_mode = #tpu.pipeline_mode<synchronous>, transform_indices = @transform_8, window_bounds = array<i64: 128, 128>}, {pipeline_mode = #tpu.pipeline_mode<synchronous>, transform_indices = @transform_9, window_bounds = array<i64: 1, 128>}, {pipeline_mode = #tpu.pipeline_mode<synchronous>, transform_indices = @transform_10, window_bounds = array<i64: 1, 128>}, {pipeline_mode = #tpu.pipeline_mode<synchronous>, transform_indices = @transform_11, window_bounds = array<i64: 1, 128>}, {transform_indices = @transform_12, window_bounds = array<i64: 1, 8, 128>}]} {
    %c0 = arith.constant 0 : index
    %c0_0 = arith.constant 0 : index
    %c0_1 = arith.constant 0 : index
    %0 = vector.load %arg3[%c0, %c0_0, %c0_1] : memref<1x8x128xf32, #tpu.memory_space<vmem>>, vector<1x8x128xf32>
    %1 = vector.shape_cast %0 : vector<1x8x128xf32> to vector<8x128xf32>
    %c0_2 = arith.constant 0 : index
    %c0_3 = arith.constant 0 : index
    %c0_4 = arith.constant 0 : index
    %2 = vector.load %arg1[%c0_2, %c0_3, %c0_4] : memref<1x8x128xbf16, #tpu.memory_space<vmem>>, vector<1x8x128xbf16>
    %3 = vector.shape_cast %2 : vector<1x8x128xbf16> to vector<8x128xbf16>
    %c0_5 = arith.constant 0 : index
    %c0_6 = arith.constant 0 : index
    %c0_7 = arith.constant 0 : index
    %4 = vector.load %arg2[%c0_5, %c0_6, %c0_7] : memref<1x8x128xf32, #tpu.memory_space<vmem>>, vector<1x8x128xf32>
    %5 = vector.shape_cast %4 : vector<1x8x128xf32> to vector<8x128xf32>
    %6 = arith.truncf %5 : vector<8x128xf32> to vector<8x128xbf16>
    %c0_8 = arith.constant 0 : index
    %c0_9 = arith.constant 0 : index
    %7 = vector.load %arg5[%c0_8, %c0_9] : memref<128x128xbf16, #tpu.memory_space<vmem>>, vector<128x128xbf16>
    %cst = arith.constant dense<0.000000e+00> : vector<8x128xf32>
    %8 = tpu.matmul %3, %7, %cst {dimension_numbers = #tpu.dot_dimension_numbers<[1], [0], [0], [1], [0, 0, 1, 1], [], []>} : vector<8x128xbf16>, vector<128x128xbf16>, vector<8x128xf32> -> vector<8x128xf32>
    %c0_10 = arith.constant 0 : index
    %c0_11 = arith.constant 0 : index
    %9 = vector.load %arg6[%c0_10, %c0_11] : memref<1x128xf32, #tpu.memory_space<vmem>>, vector<1x128xf32>
    %10 = vector.broadcast %9 : vector<1x128xf32> to vector<8x128xf32>
    %11 = arith.addf %8, %10 : vector<8x128xf32>
    %c0_12 = arith.constant 0 : index
    %c0_13 = arith.constant 0 : index
    %12 = vector.load %arg7[%c0_12, %c0_13] : memref<128x256xbf16, #tpu.memory_space<vmem>>, vector<128x256xbf16>
    %cst_14 = arith.constant dense<0.000000e+00> : vector<8x256xf32>
    %13 = tpu.matmul %6, %12, %cst_14 {dimension_numbers = #tpu.dot_dimension_numbers<[1], [0], [0], [1], [0, 0, 1, 1], [], []>} : vector<8x128xbf16>, vector<128x256xbf16>, vector<8x256xf32> -> vector<8x256xf32>
    %c0_15 = arith.constant 0 : index
    %c0_16 = arith.constant 0 : index
    %14 = vector.load %arg8[%c0_15, %c0_16] : memref<1x256xf32, #tpu.memory_space<vmem>>, vector<1x256xf32>
    %15 = vector.broadcast %14 : vector<1x256xf32> to vector<8x256xf32>
    %16 = arith.addf %13, %15 : vector<8x256xf32>
    %17 = vector.extract_strided_slice %16 {offsets = [0, 0], sizes = [8, 128], strides = [1, 1]} : vector<8x256xf32> to vector<8x128xf32>
    %18 = vector.extract_strided_slice %16 {offsets = [0, 128], sizes = [8, 128], strides = [1, 1]} : vector<8x256xf32> to vector<8x128xf32>
    %c0_17 = arith.constant 0 : index
    %c0_18 = arith.constant 0 : index
    %c0_19 = arith.constant 0 : index
    %c0_20 = arith.constant 0 : index
    %19 = vector.load %arg4[%c0_17, %c0_18, %c0_19, %c0_20] : memref<1x1x1x8xf32, #tpu.memory_space<vmem>>, vector<1x1x1x8xf32>
    %20 = vector.shape_cast %19 : vector<1x1x1x8xf32> to vector<1x8xf32>
    %cst_21 = arith.constant 1.000000e+00 : f32
    %21 = vector.broadcast %cst_21 : f32 to vector<1x8xf32>
    %22 = arith.subf %20, %21 : vector<1x8xf32>
    %cst_22 = arith.constant 1.000000e+09 : f32
    %23 = vector.broadcast %cst_22 : f32 to vector<1x8xf32>
    %24 = arith.mulf %22, %23 : vector<1x8xf32>
    %cst_23 = arith.constant 0.000000e+00 : f32
    %25 = vector.broadcast %cst_23 : f32 to vector<8x128xf32>
    %26 = vector.extract_strided_slice %11 {offsets = [0, 0], sizes = [8, 32], strides = [1, 1]} : vector<8x128xf32> to vector<8x32xf32>
    %27 = arith.truncf %26 : vector<8x32xf32> to vector<8x32xbf16>
    %28 = vector.extract_strided_slice %17 {offsets = [0, 0], sizes = [8, 32], strides = [1, 1]} : vector<8x128xf32> to vector<8x32xf32>
    %29 = arith.truncf %28 : vector<8x32xf32> to vector<8x32xbf16>
    %30 = vector.extract_strided_slice %18 {offsets = [0, 0], sizes = [8, 32], strides = [1, 1]} : vector<8x128xf32> to vector<8x32xf32>
    %31 = arith.truncf %30 : vector<8x32xf32> to vector<8x32xbf16>
    %cst_24 = arith.constant dense<0.000000e+00> : vector<8x8xf32>
    %32 = tpu.matmul %27, %29, %cst_24 {dimension_numbers = #tpu.dot_dimension_numbers<[1], [1], [0], [0], [0, 0, 1, 0], [], []>} : vector<8x32xbf16>, vector<8x32xbf16>, vector<8x8xf32> -> vector<8x8xf32>
    %33 = vector.broadcast %24 : vector<1x8xf32> to vector<8x8xf32>
    %34 = arith.addf %32, %33 : vector<8x8xf32>
    %cst_25 = arith.constant dense<0xFF800000> : vector<8xf32>
    %35 = vector.multi_reduction <maximumf>, %34, %cst_25 [1] : vector<8x8xf32> to vector<8xf32>
    %36 = vector.shape_cast %35 : vector<8xf32> to vector<8x1xf32>
    %37 = vector.broadcast %36 : vector<8x1xf32> to vector<8x8xf32>
    %38 = arith.subf %34, %37 : vector<8x8xf32>
    %39 = math.exp %38 : vector<8x8xf32>
    %cst_26 = arith.constant dense<0.000000e+00> : vector<8xf32>
    %40 = vector.multi_reduction <add>, %39, %cst_26 [1] : vector<8x8xf32> to vector<8xf32>
    %41 = vector.shape_cast %40 : vector<8xf32> to vector<8x1xf32>
    %42 = tpu.reciprocal %41 {approx = true} : vector<8x1xf32> -> vector<8x1xf32>
    %43 = vector.broadcast %42 : vector<8x1xf32> to vector<8x8xf32>
    %44 = arith.mulf %39, %43 : vector<8x8xf32>
    %45 = arith.truncf %44 : vector<8x8xf32> to vector<8x8xbf16>
    %cst_27 = arith.constant dense<0.000000e+00> : vector<8x32xf32>
    %46 = tpu.matmul %45, %31, %cst_27 {dimension_numbers = #tpu.dot_dimension_numbers<[1], [0], [0], [1], [0, 0, 1, 1], [], []>} : vector<8x8xbf16>, vector<8x32xbf16>, vector<8x32xf32> -> vector<8x32xf32>
    %47 = arith.truncf %46 : vector<8x32xf32> to vector<8x32xbf16>
    %c0_28 = arith.constant 0 : index
    %c0_29 = arith.constant 0 : index
    %48 = vector.load %arg9[%c0_28, %c0_29] : memref<128x128xbf16, #tpu.memory_space<vmem>>, vector<32x128xbf16>
    %cst_30 = arith.constant dense<0.000000e+00> : vector<8x128xf32>
    %49 = tpu.matmul %47, %48, %cst_30 {dimension_numbers = #tpu.dot_dimension_numbers<[1], [0], [0], [1], [0, 0, 1, 1], [], []>} : vector<8x32xbf16>, vector<32x128xbf16>, vector<8x128xf32> -> vector<8x128xf32>
    %50 = arith.addf %25, %49 : vector<8x128xf32>
    %51 = vector.extract_strided_slice %11 {offsets = [0, 32], sizes = [8, 32], strides = [1, 1]} : vector<8x128xf32> to vector<8x32xf32>
    %52 = arith.truncf %51 : vector<8x32xf32> to vector<8x32xbf16>
    %53 = vector.extract_strided_slice %17 {offsets = [0, 32], sizes = [8, 32], strides = [1, 1]} : vector<8x128xf32> to vector<8x32xf32>
    %54 = arith.truncf %53 : vector<8x32xf32> to vector<8x32xbf16>
    %55 = vector.extract_strided_slice %18 {offsets = [0, 32], sizes = [8, 32], strides = [1, 1]} : vector<8x128xf32> to vector<8x32xf32>
    %56 = arith.truncf %55 : vector<8x32xf32> to vector<8x32xbf16>
    %cst_31 = arith.constant dense<0.000000e+00> : vector<8x8xf32>
    %57 = tpu.matmul %52, %54, %cst_31 {dimension_numbers = #tpu.dot_dimension_numbers<[1], [1], [0], [0], [0, 0, 1, 0], [], []>} : vector<8x32xbf16>, vector<8x32xbf16>, vector<8x8xf32> -> vector<8x8xf32>
    %58 = vector.broadcast %24 : vector<1x8xf32> to vector<8x8xf32>
    %59 = arith.addf %57, %58 : vector<8x8xf32>
    %cst_32 = arith.constant dense<0xFF800000> : vector<8xf32>
    %60 = vector.multi_reduction <maximumf>, %59, %cst_32 [1] : vector<8x8xf32> to vector<8xf32>
    %61 = vector.shape_cast %60 : vector<8xf32> to vector<8x1xf32>
    %62 = vector.broadcast %61 : vector<8x1xf32> to vector<8x8xf32>
    %63 = arith.subf %59, %62 : vector<8x8xf32>
    %64 = math.exp %63 : vector<8x8xf32>
    %cst_33 = arith.constant dense<0.000000e+00> : vector<8xf32>
    %65 = vector.multi_reduction <add>, %64, %cst_33 [1] : vector<8x8xf32> to vector<8xf32>
    %66 = vector.shape_cast %65 : vector<8xf32> to vector<8x1xf32>
    %67 = tpu.reciprocal %66 {approx = true} : vector<8x1xf32> -> vector<8x1xf32>
    %68 = vector.broadcast %67 : vector<8x1xf32> to vector<8x8xf32>
    %69 = arith.mulf %64, %68 : vector<8x8xf32>
    %70 = arith.truncf %69 : vector<8x8xf32> to vector<8x8xbf16>
    %cst_34 = arith.constant dense<0.000000e+00> : vector<8x32xf32>
    %71 = tpu.matmul %70, %56, %cst_34 {dimension_numbers = #tpu.dot_dimension_numbers<[1], [0], [0], [1], [0, 0, 1, 1], [], []>} : vector<8x8xbf16>, vector<8x32xbf16>, vector<8x32xf32> -> vector<8x32xf32>
    %72 = arith.truncf %71 : vector<8x32xf32> to vector<8x32xbf16>
    %c32 = arith.constant 32 : index
    %c0_35 = arith.constant 0 : index
    %73 = vector.load %arg9[%c32, %c0_35] : memref<128x128xbf16, #tpu.memory_space<vmem>>, vector<32x128xbf16>
    %cst_36 = arith.constant dense<0.000000e+00> : vector<8x128xf32>
    %74 = tpu.matmul %72, %73, %cst_36 {dimension_numbers = #tpu.dot_dimension_numbers<[1], [0], [0], [1], [0, 0, 1, 1], [], []>} : vector<8x32xbf16>, vector<32x128xbf16>, vector<8x128xf32> -> vector<8x128xf32>
    %75 = arith.addf %50, %74 : vector<8x128xf32>
    %76 = vector.extract_strided_slice %11 {offsets = [0, 64], sizes = [8, 32], strides = [1, 1]} : vector<8x128xf32> to vector<8x32xf32>
    %77 = arith.truncf %76 : vector<8x32xf32> to vector<8x32xbf16>
    %78 = vector.extract_strided_slice %17 {offsets = [0, 64], sizes = [8, 32], strides = [1, 1]} : vector<8x128xf32> to vector<8x32xf32>
    %79 = arith.truncf %78 : vector<8x32xf32> to vector<8x32xbf16>
    %80 = vector.extract_strided_slice %18 {offsets = [0, 64], sizes = [8, 32], strides = [1, 1]} : vector<8x128xf32> to vector<8x32xf32>
    %81 = arith.truncf %80 : vector<8x32xf32> to vector<8x32xbf16>
    %cst_37 = arith.constant dense<0.000000e+00> : vector<8x8xf32>
    %82 = tpu.matmul %77, %79, %cst_37 {dimension_numbers = #tpu.dot_dimension_numbers<[1], [1], [0], [0], [0, 0, 1, 0], [], []>} : vector<8x32xbf16>, vector<8x32xbf16>, vector<8x8xf32> -> vector<8x8xf32>
    %83 = vector.broadcast %24 : vector<1x8xf32> to vector<8x8xf32>
    %84 = arith.addf %82, %83 : vector<8x8xf32>
    %cst_38 = arith.constant dense<0xFF800000> : vector<8xf32>
    %85 = vector.multi_reduction <maximumf>, %84, %cst_38 [1] : vector<8x8xf32> to vector<8xf32>
    %86 = vector.shape_cast %85 : vector<8xf32> to vector<8x1xf32>
    %87 = vector.broadcast %86 : vector<8x1xf32> to vector<8x8xf32>
    %88 = arith.subf %84, %87 : vector<8x8xf32>
    %89 = math.exp %88 : vector<8x8xf32>
    %cst_39 = arith.constant dense<0.000000e+00> : vector<8xf32>
    %90 = vector.multi_reduction <add>, %89, %cst_39 [1] : vector<8x8xf32> to vector<8xf32>
    %91 = vector.shape_cast %90 : vector<8xf32> to vector<8x1xf32>
    %92 = tpu.reciprocal %91 {approx = true} : vector<8x1xf32> -> vector<8x1xf32>
    %93 = vector.broadcast %92 : vector<8x1xf32> to vector<8x8xf32>
    %94 = arith.mulf %89, %93 : vector<8x8xf32>
    %95 = arith.truncf %94 : vector<8x8xf32> to vector<8x8xbf16>
    %cst_40 = arith.constant dense<0.000000e+00> : vector<8x32xf32>
    %96 = tpu.matmul %95, %81, %cst_40 {dimension_numbers = #tpu.dot_dimension_numbers<[1], [0], [0], [1], [0, 0, 1, 1], [], []>} : vector<8x8xbf16>, vector<8x32xbf16>, vector<8x32xf32> -> vector<8x32xf32>
    %97 = arith.truncf %96 : vector<8x32xf32> to vector<8x32xbf16>
    %c64 = arith.constant 64 : index
    %c0_41 = arith.constant 0 : index
    %98 = vector.load %arg9[%c64, %c0_41] : memref<128x128xbf16, #tpu.memory_space<vmem>>, vector<32x128xbf16>
    %cst_42 = arith.constant dense<0.000000e+00> : vector<8x128xf32>
    %99 = tpu.matmul %97, %98, %cst_42 {dimension_numbers = #tpu.dot_dimension_numbers<[1], [0], [0], [1], [0, 0, 1, 1], [], []>} : vector<8x32xbf16>, vector<32x128xbf16>, vector<8x128xf32> -> vector<8x128xf32>
    %100 = arith.addf %75, %99 : vector<8x128xf32>
    %101 = vector.extract_strided_slice %11 {offsets = [0, 96], sizes = [8, 32], strides = [1, 1]} : vector<8x128xf32> to vector<8x32xf32>
    %102 = arith.truncf %101 : vector<8x32xf32> to vector<8x32xbf16>
    %103 = vector.extract_strided_slice %17 {offsets = [0, 96], sizes = [8, 32], strides = [1, 1]} : vector<8x128xf32> to vector<8x32xf32>
    %104 = arith.truncf %103 : vector<8x32xf32> to vector<8x32xbf16>
    %105 = vector.extract_strided_slice %18 {offsets = [0, 96], sizes = [8, 32], strides = [1, 1]} : vector<8x128xf32> to vector<8x32xf32>
    %106 = arith.truncf %105 : vector<8x32xf32> to vector<8x32xbf16>
    %cst_43 = arith.constant dense<0.000000e+00> : vector<8x8xf32>
    %107 = tpu.matmul %102, %104, %cst_43 {dimension_numbers = #tpu.dot_dimension_numbers<[1], [1], [0], [0], [0, 0, 1, 0], [], []>} : vector<8x32xbf16>, vector<8x32xbf16>, vector<8x8xf32> -> vector<8x8xf32>
    %108 = vector.broadcast %24 : vector<1x8xf32> to vector<8x8xf32>
    %109 = arith.addf %107, %108 : vector<8x8xf32>
    %cst_44 = arith.constant dense<0xFF800000> : vector<8xf32>
    %110 = vector.multi_reduction <maximumf>, %109, %cst_44 [1] : vector<8x8xf32> to vector<8xf32>
    %111 = vector.shape_cast %110 : vector<8xf32> to vector<8x1xf32>
    %112 = vector.broadcast %111 : vector<8x1xf32> to vector<8x8xf32>
    %113 = arith.subf %109, %112 : vector<8x8xf32>
    %114 = math.exp %113 : vector<8x8xf32>
    %cst_45 = arith.constant dense<0.000000e+00> : vector<8xf32>
    %115 = vector.multi_reduction <add>, %114, %cst_45 [1] : vector<8x8xf32> to vector<8xf32>
    %116 = vector.shape_cast %115 : vector<8xf32> to vector<8x1xf32>
    %117 = tpu.reciprocal %116 {approx = true} : vector<8x1xf32> -> vector<8x1xf32>
    %118 = vector.broadcast %117 : vector<8x1xf32> to vector<8x8xf32>
    %119 = arith.mulf %114, %118 : vector<8x8xf32>
    %120 = arith.truncf %119 : vector<8x8xf32> to vector<8x8xbf16>
    %cst_46 = arith.constant dense<0.000000e+00> : vector<8x32xf32>
    %121 = tpu.matmul %120, %106, %cst_46 {dimension_numbers = #tpu.dot_dimension_numbers<[1], [0], [0], [1], [0, 0, 1, 1], [], []>} : vector<8x8xbf16>, vector<8x32xbf16>, vector<8x32xf32> -> vector<8x32xf32>
    %122 = arith.truncf %121 : vector<8x32xf32> to vector<8x32xbf16>
    %c96 = arith.constant 96 : index
    %c0_47 = arith.constant 0 : index
    %123 = vector.load %arg9[%c96, %c0_47] : memref<128x128xbf16, #tpu.memory_space<vmem>>, vector<32x128xbf16>
    %cst_48 = arith.constant dense<0.000000e+00> : vector<8x128xf32>
    %124 = tpu.matmul %122, %123, %cst_48 {dimension_numbers = #tpu.dot_dimension_numbers<[1], [0], [0], [1], [0, 0, 1, 1], [], []>} : vector<8x32xbf16>, vector<32x128xbf16>, vector<8x128xf32> -> vector<8x128xf32>
    %125 = arith.addf %100, %124 : vector<8x128xf32>
    %c0_49 = arith.constant 0 : index
    %c0_50 = arith.constant 0 : index
    %126 = vector.load %arg10[%c0_49, %c0_50] : memref<1x128xf32, #tpu.memory_space<vmem>>, vector<1x128xf32>
    %127 = vector.broadcast %126 : vector<1x128xf32> to vector<8x128xf32>
    %128 = arith.addf %125, %127 : vector<8x128xf32>
    %129 = arith.addf %1, %128 : vector<8x128xf32>
    %cst_51 = arith.constant dense<0.000000e+00> : vector<8xf32>
    %130 = vector.multi_reduction <add>, %129, %cst_51 [1] : vector<8x128xf32> to vector<8xf32>
    %131 = vector.shape_cast %130 : vector<8xf32> to vector<8x1xf32>
    %cst_52 = arith.constant 1.280000e+02 : f32
    %132 = vector.broadcast %cst_52 : f32 to vector<8x1xf32>
    %133 = arith.divf %131, %132 : vector<8x1xf32>
    %134 = vector.broadcast %133 : vector<8x1xf32> to vector<8x128xf32>
    %135 = arith.subf %129, %134 : vector<8x128xf32>
    %136 = vector.broadcast %133 : vector<8x1xf32> to vector<8x128xf32>
    %137 = arith.subf %129, %136 : vector<8x128xf32>
    %138 = arith.mulf %135, %137 : vector<8x128xf32>
    %cst_53 = arith.constant dense<0.000000e+00> : vector<8xf32>
    %139 = vector.multi_reduction <add>, %138, %cst_53 [1] : vector<8x128xf32> to vector<8xf32>
    %140 = vector.shape_cast %139 : vector<8xf32> to vector<8x1xf32>
    %cst_54 = arith.constant 1.280000e+02 : f32
    %141 = vector.broadcast %cst_54 : f32 to vector<8x1xf32>
    %142 = arith.divf %140, %141 : vector<8x1xf32>
    %143 = vector.broadcast %133 : vector<8x1xf32> to vector<8x128xf32>
    %144 = arith.subf %129, %143 : vector<8x128xf32>
    %cst_55 = arith.constant 9.99999974E-6 : f32
    %145 = vector.broadcast %cst_55 : f32 to vector<8x1xf32>
    %146 = arith.addf %142, %145 : vector<8x1xf32>
    %147 = math.rsqrt %146 : vector<8x1xf32>
    %148 = vector.broadcast %147 : vector<8x1xf32> to vector<8x128xf32>
    %149 = arith.mulf %144, %148 : vector<8x128xf32>
    %c0_56 = arith.constant 0 : index
    %c0_57 = arith.constant 0 : index
    %150 = vector.load %arg11[%c0_56, %c0_57] : memref<1x128xf32, #tpu.memory_space<vmem>>, vector<1x128xf32>
    %151 = vector.broadcast %150 : vector<1x128xf32> to vector<8x128xf32>
    %152 = arith.mulf %149, %151 : vector<8x128xf32>
    %c0_58 = arith.constant 0 : index
    %c0_59 = arith.constant 0 : index
    %153 = vector.load %arg12[%c0_58, %c0_59] : memref<1x128xf32, #tpu.memory_space<vmem>>, vector<1x128xf32>
    %154 = vector.broadcast %153 : vector<1x128xf32> to vector<8x128xf32>
    %155 = arith.addf %152, %154 : vector<8x128xf32>
    %c0_60 = arith.constant 0 : index
    %c0_61 = arith.constant 0 : index
    %c0_62 = arith.constant 0 : index
    %156 = vector.load %arg13[%c0_60, %c0_61, %c0_62] : memref<1x8x128xf32, #tpu.memory_space<vmem>>, vector<1x8x128xf32>
    %157 = vector.shape_cast %156 : vector<1x8x128xf32> to vector<8x128xf32>
    %158 = vector.shape_cast %155 : vector<8x128xf32> to vector<1x8x128xf32>
    tpu.vector_store %arg13[%c0_60, %c0_61, %c0_62], %158 {strides = array<i32>} : memref<1x8x128xf32, #tpu.memory_space<vmem>>, vector<1x8x128xf32>,
    return
  }
  func.func @transform_0(%arg0: i32) -> (i32, i32, i32) {
    %c0_i32 = arith.constant 0 : i32
    %c0_i32_0 = arith.constant 0 : i32
    %c0_i32_1 = arith.constant 0 : i32
    return %arg0, %c0_i32, %c0_i32_0 : i32, i32, i32
  }
  func.func @transform_1(%arg0: i32) -> (i32, i32, i32) {
    %c0_i32 = arith.constant 0 : i32
    %c0_i32_0 = arith.constant 0 : i32
    %c0_i32_1 = arith.constant 0 : i32
    return %arg0, %c0_i32, %c0_i32_0 : i32, i32, i32
  }
  func.func @transform_2(%arg0: i32) -> (i32, i32, i32) {
    %c0_i32 = arith.constant 0 : i32
    %c0_i32_0 = arith.constant 0 : i32
    %c0_i32_1 = arith.constant 0 : i32
    return %arg0, %c0_i32, %c0_i32_0 : i32, i32, i32
  }
  func.func @transform_3(%arg0: i32) -> (i32, i32, i32, i32) {
    %c0_i32 = arith.constant 0 : i32
    %c0_i32_0 = arith.constant 0 : i32
    %c0_i32_1 = arith.constant 0 : i32
    %c0_i32_2 = arith.constant 0 : i32
    return %arg0, %c0_i32, %c0_i32_0, %c0_i32_1 : i32, i32, i32, i32
  }
  func.func @transform_4(%arg0: i32) -> (i32, i32) {
    %c0_i32 = arith.constant 0 : i32
    %c0_i32_0 = arith.constant 0 : i32
    %c0_i32_1 = arith.constant 0 : i32
    return %c0_i32, %c0_i32_0 : i32, i32
  }
  func.func @transform_5(%arg0: i32) -> (i32, i32) {
    %c0_i32 = arith.constant 0 : i32
    %c0_i32_0 = arith.constant 0 : i32
    %c0_i32_1 = arith.constant 0 : i32
    return %c0_i32, %c0_i32_0 : i32, i32
  }
  func.func @transform_6(%arg0: i32) -> (i32, i32) {
    %c0_i32 = arith.constant 0 : i32
    %c0_i32_0 = arith.constant 0 : i32
    %c0_i32_1 = arith.constant 0 : i32
    return %c0_i32, %c0_i32_0 : i32, i32
  }
  func.func @transform_7(%arg0: i32) -> (i32, i32) {
    %c0_i32 = arith.constant 0 : i32
    %c0_i32_0 = arith.constant 0 : i32
    %c0_i32_1 = arith.constant 0 : i32
    return %c0_i32, %c0_i32_0 : i32, i32
  }
  func.func @transform_8(%arg0: i32) -> (i32, i32) {
    %c0_i32 = arith.constant 0 : i32
    %c0_i32_0 = arith.constant 0 : i32
    %c0_i32_1 = arith.constant 0 : i32
    return %c0_i32, %c0_i32_0 : i32, i32
  }
  func.func @transform_9(%arg0: i32) -> (i32, i32) {
    %c0_i32 = arith.constant 0 : i32
    %c0_i32_0 = arith.constant 0 : i32
    %c0_i32_1 = arith.constant 0 : i32
    return %c0_i32, %c0_i32_0 : i32, i32
  }
  func.func @transform_10(%arg0: i32) -> (i32, i32) {
    %c0_i32 = arith.constant 0 : i32
    %c0_i32_0 = arith.constant 0 : i32
    %c0_i32_1 = arith.constant 0 : i32
    return %c0_i32, %c0_i32_0 : i32, i32
  }
  func.func @transform_11(%arg0: i32) -> (i32, i32) {
    %c0_i32 = arith.constant 0 : i32
    %c0_i32_0 = arith.constant 0 : i32
    %c0_i32_1 = arith.constant 0 : i32
    return %c0_i32, %c0_i32_0 : i32, i32
  }
  func.func @transform_12(%arg0: i32) -> (i32, i32, i32) {
    %c0_i32 = arith.constant 0 : i32
    %c0_i32_0 = arith.constant 0 : i32
    %c0_i32_1 = arith.constant 0 : i32
    return %arg0, %c0_i32, %c0_i32_0 : i32, i32, i32
  }
}

module attributes {stable_mosaic.version = 11 : i64} {
  func.func @_mha_addnorm_kernel(%arg0: i32, %arg1: memref<1x8x128xf32, #tpu.memory_space<vmem>>, %arg2: memref<128x128xbf16, #tpu.memory_space<vmem>>, %arg3: memref<1x128xf32, #tpu.memory_space<vmem>>, %arg4: memref<128x256xbf16, #tpu.memory_space<vmem>>, %arg5: memref<1x256xf32, #tpu.memory_space<vmem>>, %arg6: memref<128x128xbf16, #tpu.memory_space<vmem>>, %arg7: memref<1x128xf32, #tpu.memory_space<vmem>>, %arg8: memref<1x128xf32, #tpu.memory_space<vmem>>, %arg9: memref<1x128xf32, #tpu.memory_space<vmem>>, %arg10: memref<1x8x128xbf16, #tpu.memory_space<vmem>>, %arg11: memref<1x8x128xf32, #tpu.memory_space<vmem>>) attributes {dimension_semantics = [#tpu.dimension_semantics<parallel>], iteration_bounds = array<i64: 2>, scalar_prefetch = 0 : i64, scratch_operands = 0 : i64, tpu.core_type = #tpu.core_type<tc>, window_params = [{transform_indices = @transform_0, window_bounds = array<i64: 1, 8, 128>}, {pipeline_mode = #tpu.pipeline_mode<synchronous>, transform_indices = @transform_1, window_bounds = array<i64: 128, 128>}, {pipeline_mode = #tpu.pipeline_mode<synchronous>, transform_indices = @transform_2, window_bounds = array<i64: 1, 128>}, {pipeline_mode = #tpu.pipeline_mode<synchronous>, transform_indices = @transform_3, window_bounds = array<i64: 128, 256>}, {pipeline_mode = #tpu.pipeline_mode<synchronous>, transform_indices = @transform_4, window_bounds = array<i64: 1, 256>}, {pipeline_mode = #tpu.pipeline_mode<synchronous>, transform_indices = @transform_5, window_bounds = array<i64: 128, 128>}, {pipeline_mode = #tpu.pipeline_mode<synchronous>, transform_indices = @transform_6, window_bounds = array<i64: 1, 128>}, {pipeline_mode = #tpu.pipeline_mode<synchronous>, transform_indices = @transform_7, window_bounds = array<i64: 1, 128>}, {pipeline_mode = #tpu.pipeline_mode<synchronous>, transform_indices = @transform_8, window_bounds = array<i64: 1, 128>}, {transform_indices = @transform_9, window_bounds = array<i64: 1, 8, 128>}, {transform_indices = @transform_10, window_bounds = array<i64: 1, 8, 128>}]} {
    %c0 = arith.constant 0 : index
    %c0_0 = arith.constant 0 : index
    %c0_1 = arith.constant 0 : index
    %0 = vector.load %arg1[%c0, %c0_0, %c0_1] : memref<1x8x128xf32, #tpu.memory_space<vmem>>, vector<1x8x128xf32>
    %1 = vector.shape_cast %0 : vector<1x8x128xf32> to vector<8x128xf32>
    %c0_2 = arith.constant 0 : index
    %c0_3 = arith.constant 0 : index
    %c0_4 = arith.constant 0 : index
    %2 = vector.load %arg1[%c0_2, %c0_3, %c0_4] : memref<1x8x128xf32, #tpu.memory_space<vmem>>, vector<1x8x128xf32>
    %3 = vector.shape_cast %2 : vector<1x8x128xf32> to vector<8x128xf32>
    %4 = arith.truncf %3 : vector<8x128xf32> to vector<8x128xbf16>
    %c0_5 = arith.constant 0 : index
    %c0_6 = arith.constant 0 : index
    %c0_7 = arith.constant 0 : index
    %5 = vector.load %arg1[%c0_5, %c0_6, %c0_7] : memref<1x8x128xf32, #tpu.memory_space<vmem>>, vector<1x8x128xf32>
    %6 = vector.shape_cast %5 : vector<1x8x128xf32> to vector<8x128xf32>
    %7 = arith.truncf %6 : vector<8x128xf32> to vector<8x128xbf16>
    %c0_8 = arith.constant 0 : index
    %c0_9 = arith.constant 0 : index
    %8 = vector.load %arg2[%c0_8, %c0_9] : memref<128x128xbf16, #tpu.memory_space<vmem>>, vector<128x128xbf16>
    %cst = arith.constant dense<0.000000e+00> : vector<8x128xf32>
    %9 = tpu.matmul %4, %8, %cst {dimension_numbers = #tpu.dot_dimension_numbers<[1], [0], [0], [1], [0, 0, 1, 1], [], []>} : vector<8x128xbf16>, vector<128x128xbf16>, vector<8x128xf32> -> vector<8x128xf32>
    %c0_10 = arith.constant 0 : index
    %c0_11 = arith.constant 0 : index
    %10 = vector.load %arg3[%c0_10, %c0_11] : memref<1x128xf32, #tpu.memory_space<vmem>>, vector<1x128xf32>
    %11 = vector.broadcast %10 : vector<1x128xf32> to vector<8x128xf32>
    %12 = arith.addf %9, %11 : vector<8x128xf32>
    %c0_12 = arith.constant 0 : index
    %c0_13 = arith.constant 0 : index
    %13 = vector.load %arg4[%c0_12, %c0_13] : memref<128x256xbf16, #tpu.memory_space<vmem>>, vector<128x256xbf16>
    %cst_14 = arith.constant dense<0.000000e+00> : vector<8x256xf32>
    %14 = tpu.matmul %7, %13, %cst_14 {dimension_numbers = #tpu.dot_dimension_numbers<[1], [0], [0], [1], [0, 0, 1, 1], [], []>} : vector<8x128xbf16>, vector<128x256xbf16>, vector<8x256xf32> -> vector<8x256xf32>
    %c0_15 = arith.constant 0 : index
    %c0_16 = arith.constant 0 : index
    %15 = vector.load %arg5[%c0_15, %c0_16] : memref<1x256xf32, #tpu.memory_space<vmem>>, vector<1x256xf32>
    %16 = vector.broadcast %15 : vector<1x256xf32> to vector<8x256xf32>
    %17 = arith.addf %14, %16 : vector<8x256xf32>
    %18 = vector.extract_strided_slice %17 {offsets = [0, 0], sizes = [8, 128], strides = [1, 1]} : vector<8x256xf32> to vector<8x128xf32>
    %19 = vector.extract_strided_slice %17 {offsets = [0, 128], sizes = [8, 128], strides = [1, 1]} : vector<8x256xf32> to vector<8x128xf32>
    %20 = tpu.iota {dimensions = array<i32: 0>} : vector<8x8xi32>
    %21 = tpu.iota {dimensions = array<i32: 1>} : vector<8x8xi32>
    %22 = arith.cmpi sge, %20, %21 : vector<8x8xi32>
    %cst_17 = arith.constant 0.000000e+00 : f32
    %cst_18 = arith.constant -1.000000e+09 : f32
    %23 = vector.broadcast %cst_17 : f32 to vector<8x8xf32>
    %24 = vector.broadcast %cst_18 : f32 to vector<8x8xf32>
    %25 = arith.select %22, %23, %24 : vector<8x8xi1>, vector<8x8xf32>
    %cst_19 = arith.constant 0.000000e+00 : f32
    %26 = vector.broadcast %cst_19 : f32 to vector<8x128xf32>
    %27 = vector.extract_strided_slice %12 {offsets = [0, 0], sizes = [8, 32], strides = [1, 1]} : vector<8x128xf32> to vector<8x32xf32>
    %28 = arith.truncf %27 : vector<8x32xf32> to vector<8x32xbf16>
    %29 = vector.extract_strided_slice %18 {offsets = [0, 0], sizes = [8, 32], strides = [1, 1]} : vector<8x128xf32> to vector<8x32xf32>
    %30 = arith.truncf %29 : vector<8x32xf32> to vector<8x32xbf16>
    %31 = vector.extract_strided_slice %19 {offsets = [0, 0], sizes = [8, 32], strides = [1, 1]} : vector<8x128xf32> to vector<8x32xf32>
    %32 = arith.truncf %31 : vector<8x32xf32> to vector<8x32xbf16>
    %cst_20 = arith.constant dense<0.000000e+00> : vector<8x8xf32>
    %33 = tpu.matmul %28, %30, %cst_20 {dimension_numbers = #tpu.dot_dimension_numbers<[1], [1], [0], [0], [0, 0, 1, 0], [], []>} : vector<8x32xbf16>, vector<8x32xbf16>, vector<8x8xf32> -> vector<8x8xf32>
    %34 = arith.addf %33, %25 : vector<8x8xf32>
    %cst_21 = arith.constant dense<0xFF800000> : vector<8xf32>
    %35 = vector.multi_reduction <maximumf>, %34, %cst_21 [1] : vector<8x8xf32> to vector<8xf32>
    %36 = vector.shape_cast %35 : vector<8xf32> to vector<8x1xf32>
    %37 = vector.broadcast %36 : vector<8x1xf32> to vector<8x8xf32>
    %38 = arith.subf %34, %37 : vector<8x8xf32>
    %39 = math.exp %38 : vector<8x8xf32>
    %cst_22 = arith.constant dense<0.000000e+00> : vector<8xf32>
    %40 = vector.multi_reduction <add>, %39, %cst_22 [1] : vector<8x8xf32> to vector<8xf32>
    %41 = vector.shape_cast %40 : vector<8xf32> to vector<8x1xf32>
    %42 = tpu.reciprocal %41 {approx = true} : vector<8x1xf32> -> vector<8x1xf32>
    %43 = vector.broadcast %42 : vector<8x1xf32> to vector<8x8xf32>
    %44 = arith.mulf %39, %43 : vector<8x8xf32>
    %45 = arith.truncf %44 : vector<8x8xf32> to vector<8x8xbf16>
    %cst_23 = arith.constant dense<0.000000e+00> : vector<8x32xf32>
    %46 = tpu.matmul %45, %32, %cst_23 {dimension_numbers = #tpu.dot_dimension_numbers<[1], [0], [0], [1], [0, 0, 1, 1], [], []>} : vector<8x8xbf16>, vector<8x32xbf16>, vector<8x32xf32> -> vector<8x32xf32>
    %47 = arith.truncf %46 : vector<8x32xf32> to vector<8x32xbf16>
    %c0_24 = arith.constant 0 : index
    %c0_25 = arith.constant 0 : index
    %48 = vector.load %arg6[%c0_24, %c0_25] : memref<128x128xbf16, #tpu.memory_space<vmem>>, vector<32x128xbf16>
    %cst_26 = arith.constant dense<0.000000e+00> : vector<8x128xf32>
    %49 = tpu.matmul %47, %48, %cst_26 {dimension_numbers = #tpu.dot_dimension_numbers<[1], [0], [0], [1], [0, 0, 1, 1], [], []>} : vector<8x32xbf16>, vector<32x128xbf16>, vector<8x128xf32> -> vector<8x128xf32>
    %50 = arith.addf %26, %49 : vector<8x128xf32>
    %51 = vector.extract_strided_slice %12 {offsets = [0, 32], sizes = [8, 32], strides = [1, 1]} : vector<8x128xf32> to vector<8x32xf32>
    %52 = arith.truncf %51 : vector<8x32xf32> to vector<8x32xbf16>
    %53 = vector.extract_strided_slice %18 {offsets = [0, 32], sizes = [8, 32], strides = [1, 1]} : vector<8x128xf32> to vector<8x32xf32>
    %54 = arith.truncf %53 : vector<8x32xf32> to vector<8x32xbf16>
    %55 = vector.extract_strided_slice %19 {offsets = [0, 32], sizes = [8, 32], strides = [1, 1]} : vector<8x128xf32> to vector<8x32xf32>
    %56 = arith.truncf %55 : vector<8x32xf32> to vector<8x32xbf16>
    %cst_27 = arith.constant dense<0.000000e+00> : vector<8x8xf32>
    %57 = tpu.matmul %52, %54, %cst_27 {dimension_numbers = #tpu.dot_dimension_numbers<[1], [1], [0], [0], [0, 0, 1, 0], [], []>} : vector<8x32xbf16>, vector<8x32xbf16>, vector<8x8xf32> -> vector<8x8xf32>
    %58 = arith.addf %57, %25 : vector<8x8xf32>
    %cst_28 = arith.constant dense<0xFF800000> : vector<8xf32>
    %59 = vector.multi_reduction <maximumf>, %58, %cst_28 [1] : vector<8x8xf32> to vector<8xf32>
    %60 = vector.shape_cast %59 : vector<8xf32> to vector<8x1xf32>
    %61 = vector.broadcast %60 : vector<8x1xf32> to vector<8x8xf32>
    %62 = arith.subf %58, %61 : vector<8x8xf32>
    %63 = math.exp %62 : vector<8x8xf32>
    %cst_29 = arith.constant dense<0.000000e+00> : vector<8xf32>
    %64 = vector.multi_reduction <add>, %63, %cst_29 [1] : vector<8x8xf32> to vector<8xf32>
    %65 = vector.shape_cast %64 : vector<8xf32> to vector<8x1xf32>
    %66 = tpu.reciprocal %65 {approx = true} : vector<8x1xf32> -> vector<8x1xf32>
    %67 = vector.broadcast %66 : vector<8x1xf32> to vector<8x8xf32>
    %68 = arith.mulf %63, %67 : vector<8x8xf32>
    %69 = arith.truncf %68 : vector<8x8xf32> to vector<8x8xbf16>
    %cst_30 = arith.constant dense<0.000000e+00> : vector<8x32xf32>
    %70 = tpu.matmul %69, %56, %cst_30 {dimension_numbers = #tpu.dot_dimension_numbers<[1], [0], [0], [1], [0, 0, 1, 1], [], []>} : vector<8x8xbf16>, vector<8x32xbf16>, vector<8x32xf32> -> vector<8x32xf32>
    %71 = arith.truncf %70 : vector<8x32xf32> to vector<8x32xbf16>
    %c32 = arith.constant 32 : index
    %c0_31 = arith.constant 0 : index
    %72 = vector.load %arg6[%c32, %c0_31] : memref<128x128xbf16, #tpu.memory_space<vmem>>, vector<32x128xbf16>
    %cst_32 = arith.constant dense<0.000000e+00> : vector<8x128xf32>
    %73 = tpu.matmul %71, %72, %cst_32 {dimension_numbers = #tpu.dot_dimension_numbers<[1], [0], [0], [1], [0, 0, 1, 1], [], []>} : vector<8x32xbf16>, vector<32x128xbf16>, vector<8x128xf32> -> vector<8x128xf32>
    %74 = arith.addf %50, %73 : vector<8x128xf32>
    %75 = vector.extract_strided_slice %12 {offsets = [0, 64], sizes = [8, 32], strides = [1, 1]} : vector<8x128xf32> to vector<8x32xf32>
    %76 = arith.truncf %75 : vector<8x32xf32> to vector<8x32xbf16>
    %77 = vector.extract_strided_slice %18 {offsets = [0, 64], sizes = [8, 32], strides = [1, 1]} : vector<8x128xf32> to vector<8x32xf32>
    %78 = arith.truncf %77 : vector<8x32xf32> to vector<8x32xbf16>
    %79 = vector.extract_strided_slice %19 {offsets = [0, 64], sizes = [8, 32], strides = [1, 1]} : vector<8x128xf32> to vector<8x32xf32>
    %80 = arith.truncf %79 : vector<8x32xf32> to vector<8x32xbf16>
    %cst_33 = arith.constant dense<0.000000e+00> : vector<8x8xf32>
    %81 = tpu.matmul %76, %78, %cst_33 {dimension_numbers = #tpu.dot_dimension_numbers<[1], [1], [0], [0], [0, 0, 1, 0], [], []>} : vector<8x32xbf16>, vector<8x32xbf16>, vector<8x8xf32> -> vector<8x8xf32>
    %82 = arith.addf %81, %25 : vector<8x8xf32>
    %cst_34 = arith.constant dense<0xFF800000> : vector<8xf32>
    %83 = vector.multi_reduction <maximumf>, %82, %cst_34 [1] : vector<8x8xf32> to vector<8xf32>
    %84 = vector.shape_cast %83 : vector<8xf32> to vector<8x1xf32>
    %85 = vector.broadcast %84 : vector<8x1xf32> to vector<8x8xf32>
    %86 = arith.subf %82, %85 : vector<8x8xf32>
    %87 = math.exp %86 : vector<8x8xf32>
    %cst_35 = arith.constant dense<0.000000e+00> : vector<8xf32>
    %88 = vector.multi_reduction <add>, %87, %cst_35 [1] : vector<8x8xf32> to vector<8xf32>
    %89 = vector.shape_cast %88 : vector<8xf32> to vector<8x1xf32>
    %90 = tpu.reciprocal %89 {approx = true} : vector<8x1xf32> -> vector<8x1xf32>
    %91 = vector.broadcast %90 : vector<8x1xf32> to vector<8x8xf32>
    %92 = arith.mulf %87, %91 : vector<8x8xf32>
    %93 = arith.truncf %92 : vector<8x8xf32> to vector<8x8xbf16>
    %cst_36 = arith.constant dense<0.000000e+00> : vector<8x32xf32>
    %94 = tpu.matmul %93, %80, %cst_36 {dimension_numbers = #tpu.dot_dimension_numbers<[1], [0], [0], [1], [0, 0, 1, 1], [], []>} : vector<8x8xbf16>, vector<8x32xbf16>, vector<8x32xf32> -> vector<8x32xf32>
    %95 = arith.truncf %94 : vector<8x32xf32> to vector<8x32xbf16>
    %c64 = arith.constant 64 : index
    %c0_37 = arith.constant 0 : index
    %96 = vector.load %arg6[%c64, %c0_37] : memref<128x128xbf16, #tpu.memory_space<vmem>>, vector<32x128xbf16>
    %cst_38 = arith.constant dense<0.000000e+00> : vector<8x128xf32>
    %97 = tpu.matmul %95, %96, %cst_38 {dimension_numbers = #tpu.dot_dimension_numbers<[1], [0], [0], [1], [0, 0, 1, 1], [], []>} : vector<8x32xbf16>, vector<32x128xbf16>, vector<8x128xf32> -> vector<8x128xf32>
    %98 = arith.addf %74, %97 : vector<8x128xf32>
    %99 = vector.extract_strided_slice %12 {offsets = [0, 96], sizes = [8, 32], strides = [1, 1]} : vector<8x128xf32> to vector<8x32xf32>
    %100 = arith.truncf %99 : vector<8x32xf32> to vector<8x32xbf16>
    %101 = vector.extract_strided_slice %18 {offsets = [0, 96], sizes = [8, 32], strides = [1, 1]} : vector<8x128xf32> to vector<8x32xf32>
    %102 = arith.truncf %101 : vector<8x32xf32> to vector<8x32xbf16>
    %103 = vector.extract_strided_slice %19 {offsets = [0, 96], sizes = [8, 32], strides = [1, 1]} : vector<8x128xf32> to vector<8x32xf32>
    %104 = arith.truncf %103 : vector<8x32xf32> to vector<8x32xbf16>
    %cst_39 = arith.constant dense<0.000000e+00> : vector<8x8xf32>
    %105 = tpu.matmul %100, %102, %cst_39 {dimension_numbers = #tpu.dot_dimension_numbers<[1], [1], [0], [0], [0, 0, 1, 0], [], []>} : vector<8x32xbf16>, vector<8x32xbf16>, vector<8x8xf32> -> vector<8x8xf32>
    %106 = arith.addf %105, %25 : vector<8x8xf32>
    %cst_40 = arith.constant dense<0xFF800000> : vector<8xf32>
    %107 = vector.multi_reduction <maximumf>, %106, %cst_40 [1] : vector<8x8xf32> to vector<8xf32>
    %108 = vector.shape_cast %107 : vector<8xf32> to vector<8x1xf32>
    %109 = vector.broadcast %108 : vector<8x1xf32> to vector<8x8xf32>
    %110 = arith.subf %106, %109 : vector<8x8xf32>
    %111 = math.exp %110 : vector<8x8xf32>
    %cst_41 = arith.constant dense<0.000000e+00> : vector<8xf32>
    %112 = vector.multi_reduction <add>, %111, %cst_41 [1] : vector<8x8xf32> to vector<8xf32>
    %113 = vector.shape_cast %112 : vector<8xf32> to vector<8x1xf32>
    %114 = tpu.reciprocal %113 {approx = true} : vector<8x1xf32> -> vector<8x1xf32>
    %115 = vector.broadcast %114 : vector<8x1xf32> to vector<8x8xf32>
    %116 = arith.mulf %111, %115 : vector<8x8xf32>
    %117 = arith.truncf %116 : vector<8x8xf32> to vector<8x8xbf16>
    %cst_42 = arith.constant dense<0.000000e+00> : vector<8x32xf32>
    %118 = tpu.matmul %117, %104, %cst_42 {dimension_numbers = #tpu.dot_dimension_numbers<[1], [0], [0], [1], [0, 0, 1, 1], [], []>} : vector<8x8xbf16>, vector<8x32xbf16>, vector<8x32xf32> -> vector<8x32xf32>
    %119 = arith.truncf %118 : vector<8x32xf32> to vector<8x32xbf16>
    %c96 = arith.constant 96 : index
    %c0_43 = arith.constant 0 : index
    %120 = vector.load %arg6[%c96, %c0_43] : memref<128x128xbf16, #tpu.memory_space<vmem>>, vector<32x128xbf16>
    %cst_44 = arith.constant dense<0.000000e+00> : vector<8x128xf32>
    %121 = tpu.matmul %119, %120, %cst_44 {dimension_numbers = #tpu.dot_dimension_numbers<[1], [0], [0], [1], [0, 0, 1, 1], [], []>} : vector<8x32xbf16>, vector<32x128xbf16>, vector<8x128xf32> -> vector<8x128xf32>
    %122 = arith.addf %98, %121 : vector<8x128xf32>
    %c0_45 = arith.constant 0 : index
    %c0_46 = arith.constant 0 : index
    %123 = vector.load %arg7[%c0_45, %c0_46] : memref<1x128xf32, #tpu.memory_space<vmem>>, vector<1x128xf32>
    %124 = vector.broadcast %123 : vector<1x128xf32> to vector<8x128xf32>
    %125 = arith.addf %122, %124 : vector<8x128xf32>
    %126 = arith.truncf %125 : vector<8x128xf32> to vector<8x128xbf16>
    %c0_47 = arith.constant 0 : index
    %c0_48 = arith.constant 0 : index
    %c0_49 = arith.constant 0 : index
    %127 = vector.load %arg10[%c0_47, %c0_48, %c0_49] : memref<1x8x128xbf16, #tpu.memory_space<vmem>>, vector<1x8x128xbf16>
    %128 = vector.shape_cast %127 : vector<1x8x128xbf16> to vector<8x128xbf16>
    %129 = vector.shape_cast %126 : vector<8x128xbf16> to vector<1x8x128xbf16>
    tpu.vector_store %arg10[%c0_47, %c0_48, %c0_49], %129 {strides = array<i32>} : memref<1x8x128xbf16, #tpu.memory_space<vmem>>, vector<1x8x128xbf16>,
    %130 = arith.addf %1, %125 : vector<8x128xf32>
    %cst_50 = arith.constant dense<0.000000e+00> : vector<8xf32>
    %131 = vector.multi_reduction <add>, %130, %cst_50 [1] : vector<8x128xf32> to vector<8xf32>
    %132 = vector.shape_cast %131 : vector<8xf32> to vector<8x1xf32>
    %cst_51 = arith.constant 1.280000e+02 : f32
    %133 = vector.broadcast %cst_51 : f32 to vector<8x1xf32>
    %134 = arith.divf %132, %133 : vector<8x1xf32>
    %135 = vector.broadcast %134 : vector<8x1xf32> to vector<8x128xf32>
    %136 = arith.subf %130, %135 : vector<8x128xf32>
    %137 = vector.broadcast %134 : vector<8x1xf32> to vector<8x128xf32>
    %138 = arith.subf %130, %137 : vector<8x128xf32>
    %139 = arith.mulf %136, %138 : vector<8x128xf32>
    %cst_52 = arith.constant dense<0.000000e+00> : vector<8xf32>
    %140 = vector.multi_reduction <add>, %139, %cst_52 [1] : vector<8x128xf32> to vector<8xf32>
    %141 = vector.shape_cast %140 : vector<8xf32> to vector<8x1xf32>
    %cst_53 = arith.constant 1.280000e+02 : f32
    %142 = vector.broadcast %cst_53 : f32 to vector<8x1xf32>
    %143 = arith.divf %141, %142 : vector<8x1xf32>
    %144 = vector.broadcast %134 : vector<8x1xf32> to vector<8x128xf32>
    %145 = arith.subf %130, %144 : vector<8x128xf32>
    %cst_54 = arith.constant 9.99999974E-6 : f32
    %146 = vector.broadcast %cst_54 : f32 to vector<8x1xf32>
    %147 = arith.addf %143, %146 : vector<8x1xf32>
    %148 = math.rsqrt %147 : vector<8x1xf32>
    %149 = vector.broadcast %148 : vector<8x1xf32> to vector<8x128xf32>
    %150 = arith.mulf %145, %149 : vector<8x128xf32>
    %c0_55 = arith.constant 0 : index
    %c0_56 = arith.constant 0 : index
    %151 = vector.load %arg8[%c0_55, %c0_56] : memref<1x128xf32, #tpu.memory_space<vmem>>, vector<1x128xf32>
    %152 = vector.broadcast %151 : vector<1x128xf32> to vector<8x128xf32>
    %153 = arith.mulf %150, %152 : vector<8x128xf32>
    %c0_57 = arith.constant 0 : index
    %c0_58 = arith.constant 0 : index
    %154 = vector.load %arg9[%c0_57, %c0_58] : memref<1x128xf32, #tpu.memory_space<vmem>>, vector<1x128xf32>
    %155 = vector.broadcast %154 : vector<1x128xf32> to vector<8x128xf32>
    %156 = arith.addf %153, %155 : vector<8x128xf32>
    %c0_59 = arith.constant 0 : index
    %c0_60 = arith.constant 0 : index
    %c0_61 = arith.constant 0 : index
    %157 = vector.load %arg11[%c0_59, %c0_60, %c0_61] : memref<1x8x128xf32, #tpu.memory_space<vmem>>, vector<1x8x128xf32>
    %158 = vector.shape_cast %157 : vector<1x8x128xf32> to vector<8x128xf32>
    %159 = vector.shape_cast %156 : vector<8x128xf32> to vector<1x8x128xf32>
    tpu.vector_store %arg11[%c0_59, %c0_60, %c0_61], %159 {strides = array<i32>} : memref<1x8x128xf32, #tpu.memory_space<vmem>>, vector<1x8x128xf32>,
    return
  }
  func.func @transform_0(%arg0: i32) -> (i32, i32, i32) {
    %c0_i32 = arith.constant 0 : i32
    %c0_i32_0 = arith.constant 0 : i32
    %c0_i32_1 = arith.constant 0 : i32
    return %arg0, %c0_i32, %c0_i32_0 : i32, i32, i32
  }
  func.func @transform_1(%arg0: i32) -> (i32, i32) {
    %c0_i32 = arith.constant 0 : i32
    %c0_i32_0 = arith.constant 0 : i32
    %c0_i32_1 = arith.constant 0 : i32
    return %c0_i32, %c0_i32_0 : i32, i32
  }
  func.func @transform_2(%arg0: i32) -> (i32, i32) {
    %c0_i32 = arith.constant 0 : i32
    %c0_i32_0 = arith.constant 0 : i32
    %c0_i32_1 = arith.constant 0 : i32
    return %c0_i32, %c0_i32_0 : i32, i32
  }
  func.func @transform_3(%arg0: i32) -> (i32, i32) {
    %c0_i32 = arith.constant 0 : i32
    %c0_i32_0 = arith.constant 0 : i32
    %c0_i32_1 = arith.constant 0 : i32
    return %c0_i32, %c0_i32_0 : i32, i32
  }
  func.func @transform_4(%arg0: i32) -> (i32, i32) {
    %c0_i32 = arith.constant 0 : i32
    %c0_i32_0 = arith.constant 0 : i32
    %c0_i32_1 = arith.constant 0 : i32
    return %c0_i32, %c0_i32_0 : i32, i32
  }
  func.func @transform_5(%arg0: i32) -> (i32, i32) {
    %c0_i32 = arith.constant 0 : i32
    %c0_i32_0 = arith.constant 0 : i32
    %c0_i32_1 = arith.constant 0 : i32
    return %c0_i32, %c0_i32_0 : i32, i32
  }
  func.func @transform_6(%arg0: i32) -> (i32, i32) {
    %c0_i32 = arith.constant 0 : i32
    %c0_i32_0 = arith.constant 0 : i32
    %c0_i32_1 = arith.constant 0 : i32
    return %c0_i32, %c0_i32_0 : i32, i32
  }
  func.func @transform_7(%arg0: i32) -> (i32, i32) {
    %c0_i32 = arith.constant 0 : i32
    %c0_i32_0 = arith.constant 0 : i32
    %c0_i32_1 = arith.constant 0 : i32
    return %c0_i32, %c0_i32_0 : i32, i32
  }
  func.func @transform_8(%arg0: i32) -> (i32, i32) {
    %c0_i32 = arith.constant 0 : i32
    %c0_i32_0 = arith.constant 0 : i32
    %c0_i32_1 = arith.constant 0 : i32
    return %c0_i32, %c0_i32_0 : i32, i32
  }
  func.func @transform_9(%arg0: i32) -> (i32, i32, i32) {
    %c0_i32 = arith.constant 0 : i32
    %c0_i32_0 = arith.constant 0 : i32
    %c0_i32_1 = arith.constant 0 : i32
    return %arg0, %c0_i32, %c0_i32_0 : i32, i32, i32
  }
  func.func @transform_10(%arg0: i32) -> (i32, i32, i32) {
    %c0_i32 = arith.constant 0 : i32
    %c0_i32_0 = arith.constant 0 : i32
    %c0_i32_1 = arith.constant 0 : i32
    return %arg0, %c0_i32, %c0_i32_0 : i32, i32, i32
  }
}

</mosaic_0001>

<bundles_post_ra>
// kernel: decoder_layer.4
= control target key start
LH: loop header
LB: loop body
LE: loop exit
PB: predicated region body
PF: predicated region fallthrough
CT: control target
= control target key end

     0   :  { %s2580_s0 = inlined_call_operand.vmem [shape: bf16[2,8,128], index: 0, kind: input, shape index: {}]   ;;  %s2581_s1 = inlined_call_operand.vmem [shape: f32[2,8,128], index: 1, kind: input, shape index: {}]   ;;  %s2582_s2 = inlined_call_operand.vmem [shape: f32[2,8,128], index: 2, kind: input, shape index: {}]   ;;  %s2583_s3 = inlined_call_operand.vmem [shape: f32[2,1,1,8], index: 3, kind: input, shape index: {}]   ;;  %s2584_s4 = inlined_call_operand.hbm [shape: bf16[128,128], index: 4, kind: input, shape index: {}]   ;;  %s2585_s5 = inlined_call_operand.hbm [shape: f32[1,128], index: 5, kind: input, shape index: {}]   ;;  %s2586_s6 = inlined_call_operand.vmem [shape: bf16[128,256], index: 6, kind: input, shape index: {}]   ;;  %s2587_s7 = inlined_call_operand.hbm [shape: f32[1,256], index: 7, kind: input, shape index: {}]   ;;  %s2588_s8 = inlined_call_operand.hbm [shape: bf16[128,128], index: 8, kind: input, shape index: {}]   ;;  %s2589_s9 = inlined_call_operand.hbm [shape: f32[1,128], index: 9, kind: input, shape index: {}]   ;;  %s2590_s10 = inlined_call_operand.vmem [shape: f32[1,128], index: 10, kind: input, shape index: {}]   ;;  %s2591_s11 = inlined_call_operand.vmem [shape: f32[1,128], index: 11, kind: input, shape index: {}]   ;;  %s2592_s12 = inlined_call_operand.vmem [shape: f32[2,8,128], index: 12, kind: output, shape index: {}]  }
   0x1   :  { %2595 = sst [smem:[#allocation13_spill]] %s2585_s5 }
   0x2   :  { %17 = vsyncpa [#allocation3], 0 }
   0x3   :  { %18 = vsyncpa [#allocation5], 0 }
   0x4   :  { %19 = vsyncpa [#allocation8], 0  ;;  %s2227_s21 = smov 0  }
   0x5 LB: > { %s2149_s22 = smov [#allocation4]   ;;  %s2233_s24 = sadd.s32 4294967295, %s2147_s21   ;;  %s2147_s21 = sphi %s2227_s21, %s25_s21  }
   0x6   : > { %s354_s23 = sshll.u32 %s2149_s22, 4  ;;  %p1659_p0 = scmp.ge.s32.totalorder %s2147_s21, 1  ;;  %s2238_s23 = int_to_ptr.vmem [resolvable:$true] %s354_s23 }
   0x7   : > { %p328_p1 = scmp.lt.s32.totalorder %s2147_s21, 3  ;;  %p2593_p2 = scmp.eq.s32.totalorder %s2233_s24, 0 }
   0x8   : > { %s2150_s26 = smov [#allocation7]   ;;  %s2151_s29 = smov [#allocation2]  }
   0x9   : > { %p2240_p3 = pnand %p1659_p0, %p328_p1  ;;  %s378_s27 = sshll.u32 %s2150_s26, 4  ;;  %s2246_s27 = int_to_ptr.vmem [resolvable:$true] %s378_s27 }
   0xa   : > { %s340_s30 = sshll.u32 %s2151_s29, 4  ;;  %s2152_s13 = smov [#allocation6]   ;;  %s2254_s30 = int_to_ptr.vmem [resolvable:$true] %s340_s30 }
   0xb   : > { %s2596_s25 = scalar_select %p2240_p3, 1, 0 }
   0xc   : > { %p1884_p4 = pneg %p2240_p3  ;;  %s2256_s14 = sshll.u32 %s2152_s13, 4  ;;  %s369_s14 = int_to_ptr.vmem [resolvable:$true] %s2256_s14 }
   0xd   : > { %s2598_s5 = sld [smem:[#allocation13_spill]] }
   0xe   : > { %p2250_p5 = pnand %p2593_p2, %p1884_p4 }
  0x10   : > { %p2266_p7 = pneg %p2250_p5 }
  0x13   : > { %s1989_s17 = scalar_lea.hbm %s2598_s5, 16 }
  0x14   : > { %p1990_p6 = scmp.ne.s32.totalorder %s2598_s5, %s1989_s17  ;;  %p1996_p10 = scmp.lt.u32.totalorder %s1989_s17, %s2598_s5 }
  0x16   : > { %p1992_p8 = pnand %p2266_p7, %p1990_p6 }
  0x18   : > { %p1993_p9 = pneg %p1992_p8 }
  0x1a   : > { %p1998_p11 = pnand %p1996_p10, %p1993_p9 }
  0x1c   : > { %2001 = shalt.err (!%p1998_p11)
}
  0x1d   : > { %s2002_s29 = scalar_lea.vmem %s2238_s23, 16  ;;  %s2009_s13 = scalar_lea.vmem %s2238_s23, 32 }
  0x1e   : > { %p2003_p12 = scmp.ne.s32.totalorder %s2238_s23, %s2002_s29  ;;  %p2010_p1 = scmp.lt.s32.totalorder %s2238_s23, %s2238_s23 }
  0x1f   : > { %p2011_p4 = scmp.lt.s32.totalorder %s2009_s13, %s2002_s29 }
  0x20   : > { %p2005_p13 = pnand %p2003_p12, %p2266_p7 }
  0x21   : > { %p2012_p6 = por %p2011_p4, %p2010_p1 }
  0x22   : > { %p2006_p0 = pneg %p2005_p13 }
  0x24   : > { %p2013_p8 = pnand %p2012_p6, %p2006_p0 }
  0x26   : > { %2016 = shalt.err (!%p2013_p8)
}
  0x27   : > { %1890 = dma.hbm_to_vmem [thread:$0]  (!%p2250_p5), %s2598_s5, 16, %s2238_s23, [#allocation5]  }
  0x28   : > { %s2017_s19 = scalar_lea.hbm %s2588_s8, 1024 }
  0x29   : > { %p2018_p9 = scmp.ne.s32.totalorder %s2588_s8, %s2017_s19  ;;  %p2024_p12 = scmp.lt.u32.totalorder %s2017_s19, %s2588_s8 }
  0x2b   : > { %p2020_p10 = pnand %p2018_p9, %p2266_p7 }
  0x2d   : > { %p2021_p11 = pneg %p2020_p10 }
  0x2f   : > { %p2026_p13 = pnand %p2024_p12, %p2021_p11 }
  0x31   : > { %2029 = shalt.err (!%p2026_p13)
}
  0x32   : > { %s2030_s23 = scalar_lea.vmem %s2246_s27, 1024  ;;  %p2038_p6 = scmp.lt.s32.totalorder %s2246_s27, %s2246_s27 }
  0x33   : > { %p2031_p0 = scmp.ne.s32.totalorder %s2246_s27, %s2030_s23  ;;  %p2039_p8 = scmp.lt.s32.totalorder %s2030_s23, %s2030_s23 }
  0x35   : > { %p2033_p1 = pnand %p2031_p0, %p2266_p7  ;;  %p2040_p9 = por %p2039_p8, %p2038_p6 }
  0x37   : > { %p2034_p4 = pneg %p2033_p1 }
  0x39   : > { %p2041_p10 = pnand %p2040_p9, %p2034_p4 }
  0x3b   : > { %2044 = shalt.err (!%p2041_p10)
}
  0x3c   : > { %s2153_s15 = smov 64   ;;  %s2154_s16 = smov 4  }
  0x3d   : > { %1896 = dma.hbm_to_vmem [thread:$0]  (!%p2250_p5), %s2588_s8, 1024, %s2246_s27, [#allocation8], %s2153_s15, %s2153_s15, %s2154_s16  }
  0x3e   : > { %s2045_s26 = scalar_lea.hbm %s2584_s4, 1024 }
  0x3f   : > { %p2046_p11 = scmp.ne.s32.totalorder %s2584_s4, %s2045_s26  ;;  %p2052_p0 = scmp.lt.u32.totalorder %s2045_s26, %s2584_s4 }
  0x41   : > { %p2048_p12 = pnand %p2046_p11, %p2266_p7 }
  0x43   : > { %p2049_p13 = pneg %p2048_p12 }
  0x45   : > { %p2054_p1 = pnand %p2052_p0, %p2049_p13 }
  0x47   : > { %2057 = shalt.err (!%p2054_p1)
}
  0x48   : > { %s2058_s27 = scalar_lea.vmem %s2254_s30, 1024  ;;  %p2066_p9 = scmp.lt.s32.totalorder %s2254_s30, %s2254_s30 }
  0x49   : > { %p2059_p4 = scmp.ne.s32.totalorder %s2254_s30, %s2058_s27  ;;  %p2067_p10 = scmp.lt.s32.totalorder %s2058_s27, %s2058_s27 }
  0x4b   : > { %p2061_p6 = pnand %p2059_p4, %p2266_p7  ;;  %p2068_p11 = por %p2067_p10, %p2066_p9 }
  0x4d   : > { %p2062_p8 = pneg %p2061_p6 }
  0x4f   : > { %p2069_p12 = pnand %p2068_p11, %p2062_p8 }
  0x51   : > { %2072 = shalt.err (!%p2069_p12)
}
  0x52   : > { %1887 = dma.hbm_to_vmem [thread:$0]  (!%p2250_p5), %s2584_s4, 1024, %s2254_s30, [#allocation3], %s2153_s15, %s2153_s15, %s2154_s16  }
  0x53   : > { %s2073_s22 = scalar_lea.hbm %s2587_s7, 32 }
  0x54   : > { %p2074_p13 = scmp.ne.s32.totalorder %s2587_s7, %s2073_s22  ;;  %p2080_p4 = scmp.lt.u32.totalorder %s2073_s22, %s2587_s7 }
  0x56   : > { %p2076_p0 = pnand %p2074_p13, %p2266_p7 }
  0x58   : > { %p2077_p1 = pneg %p2076_p0 }
  0x5a   : > { %p2082_p6 = pnand %p2080_p4, %p2077_p1 }
  0x5c   : > { %2085 = shalt.err (!%p2082_p6)
}
  0x5d   : > { %s2086_s27 = scalar_lea.vmem %s369_s14, 32  ;;  %p2094_p11 = scmp.lt.s32.totalorder %s369_s14, %s369_s14 }
  0x5e   : > { %p2087_p8 = scmp.ne.s32.totalorder %s369_s14, %s2086_s27  ;;  %p2095_p12 = scmp.lt.s32.totalorder %s2086_s27, %s2086_s27 }
  0x60   : > { %p2089_p9 = pnand %p2087_p8, %p2266_p7  ;;  %p2096_p2 = por %p2095_p12, %p2094_p11 }
  0x62   : > { %p2090_p10 = pneg %p2089_p9 }
  0x64   : > { %p2097_p3 = pnand %p2096_p2, %p2090_p10 }
  0x66   : > { %2100 = shalt.err (!%p2097_p3)
}
  0x67   : > { %1893 = dma.hbm_to_vmem [thread:$0]  (!%p2250_p5), %s2587_s7, 32, %s369_s14, [#allocation5]  }
  0x68   : > { %s2155_s16 = smov [#allocation9]   ;;  %s2101_s19 = scalar_lea.hbm %s2589_s9, 16 }
  0x69   : > { %s392_s5 = sshll.u32 %s2155_s16, 4  ;;  %p2102_p13 = scmp.ne.s32.totalorder %s2589_s9, %s2101_s19  ;;  %s393_s5 = int_to_ptr.vmem [resolvable:$true] %s392_s5 }
  0x6a   : > { %p2108_p0 = scmp.lt.u32.totalorder %s2101_s19, %s2589_s9 }
  0x6b   : > { %p2104_p2 = pnand %p2102_p13, %p2266_p7 }
  0x6d   : > { %p2105_p3 = pneg %p2104_p2 }
  0x6f   : > { %p2110_p1 = pnand %p2108_p0, %p2105_p3 }
  0x71   : > { %2113 = shalt.err (!%p2110_p1)
}
  0x72   : > { %s2114_s14 = scalar_lea.vmem %s393_s5, 16  ;;  %s2121_s23 = scalar_lea.vmem %s393_s5, 32 }
  0x73   : > { %p2115_p4 = scmp.ne.s32.totalorder %s393_s5, %s2114_s14  ;;  %p2122_p9 = scmp.lt.s32.totalorder %s393_s5, %s393_s5 }
  0x74   : > { %p2123_p10 = scmp.lt.s32.totalorder %s2121_s23, %s2114_s14 }
  0x75   : > { %p2117_p6 = pnand %p2115_p4, %p2266_p7 }
  0x76   : > { %p2124_p11 = por %p2123_p10, %p2122_p9 }
  0x77   : > { %p2118_p8 = pneg %p2117_p6 }
  0x79   : > { %p2125_p12 = pnand %p2124_p11, %p2118_p8 }
  0x7b   : > { %2128 = shalt.err (!%p2125_p12)
}
  0x7c   : > { %1899 = dma.hbm_to_vmem [thread:$0]  (!%p2250_p5), %s2589_s9, 16, %s393_s5, [#allocation8]  }
  0x7d   : > { %p2600_p13 = scmp.ne.s32.totalorder %s2596_s25, 0 }
  0x7e   : > { %p2601_p2 = scmp.eq.s32.totalorder (!%p2600_p13), %s2233_s24, 0 }
  0x7f   : > { %438 = sbr.rel (%p2600_p13) target bundleno = 3079 (0xc07), region = 68 }
  0x86   : > { %2134 = dma.done.wait (%p2601_p2), [#allocation3], 1024   ;;  %p2602_p7 = pmov %p2601_p2 }
  0x87   : > { %p2603_p3 = pmov %p2601_p2 }
  0x88   : > { %2136 = vsyncadd (%p2602_p7), [#allocation3], 4294966272 }
  0x89   : > { %2138 = dma.done.wait (%p2603_p3), [#allocation5], 48   ;;  %p2604_p0 = pmov %p2601_p2 }
  0x8b   : > { %2140 = vsyncadd (%p2604_p0), [#allocation5], 4294967248  ;;  %p2605_p1 = pmov %p2604_p0 }
  0x8c   : > { %p2606_p5 = pmov %p2604_p0 }
  0x8d   : > { %2142 = dma.done.wait (%p2605_p1), [#allocation8], 1040  }
  0x8e   : > { %2144 = vsyncadd (%p2606_p5), [#allocation8], 4294966256  ;;  %v2156_v0 = vmov 0.0   ;;  %v2157_v1 = vmov 0   ;;  %vm2158_vm0 = vmmov 0   ;;  %v1937_v6 = vld [vmem:[#allocation2] sm:$0xff]   ;;  %v658_v29 = vlaneseq }
  0x8f   : > { %1764 = vmatprep.subr.bf16.mxu0 %v2156_v0  ;;  %780 = vmatprep.mubr.bf16.mxu1 %v2157_v1  ;;  %v1931_v2 = vld [vmem:[%s2586_s6 + $0x4] ss:$8 sps:$4 sm:$0xff]   ;;  %v1933_v3 = vld [vmem:[%s2586_s6] ss:$8 sps:$4 sm:$0xff]   ;;  %v1934_v4 = vld [vmem:[%s2586_s6 + $0x14] ss:$8 sps:$4 sm:$0xff]  }
  0x90   : > { %1780 = vmatprep.mubr.msk.bf16.mxu0 %vm2158_vm0, %v2156_v0  ;;  %748 = vmatprep.subr.bf16.mxu1 %v1931_v2  ;;  %v1936_v5 = vld [vmem:[%s2586_s6 + $0x10] ss:$8 sps:$4 sm:$0xff]   ;;  %v1938_v7 = vld [vmem:[%s2586_s6 + $0x24] ss:$8 sps:$4 sm:$0xff]   ;;  %v1940_v9 = vld [vmem:[%s2586_s6 + $0x20] ss:$8 sps:$4 sm:$0xff]  }
  0x91   : > { %749 = vmatpush1.bf16.msra.mxu1 %v1933_v3  ;;  %1765 = vmatpush3.bf16.msra.mxu0 %v1937_v6  ;;  %v1941_v8 = vld [vmem:[#allocation2 + $0x8] sm:$0xff]   ;;  %v1942_v10 = vld [vmem:[%s2586_s6 + $0x34] ss:$8 sps:$4 sm:$0xff]   ;;  %v1944_v12 = vld [vmem:[%s2586_s6 + $0x30] ss:$8 sps:$4 sm:$0xff]   ;;  %p505_p4 = scmp.lt.s32.totalorder %s2233_s24, 1 }
  0x92   : > { %750 = vmatprep.subr.bf16.mxu1 %v1934_v4  ;;  %1766 = vmatprep.subr.bf16.mxu0 %v2156_v0  ;;  %v1945_v11 = vld [vmem:[#allocation2 + $0x10] sm:$0xff]   ;;  %v1946_v13 = vld [vmem:[%s2586_s6 + $0x44] ss:$8 sps:$4 sm:$0xff]   ;;  %v1949_v14 = vld [vmem:[#allocation2 + $0x18] sm:$0xff]   ;;  %v659_v30 = vshrl.u32 %v658_v29, 7  ;;  %vm801_vm1 = vcmask 261120  }
  0x93   : > { %v1948_v15 = vld [vmem:[%s2586_s6 + $0x40] ss:$8 sps:$4 sm:$0xff]   ;;  %s2608_s24 = smov (!%p505_p4, %s2233_s24), 1  ;;  %v1950_v16 = vld [vmem:[%s2586_s6 + $0x54] ss:$8 sps:$4 sm:$0xff]   ;;  %vm864_vm2 = vcmask 1043456  }
  0x94   : > { %v1953_v17 = vld [vmem:[#allocation2 + $0x20] sm:$0xff]   ;;  %v1952_v18 = vld [vmem:[%s2586_s6 + $0x50] ss:$8 sps:$4 sm:$0xff]   ;;  %v1957_v20 = vld [vmem:[#allocation2 + $0x28] sm:$0xff]   ;;  %s2436_s22 = sshll.u32 %s2608_s24, 3  ;;  %s1672_s20 = sshll.u32 %s2608_s24, 2 }
  0x95   : > { %751 = vmatpush1.bf16.msra.mxu1 %v1936_v5  ;;  %1767 = vmatpush3.bf16.msra.mxu0 %v1941_v8  ;;  %v1954_v19 = vld [vmem:[%s2586_s6 + $0x64] ss:$8 sps:$4 sm:$0xff]   ;;  %v1956_v21 = vld [vmem:[%s2586_s6 + $0x60] ss:$8 sps:$4 sm:$0xff]   ;;  %v1958_v22 = vld [vmem:[%s2586_s6 + $0x74] ss:$8 sps:$4 sm:$0xff]   ;;  %s512_s30 = scalar_lea.vmem %s2581_s1, %s2436_s22  ;;  %s508_s5 = scalar_lea.vmem %s2580_s0, %s1672_s20 }
  0x96   : > { %752 = vmatprep.subr.bf16.mxu1 %v1938_v7  ;;  %1768 = vmatprep.subr.bf16.mxu0 %v2156_v0  ;;  %v1961_v23 = vld [vmem:[#allocation2 + $0x30] sm:$0xff]   ;;  %v527_v25 = vld [vmem:[%s512_s30] sm:$0xff]  ;;  %v1962_v26 = vld [vmem:[#allocation2 + $0x38] sm:$0xff]   ;;  %v660_v31 = vsub.s32 0, %v659_v30  ;;  %v664_v33 = vsub.s32 1, %v659_v30  ;;  %s2159_s17 = smov 96   ;;  %s519_s26 = scalar_lea.vmem %s2583_s3, %s2608_s24 }
  0x97   : > { %v1960_v24 = vld [vmem:[%s2586_s6 + $0x70] ss:$8 sps:$4 sm:$0xff]   ;;  %v528_v27 = vpack.c.bf16 %v527_v25, %v527_v25  ;;  %v526_v28 = vld [vmem:[%s508_s5] sm:$0xf]  ;;  %vm848_vm3 = vcmask 64512   ;;  %s2160_s24 = smov 64   ;;  %s516_s23 = scalar_lea.vmem %s2582_s2, %s2436_s22 }
  0x98   : > { %v656_v32 = vld [vmem:[#allocation6] sm:$0x3]  ;;  %v1676_v37 = vld [vmem:[#allocation4] ss:$0 sm:$0xff]  ;;  %v1963_v30 = vld [vmem:[#allocation7] sm:$0xff]   ;;  %s2161_s29 = smov 32   ;;  %s523_s16 = scalar_lea.vmem %s2592_s12, %s2436_s22 }
  0x99   : > { %753 = vmatpush1.bf16.msra.mxu1 %v1940_v9  ;;  %1769 = vmatpush3.bf16.msra.mxu0 %v1945_v11  ;;  %v661_v34 = vrot.slane %v656_v32, %v660_v31  ;;  %v665_v35 = vrot.slane %v656_v32, %v664_v33  ;;  %v789_v56 = vld [vmem:[%s519_s26] sm:$0x1]  ;;  %v1964_v32 = vld [vmem:[#allocation7 + $0x8] sm:$0xff]  }
  0x9a   : > { %754 = vmatprep.subr.bf16.mxu1 %v1942_v10  ;;  %1770 = vmatprep.subr.bf16.mxu0 %v2156_v0  ;;  %v1701_v57 = vadd.f32 -1.0, %v789_v56 }
  0x9c   : > { %v791_v58 = vmul.f32 1e+09, %v1701_v57 }
  0x9d   : > { %755 = vmatpush1.bf16.msra.mxu1 %v1944_v12  ;;  %1771 = vmatpush3.bf16.msra.mxu0 %v1949_v14 }
  0x9e   : > { %756 = vmatprep.subr.bf16.mxu1 %v1946_v13  ;;  %1772 = vmatprep.subr.bf16.mxu0 %v2156_v0  ;;  %v2493_v59 = vrot.slane %v791_v58, %v660_v31 }
  0xa1   : > { %757 = vmatpush1.bf16.msra.mxu1 %v1948_v15  ;;  %1773 = vmatpush3.bf16.msra.mxu0 %v1953_v17 }
  0xa2   : > { %758 = vmatprep.subr.bf16.mxu1 %v1950_v16  ;;  %1774 = vmatprep.subr.bf16.mxu0 %v2156_v0 }
  0xa5   : > { %759 = vmatpush1.bf16.msra.mxu1 %v1952_v18  ;;  %1775 = vmatpush3.bf16.msra.mxu0 %v1957_v20 }
  0xa6   : > { %760 = vmatprep.subr.bf16.mxu1 %v1954_v19  ;;  %1776 = vmatprep.subr.bf16.mxu0 %v2156_v0 }
  0xa9   : > { %761 = vmatpush1.bf16.msra.mxu1 %v1956_v21  ;;  %1777 = vmatpush3.bf16.msra.mxu0 %v1961_v23  ;;  %v1965_v23 = vld [vmem:[#allocation7 + $0x10] sm:$0xff]  }
  0xaa   : > { %762 = vmatprep.subr.bf16.mxu1 %v1958_v22  ;;  %1778 = vmatprep.subr.bf16.mxu0 %v2156_v0 }
  0xad   : > { %763 = vmatpush1.bf16.msra.mxu1 %v1960_v24  ;;  %1779 = vmatpush3.bf16.msra.mxu0 %v1962_v26  ;;  %v1966_v24 = vld [vmem:[#allocation7 + $0x18] sm:$0xff]  }
  0xae   : > { %1790 = vmatprep.subr.bf16.mxu1 %v2156_v0  ;;  %1784 = vmatprep.subr.bf16.mxu0 %v2156_v0 }
  0xb0   : > { %781 = vmatmul.mubr.bf16.vlgmr.msra.gmra.mrb[0].mxu1 %v528_v27  ;;  %1781 = vmatmul.mubr.bf16.vlgmr.msra.gmra.mrb[0].mxu0 %v526_v28 }
  0xb1   : > { %1792 = vmatprep.mubr.msk.bf16.mxu1 %vm2158_vm0, %v2156_v0  ;;  %1786 = vmatprep.mubr.msk.bf16.mxu0 %vm2158_vm0, %v2156_v0 }
 0x183   : > { %v782_v36 = vpop.f32.mrb[0].mxu1  ;;  %v634_v42 = vpop.f32.mrb[0].mxu0 }
 0x184   : > { %v783_v38 = vadd.f32 %v782_v36, %v661_v34  ;;  %v784_v39 = vpop.f32.mrb[1].mxu1  ;;  %v635_v45 = vadd.f32 %v1676_v37, %v634_v42  ;;  %v1782_v46 = vpop.f32.mrb[1].mxu0 }
 0x185   : > { %v785_v40 = vadd.f32 %v784_v39, %v665_v35  ;;  %v786_v41 = vpop.f32.mrb[2].mxu1  ;;  %v637_v48 = vpop.f32.mrb[2].mxu0 }
 0x186   : > { %v2464_v43 = vpack.c.bf16 %v783_v38, %v783_v38  ;;  %v787_v44 = vpop.f32.mrb[3].mxu1  ;;  %v2470_v49 = vpack.c.bf16 %v635_v45, %v635_v45  ;;  %v1783_v51 = vpop.f32.mrb[3].mxu0 }
 0x187   : > { %v2466_v47 = vpack.c.bf16 %v785_v40, %v785_v40 }
 0x188   : > { %917 = vrot.lane.b32.xlu0 %v2464_v43, %s2159_s17  ;;  %v806_v50 = vsel %vm801_vm1, %v2464_v43, 0 }
 0x189   : > { %1785 = vmatpush3.bf16.xpose.msra.mxu0 %v806_v50  ;;  %v866_v52 = vsel %vm864_vm2, %v2466_v47, 0 }
 0x18a   : > { %1791 = vmatpush3.bf16.msra.mxu1 %v866_v52  ;;  %1796 = vmatprep.subr.bf16.mxu0 %v2156_v0 }
 0x18b   : > { %1802 = vmatprep.subr.bf16.mxu1 %v2156_v0 }
 0x18c   : > { %914 = vrot.lane.b32.xlu0 %v2470_v49, %s2159_s17 }
 0x190   : > { %1787 = vmatmul.mubr.msk.bf16.vlgmr.msra.gmra.mrb[4].mxu0 %vm801_vm1, %v2470_v49 }
 0x191   : > { %1798 = vmatprep.mubr.msk.bf16.mxu0 %vm2158_vm0, %v2156_v0 }
 0x1fa   : > { %v918_v53 = vpop.permute.xlu0 %917 }
 0x1fb   : > { %v923_v54 = vsel %vm801_vm1, %v918_v53, 0 }
 0x1fc   : > { %1797 = vmatpush3.bf16.xpose.msra.mxu0 %v923_v54 }
 0x1fd   : > { %1808 = vmatprep.subr.bf16.mxu0 %v2156_v0 }
 0x1fe   : > { %v915_v55 = vpop.permute.xlu0 %914 }
 0x203   : > { %1799 = vmatmul.mubr.msk.bf16.vlgmr.msra.gmra.mrb[8].mxu0 %vm801_vm1, %v915_v55 }
 0x204   : > { %1812 = vmatprep.mubr.msk.bf16.mxu0 %vm2158_vm0, %v2156_v0  ;;  %1809 = vmatpush3.bf16.msra.mxu0 %v1965_v23 }
 0x205   : > { %1810 = vmatprep.subr.bf16.mxu0 %v2156_v0 }
 0x208   : > { %1811 = vmatpush3.bf16.msra.mxu0 %v1966_v24 }
 0x209   : > { %1824 = vmatprep.subr.bf16.mxu0 %v2156_v0 }
 0x263   : > { %v842_v60 = vpop.f32.mrb[4].mxu0 }
 0x264   : > { %v843_v61 = vadd.f32 %v842_v60, %v2493_v59  ;;  %v1788_v62 = vpop.f32.mrb[5].mxu0 }
 0x265   : > { %v845_v63 = vpop.f32.mrb[6].mxu0 }
 0x266   : > { %v1789_v1 = vpop.f32.mrb[7].mxu0  ;;  %v849_v2 = vsel %vm848_vm3, %v843_v61, -inf }
 0x267   : > { %850 = vmax.xlane.f32.xlu1 %v849_v2 }
 0x2d6   : > { %v959_v3 = vpop.f32.mrb[8].mxu0 }
 0x2d7   : > { %v960_v4 = vadd.f32 %v959_v3, %v2493_v59  ;;  %v1800_v5 = vpop.f32.mrb[9].mxu0 }
 0x2d8   : > { %v962_v6 = vpop.f32.mrb[10].mxu0 }
 0x2d9   : > { %v1801_v7 = vpop.f32.mrb[11].mxu0  ;;  %v965_v8 = vsel %vm848_vm3, %v960_v4, -inf }
 0x2da   : > { %966 = vmax.xlane.f32.xlu1 %v965_v8 }
 0x2f4   : > { %v851_v9 = vpop.xlane.xlu1 %850 }
 0x2f5   : > { %v852_v10 = vsub.f32 %v843_v61, %v851_v9  ;;  %v1967_v9 = vld [vmem:[#allocation7 + $0x20] sm:$0xff]  }
 0x2f7   : > { %v853_v11 = vmul.f32 1.442695, %v852_v10 }
 0x2f9   : > { %1971 = vpow2.f32 %v853_v11 }
 0x303   : > { %v1972_v12 = vpop.eup %1971 }
 0x304   : > { %v855_v13 = vsel %vm848_vm3, %v1972_v12, 0.0 }
 0x305   : > { %856 = vadd.xlane.f32.xlu0 %v855_v13 }
 0x31b   : > { %1203 = vrot.lane.b32.xlu0 %v2466_v47, %s2160_s24 }
 0x367   : > { %v967_v14 = vpop.xlane.xlu1 %966 }
 0x368   : > { %v968_v15 = vsub.f32 %v960_v4, %v967_v14 }
 0x36a   : > { %v969_v16 = vmul.f32 1.442695, %v968_v15 }
 0x36c   : > { %1973 = vpow2.f32 %v969_v16 }
 0x376   : > { %v1974_v17 = vpop.eup %1973 }
 0x377   : > { %v971_v18 = vsel %vm848_vm3, %v1974_v17, 0.0 }
 0x378   : > { %972 = vadd.xlane.f32.xlu1 %v971_v18 }
 0x389   : > { %978 = vrot.lane.b32.xlu1 %v2466_v47, %s2159_s17 }
 0x38d   : > { %1143 = vrot.lane.b32.xlu1 %v2464_v43, %s2160_s24 }
 0x391   : > { %1141 = vrot.lane.b32.xlu1 %v2470_v49, %s2160_s24 }
 0x392   : > { %v857_v19 = vpop.xlane.xlu0 %856 }
 0x393   : > { %1975 = vrcp.f32 %v857_v19 }
 0x396   : > { %v1204_v33 = vpop.permute.xlu0 %1203 }
 0x397   : > { %v1209_v38 = vsel %vm864_vm2, %v1204_v33, 0 }
 0x39d   : > { %v1976_v20 = vpop.eup %1975 }
 0x39e   : > { %v859_v21 = vmul.f32 %v1976_v20, %v1972_v12 }
 0x3a0   : > { %v860_v22 = vpack.c.bf16 %v859_v21, %v859_v21 }
 0x3a2   : > { %1793 = vmatmul.mubr.msk.bf16.vlgmr.msra.gmra.mrb[4].mxu1 %vm848_vm3, %v860_v22 }
 0x3a3   : > { %1804 = vmatprep.mubr.msk.bf16.mxu1 %vm2158_vm0, %v2156_v0 }
 0x405   : > { %v973_v25 = vpop.xlane.xlu1 %972 }
 0x406   : > { %1977 = vrcp.f32 %v973_v25 }
 0x409   : > { %v979_v26 = vpop.permute.xlu1 %978 }
 0x40a   : > { %v984_v27 = vsel %vm864_vm2, %v979_v26, 0 }
 0x40b   : > { %1803 = vmatpush3.bf16.msra.mxu1 %v984_v27 }
 0x40c   : > { %1816 = vmatprep.subr.bf16.mxu1 %v2156_v0 }
 0x40d   : > { %v1144_v40 = vpop.permute.xlu1 %1143 }
 0x40e   : > { %v1149_v46 = vsel %vm801_vm1, %v1144_v40, 0 }
 0x410   : > { %v1978_v28 = vpop.eup %1977 }
 0x411   : > { %v975_v29 = vmul.f32 %v1978_v28, %v1974_v17  ;;  %v1142_v50 = vpop.permute.xlu1 %1141 }
 0x413   : > { %v976_v31 = vpack.c.bf16 %v975_v29, %v975_v29 }
 0x415   : > { %1805 = vmatmul.mubr.msk.bf16.vlgmr.msra.gmra.mrb[8].mxu1 %vm848_vm3, %v976_v31 }
 0x416   : > { %1817 = vmatpush3.bf16.msra.mxu1 %v1963_v30  ;;  %1820 = vmatprep.mubr.msk.bf16.mxu1 %vm2158_vm0, %v2156_v0 }
 0x417   : > { %1818 = vmatprep.subr.bf16.mxu1 %v2156_v0 }
 0x41a   : > { %1819 = vmatpush3.bf16.msra.mxu1 %v1964_v32  ;;  %v1969_v32 = vld [vmem:[#allocation7 + $0x30] sm:$0xff]  }
 0x41b   : > { %1830 = vmatprep.subr.bf16.mxu1 %v2156_v0 }
 0x475   : > { %v902_v34 = vpop.f32.mrb[4].mxu1 }
 0x476   : > { %v908_v35 = vpack.c.bf16 %v902_v34, %v902_v34  ;;  %v1794_v36 = vpop.f32.mrb[5].mxu1 }
 0x477   : > { %v905_v37 = vpop.f32.mrb[6].mxu1 }
 0x478   : > { %v1795_v39 = vpop.f32.mrb[7].mxu1  ;;  %1821 = vmatmul.mubr.msk.bf16.vlgmr.msra.gmra.mrb[12].mxu1 %vm801_vm1, %v908_v35 }
 0x479   : > { %1831 = vmatpush3.bf16.msra.mxu1 %v1209_v38  ;;  %1832 = vmatprep.mubr.msk.bf16.mxu1 %vm2158_vm0, %v2156_v0 }
 0x47a   : > { %1844 = vmatprep.subr.bf16.mxu1 %v2156_v0 }
 0x4e8   : > { %v1020_v41 = vpop.f32.mrb[8].mxu1 }
 0x4e9   : > { %v1026_v42 = vpack.c.bf16 %v1020_v41, %v1020_v41  ;;  %v1806_v44 = vpop.f32.mrb[9].mxu1 }
 0x4ea   : > { %v1023_v45 = vpop.f32.mrb[10].mxu1 }
 0x4eb   : > { %v1807_v48 = vpop.f32.mrb[11].mxu1  ;;  %1813 = vmatmul.mubr.msk.bf16.vlgmr.msra.gmra.mrb[12].mxu0 %vm801_vm1, %v1026_v42  ;;  %v1970_v42 = vld [vmem:[#allocation7 + $0x38] sm:$0xff]  }
 0x4ec   : > { %1825 = vmatpush3.bf16.xpose.msra.mxu0 %v1149_v46  ;;  %1826 = vmatprep.mubr.msk.bf16.mxu0 %vm2158_vm0, %v2156_v0 }
 0x4ed   : > { %1836 = vmatprep.subr.bf16.mxu0 %v2156_v0 }
 0x4f3   : > { %1827 = vmatmul.mubr.msk.bf16.vlgmr.msra.gmra.mrb[16].mxu0 %vm801_vm1, %v1142_v50 }
 0x4f4   : > { %1840 = vmatprep.mubr.msk.bf16.mxu0 %vm2158_vm0, %v2156_v0  ;;  %1837 = vmatpush3.bf16.msra.mxu0 %v1967_v9 }
 0x4f5   : > { %1838 = vmatprep.subr.bf16.mxu0 %v2156_v0 }
 0x54b   : > { %v1135_v51 = vpop.f32.mrb[12].mxu1 }
 0x54c   : > { %v1822_v52 = vpop.f32.mrb[13].mxu1 }
 0x54d   : > { %v1138_v53 = vpop.f32.mrb[14].mxu1 }
 0x54e   : > { %v1823_v54 = vpop.f32.mrb[15].mxu1 }
 0x5be   : > { %v1080_v55 = vpop.f32.mrb[12].mxu0 }
 0x5bf   : > { %v2531_v56 = vadd.f32 %v1135_v51, %v1080_v55  ;;  %v1814_v57 = vpop.f32.mrb[13].mxu0  ;;  %v1722_v51 = vld [vmem:[#allocation9] ss:$0 sm:$0xff] }
 0x5c0   : > { %v1083_v58 = vpop.f32.mrb[14].mxu0  ;;  %v525_v55 = vld [vmem:[%s516_s23] sm:$0xff] }
 0x5c1   : > { %v1815_v60 = vpop.f32.mrb[15].mxu0 }
 0x5c6   : > { %v1185_v61 = vpop.f32.mrb[16].mxu0 }
 0x5c7   : > { %v1186_v62 = vadd.f32 %v1185_v61, %v2493_v59  ;;  %v1828_v63 = vpop.f32.mrb[17].mxu0 }
 0x5c8   : > { %v1188_v1 = vpop.f32.mrb[18].mxu0 }
 0x5c9   : > { %v1829_v2 = vpop.f32.mrb[19].mxu0  ;;  %v1191_v3 = vsel %vm848_vm3, %v1186_v62, -inf }
 0x5ca   : > { %1192 = vmax.xlane.f32.xlu1 %v1191_v3 }
 0x657   : > { %v1193_v4 = vpop.xlane.xlu1 %1192 }
 0x658   : > { %v1194_v5 = vsub.f32 %v1186_v62, %v1193_v4 }
 0x65a   : > { %v1195_v6 = vmul.f32 1.442695, %v1194_v5  ;;  %v1723_v5 = vld [vmem:[%s2590_s10] ss:$0 sm:$0xff] }
 0x65c   : > { %1979 = vpow2.f32 %v1195_v6 }
 0x666   : > { %v1980_v7 = vpop.eup %1979 }
 0x667   : > { %v1197_v8 = vsel %vm848_vm3, %v1980_v7, 0.0 }
 0x668   : > { %1198 = vadd.xlane.f32.xlu0 %v1197_v8 }
 0x67e   : > { %1314 = vrot.lane.b32.xlu0 %v2464_v43, %s2161_s29 }
 0x682   : > { %1312 = vrot.lane.b32.xlu0 %v2470_v49, %s2161_s29  ;;  %v1968_v49 = vld [vmem:[#allocation7 + $0x28] sm:$0xff]  }
 0x683   : > { %1839 = vmatpush3.bf16.msra.mxu0 %v1968_v49 }
 0x684   : > { %1850 = vmatprep.subr.bf16.mxu0 %v2156_v0 }
 0x6f5   : > { %v1199_v10 = vpop.xlane.xlu0 %1198 }
 0x6f6   : > { %1981 = vrcp.f32 %v1199_v10 }
 0x6f9   : > { %v1315_v13 = vpop.permute.xlu0 %1314 }
 0x6fa   : > { %v1320_v15 = vsel %vm801_vm1, %v1315_v13, 0 }
 0x6fd   : > { %v1313_v43 = vpop.permute.xlu0 %1312 }
 0x700   : > { %v1982_v11 = vpop.eup %1981 }
 0x701   : > { %v1201_v12 = vmul.f32 %v1982_v11, %v1980_v7  ;;  %v1724_v7 = vld [vmem:[%s2591_s11] ss:$0 sm:$0xff] }
 0x703   : > { %v1202_v14 = vpack.c.bf16 %v1201_v12, %v1201_v12 }
 0x705   : > { %1833 = vmatmul.mubr.msk.bf16.vlgmr.msra.gmra.mrb[16].mxu1 %vm848_vm3, %v1202_v14 }
 0x706   : > { %1845 = vmatpush3.bf16.xpose.msra.mxu1 %v1320_v15  ;;  %1846 = vmatprep.mubr.msk.bf16.mxu1 %vm2158_vm0, %v2156_v0 }
 0x707   : > { %1856 = vmatprep.subr.bf16.mxu1 %v2156_v0 }
 0x70d   : > { %1847 = vmatmul.mubr.msk.bf16.vlgmr.msra.gmra.mrb[20].mxu1 %vm801_vm1, %v1313_v43 }
 0x70e   : > { %1860 = vmatprep.mubr.msk.bf16.mxu1 %vm2158_vm0, %v2156_v0  ;;  %1857 = vmatpush3.bf16.msra.mxu1 %v1969_v32 }
 0x70f   : > { %1858 = vmatprep.subr.bf16.mxu1 %v2156_v0 }
 0x712   : > { %1859 = vmatpush3.bf16.msra.mxu1 %v1970_v42 }
 0x7d8   : > { %v1245_v16 = vpop.f32.mrb[16].mxu1 }
 0x7d9   : > { %v1251_v17 = vpack.c.bf16 %v1245_v16, %v1245_v16  ;;  %v1834_v18 = vpop.f32.mrb[17].mxu1 }
 0x7da   : > { %v1248_v19 = vpop.f32.mrb[18].mxu1 }
 0x7db   : > { %v1835_v20 = vpop.f32.mrb[19].mxu1  ;;  %1841 = vmatmul.mubr.msk.bf16.vlgmr.msra.gmra.mrb[20].mxu0 %vm801_vm1, %v1251_v17 }
 0x7dc   : > { %1852 = vmatprep.mubr.msk.bf16.mxu0 %vm2158_vm0, %v2156_v0 }
 0x7e0   : > { %v1356_v21 = vpop.f32.mrb[20].mxu1 }
 0x7e1   : > { %v1357_v22 = vadd.f32 %v1356_v21, %v2493_v59  ;;  %v1848_v23 = vpop.f32.mrb[21].mxu1 }
 0x7e2   : > { %v1359_v24 = vpop.f32.mrb[22].mxu1 }
 0x7e3   : > { %v1849_v25 = vpop.f32.mrb[23].mxu1  ;;  %v1362_v26 = vsel %vm848_vm3, %v1357_v22, -inf }
 0x7e4   : > { %1363 = vmax.xlane.f32.xlu0 %v1362_v26 }
 0x871   : > { %v1364_v27 = vpop.xlane.xlu0 %1363 }
 0x872   : > { %v1365_v28 = vsub.f32 %v1357_v22, %v1364_v27 }
 0x874   : > { %v1366_v29 = vmul.f32 1.442695, %v1365_v28 }
 0x876   : > { %1983 = vpow2.f32 %v1366_v29 }
 0x880   : > { %v1984_v30 = vpop.eup %1983 }
 0x881   : > { %v1368_v31 = vsel %vm848_vm3, %v1984_v30, 0.0 }
 0x882   : > { %1369 = vadd.xlane.f32.xlu1 %v1368_v31 }
 0x893   : > { %1374 = vrot.lane.b32.xlu1 %v2466_v47, %s2161_s29 }
 0x8ae   : > { %v1305_v59 = vpop.f32.mrb[20].mxu0 }
 0x8af   : > { %v1311_v33 = vadd.f32 %v1305_v59, %v2531_v56  ;;  %v1842_v34 = vpop.f32.mrb[21].mxu0 }
 0x8b0   : > { %v1308_v35 = vpop.f32.mrb[22].mxu0 }
 0x8b1   : > { %v1843_v36 = vpop.f32.mrb[23].mxu0 }
 0x90f   : > { %v1370_v37 = vpop.xlane.xlu1 %1369 }
 0x910   : > { %1985 = vrcp.f32 %v1370_v37 }
 0x913   : > { %v1375_v38 = vpop.permute.xlu1 %1374 }
 0x914   : > { %v1380_v39 = vsel %vm864_vm2, %v1375_v38, 0 }
 0x915   : > { %1851 = vmatpush3.bf16.msra.mxu0 %v1380_v39 }
 0x91a   : > { %v1986_v40 = vpop.eup %1985 }
 0x91b   : > { %v1372_v41 = vmul.f32 %v1986_v40, %v1984_v30 }
 0x91d   : > { %v1373_v47 = vpack.c.bf16 %v1372_v41, %v1372_v41 }
 0x91f   : > { %1853 = vmatmul.mubr.msk.bf16.vlgmr.msra.gmra.mrb[24].mxu0 %vm848_vm3, %v1373_v47 }
 0x9f2   : > { %v1416_v0 = vpop.f32.mrb[24].mxu0 }
 0x9f3   : > { %v1422_v44 = vpack.c.bf16 %v1416_v0, %v1416_v0  ;;  %v1854_v45 = vpop.f32.mrb[25].mxu0 }
 0x9f4   : > { %v1419_v46 = vpop.f32.mrb[26].mxu0 }
 0x9f5   : > { %v1855_v48 = vpop.f32.mrb[27].mxu0  ;;  %1861 = vmatmul.mubr.msk.bf16.vlgmr.msra.gmra.mrb[24].mxu1 %vm801_vm1, %v1422_v44 }
 0xac8   : > { %v1476_v50 = vpop.f32.mrb[24].mxu1 }
 0xac9   : > { %v1482_v52 = vadd.f32 %v1476_v50, %v1311_v33  ;;  %v1862_v53 = vpop.f32.mrb[25].mxu1 }
 0xaca   : > { %v1479_v54 = vpop.f32.mrb[26].mxu1 }
 0xacb   : > { %v1490_v56 = vadd.f32 %v1722_v51, %v1482_v52  ;;  %v1863_v57 = vpop.f32.mrb[27].mxu1 }
 0xacd   : > { %v1491_v58 = vadd.f32 %v1490_v56, %v525_v55 }
 0xacf   : > { %1492 = vadd.xlane.f32.xlu1 %v1491_v58 }
 0xb5c   : > { %v1493_v60 = vpop.xlane.xlu1 %1492 }
 0xb5d   : > { %v1495_v61 = vmul.f32 0.0078125, %v1493_v60 }
 0xb5f   : > { %v1496_v62 = vsub.f32 %v1491_v58, %v1495_v61 }
 0xb61   : > { %v1497_v63 = vmul.f32 %v1496_v62, %v1496_v62 }
 0xb63   : > { %1498 = vadd.xlane.f32.xlu0 %v1497_v63 }
 0xbf0   : > { %v1499_v1 = vpop.xlane.xlu0 %1498 }
 0xbf1   : > { %v1500_v2 = vmul.f32 0.0078125, %v1499_v1 }
 0xbf3   : > { %v1501_v3 = vadd.f32 1e-05, %v1500_v2 }
 0xbf5   : > { %1987 = vrsqrt.f32 %v1501_v3 }
 0xbff   : > { %v1988_v4 = vpop.eup %1987 }
 0xc00   : > { %v1503_v6 = vmul.f32 %v1988_v4, %v1496_v62 }
 0xc02   : > { %v1511_v8 = vmul.f32 %v1723_v5, %v1503_v6 }
 0xc04   : > { %v1519_v9 = vadd.f32 %v1724_v7, %v1511_v8 }
 0xc06   : > { %1520 = vst [vmem:[%s523_s16] sm:$0xff] %v1519_v9 }
 0xc07 PF: > { %s25_s21 = sadd.s32 1, %s2147_s21  }
 0xc08   : > { %p22_p6 = scmp.ge.s32.totalorder %s25_s21, 4  }
 0xc0a   :  { %24 = sbr.rel (!%p22_p6) target bundleno = 5 (0x5), region = 128 }
 0xc11   :  { %1540 = vsyncpa [#allocation3], 1 }
 0xc12   :  { %1542 = vsyncpa [#allocation3 + $0x1], 1 }
 0xc13   :  { %1543 = vsyncpa [#allocation5], 1 }
 0xc14   :  { %1544 = vsyncpa [#allocation8], 1 }

// kernel: decoder_layer.5
= control target key start
LH: loop header
LB: loop body
LE: loop exit
PB: predicated region body
PF: predicated region fallthrough
CT: control target
= control target key end

     0   :  { %12 = vsyncpa [#allocation3], 0  ;;  %s1342_s0 = inlined_call_operand.vmem [shape: f32[16,128], index: 0, kind: input, shape index: {}]   ;;  %s1343_s1 = inlined_call_operand.vmem [shape: bf16[128,512], index: 1, kind: input, shape index: {}]   ;;  %s1344_s2 = inlined_call_operand.hbm [shape: f32[1,512], index: 2, kind: input, shape index: {}]   ;;  %s1345_s3 = inlined_call_operand.vmem [shape: bf16[512,128], index: 3, kind: input, shape index: {}]   ;;  %s1346_s4 = inlined_call_operand.hbm [shape: f32[1,128], index: 4, kind: input, shape index: {}]   ;;  %s1347_s5 = inlined_call_operand.vmem [shape: f32[1,128], index: 5, kind: input, shape index: {}]   ;;  %s1348_s6 = inlined_call_operand.vmem [shape: f32[1,128], index: 6, kind: input, shape index: {}]   ;;  %s1349_s7 = inlined_call_operand.hbm [shape: f32[16,128], index: 7, kind: output, shape index: {}]  }
   0x1   :  { %13 = vsyncpa [#allocation6], 0 }
   0x2   :  { %14 = vsyncpa [#allocation4], 0  ;;  %s1048_s24 = smov [#allocation2]   ;;  %s1049_s26 = smov [#allocation5]  }
   0x3   :  { %s25_s25 = sshll.u32 %s1048_s24, 4  ;;  %s37_s27 = sshll.u32 %s1049_s26, 4  ;;  %s26_s25 = int_to_ptr.vmem [resolvable:$true] %s25_s25  ;;  %s38_s27 = int_to_ptr.vmem [resolvable:$true] %s37_s27 }
   0x4   :  { %s976_s30 = scalar_lea.hbm %s1344_s2, 64 }
   0x5   :  { %p977_p0 = scmp.ne.s32.totalorder %s1344_s2, %s976_s30  ;;  %p980_p1 = scmp.lt.u32.totalorder %s976_s30, %s1344_s2 }
   0x7   :  { %p982_p2 = pnand %p980_p1, %p977_p0 }
   0x9   :  { %985 = shalt.err (!%p982_p2)
}
   0xa   :  { %s986_s12 = scalar_lea.vmem %s26_s25, 64  ;;  %p991_p4 = scmp.lt.s32.totalorder %s26_s25, %s26_s25 }
   0xb   :  { %p987_p3 = scmp.ne.s32.totalorder %s26_s25, %s986_s12  ;;  %p992_p5 = scmp.lt.s32.totalorder %s986_s12, %s986_s12 }
   0xd   :  { %p993_p6 = por %p992_p5, %p991_p4 }
   0xf   :  { %p994_p7 = pnand %p993_p6, %p987_p3 }
  0x11   :  { %997 = shalt.err (!%p994_p7)
}
  0x12   :  { %28 = dma.hbm_to_vmem [thread:$0]  %s1344_s2, 64, %s26_s25, [#allocation3]  }
  0x13   :  { %s998_s17 = scalar_lea.hbm %s1346_s4, 16 }
  0x14   :  { %p999_p8 = scmp.ne.s32.totalorder %s1346_s4, %s998_s17  ;;  %p1002_p9 = scmp.lt.u32.totalorder %s998_s17, %s1346_s4 }
  0x16   :  { %p1004_p10 = pnand %p1002_p9, %p999_p8 }
  0x18   :  { %1007 = shalt.err (!%p1004_p10)
}
  0x19   :  { %s1008_s22 = scalar_lea.vmem %s38_s27, 16  ;;  %s1012_s23 = scalar_lea.vmem %s38_s27, 32 }
  0x1a   :  { %p1009_p11 = scmp.ne.s32.totalorder %s38_s27, %s1008_s22  ;;  %p1013_p12 = scmp.lt.s32.totalorder %s38_s27, %s38_s27 }
  0x1b   :  { %p1014_p13 = scmp.lt.s32.totalorder %s1012_s23, %s1008_s22 }
  0x1d   :  { %p1015_p0 = por %p1014_p13, %p1013_p12 }
  0x1f   :  { %p1016_p1 = pnand %p1015_p0, %p1009_p11 }
  0x21   :  { %1019 = shalt.err (!%p1016_p1)
}
  0x22   :  { %40 = dma.hbm_to_vmem [thread:$0]  %s1346_s4, 16, %s38_s27, [#allocation6]  }
  0x23   :  { %1042 = dma.done.wait [#allocation3], 64  }
  0x24   :  { %1043 = vsyncadd [#allocation3], 4294967232 }
  0x25   :  { %1044 = dma.done.wait [#allocation6], 16  }
  0x26   :  { %1045 = vsyncadd [#allocation6], 4294967280  ;;  %v1050_v0 = vmov 0   ;;  %v892_v1 = vld [vmem:[%s1343_s1 + $0x4] ss:$16 sps:$4 sm:$0xff]   ;;  %v1222_v34 = vld [vmem:[%s1342_s0 + $0x8] sm:$0xff] }
  0x27   :  { %301 = vmatprep.mubr.bf16.mxu0 %v1050_v0  ;;  %344 = vmatprep.mubr.bf16.mxu1 %v1050_v0  ;;  %v894_v2 = vld [vmem:[%s1343_s1 + $0xc] ss:$16 sps:$4 sm:$0xff]   ;;  %v896_v3 = vld [vmem:[%s1343_s1] ss:$16 sps:$4 sm:$0xff]   ;;  %v897_v4 = vld [vmem:[%s1343_s1 + $0x8] ss:$16 sps:$4 sm:$0xff]  }
  0x28   :  { %269 = vmatprep.subr.bf16.mxu0 %v892_v1  ;;  %312 = vmatprep.subr.bf16.mxu1 %v894_v2  ;;  %v898_v5 = vld [vmem:[%s1343_s1 + $0x24] ss:$16 sps:$4 sm:$0xff]   ;;  %v900_v6 = vld [vmem:[%s1343_s1 + $0x2c] ss:$16 sps:$4 sm:$0xff]   ;;  %v902_v7 = vld [vmem:[%s1343_s1 + $0x20] ss:$16 sps:$4 sm:$0xff]  }
  0x29   :  { %270 = vmatpush1.bf16.msra.mxu0 %v896_v3  ;;  %313 = vmatpush1.bf16.msra.mxu1 %v897_v4  ;;  %v903_v8 = vld [vmem:[%s1343_s1 + $0x28] ss:$16 sps:$4 sm:$0xff]   ;;  %v904_v9 = vld [vmem:[%s1343_s1 + $0x44] ss:$16 sps:$4 sm:$0xff]   ;;  %v906_v10 = vld [vmem:[%s1343_s1 + $0x4c] ss:$16 sps:$4 sm:$0xff]   ;;  %v89_v4 = vlaneseq }
  0x2a   :  { %271 = vmatprep.subr.bf16.mxu0 %v898_v5  ;;  %314 = vmatprep.subr.bf16.mxu1 %v900_v6  ;;  %v908_v11 = vld [vmem:[%s1343_s1 + $0x40] ss:$16 sps:$4 sm:$0xff]   ;;  %v909_v12 = vld [vmem:[%s1343_s1 + $0x48] ss:$16 sps:$4 sm:$0xff]   ;;  %v910_v13 = vld [vmem:[%s1343_s1 + $0x64] ss:$16 sps:$4 sm:$0xff]  }
  0x2b   :  { %v912_v14 = vld [vmem:[%s1343_s1 + $0x6c] ss:$16 sps:$4 sm:$0xff]   ;;  %v914_v15 = vld [vmem:[%s1343_s1 + $0x60] ss:$16 sps:$4 sm:$0xff]   ;;  %v915_v16 = vld [vmem:[%s1343_s1 + $0x68] ss:$16 sps:$4 sm:$0xff]  }
  0x2c   :  { %v916_v17 = vld [vmem:[%s1343_s1 + $0x84] ss:$16 sps:$4 sm:$0xff]   ;;  %v918_v18 = vld [vmem:[%s1343_s1 + $0x8c] ss:$16 sps:$4 sm:$0xff]   ;;  %v920_v19 = vld [vmem:[%s1343_s1 + $0x80] ss:$16 sps:$4 sm:$0xff]  }
  0x2d   :  { %272 = vmatpush1.bf16.msra.mxu0 %v902_v7  ;;  %315 = vmatpush1.bf16.msra.mxu1 %v903_v8  ;;  %v921_v20 = vld [vmem:[%s1343_s1 + $0x88] ss:$16 sps:$4 sm:$0xff]   ;;  %v922_v21 = vld [vmem:[%s1343_s1 + $0xa4] ss:$16 sps:$4 sm:$0xff]   ;;  %v924_v22 = vld [vmem:[%s1343_s1 + $0xac] ss:$16 sps:$4 sm:$0xff]  }
  0x2e   :  { %273 = vmatprep.subr.bf16.mxu0 %v904_v9  ;;  %316 = vmatprep.subr.bf16.mxu1 %v906_v10  ;;  %v926_v23 = vld [vmem:[%s1343_s1 + $0xa0] ss:$16 sps:$4 sm:$0xff]   ;;  %v927_v24 = vld [vmem:[%s1343_s1 + $0xa8] ss:$16 sps:$4 sm:$0xff]   ;;  %v928_v25 = vld [vmem:[%s1343_s1 + $0xc4] ss:$16 sps:$4 sm:$0xff]  }
  0x2f   :  { %v930_v26 = vld [vmem:[%s1343_s1 + $0xcc] ss:$16 sps:$4 sm:$0xff]   ;;  %v932_v27 = vld [vmem:[%s1343_s1 + $0xc0] ss:$16 sps:$4 sm:$0xff]   ;;  %v933_v28 = vld [vmem:[%s1343_s1 + $0xc8] ss:$16 sps:$4 sm:$0xff]  }
  0x30   :  { %v934_v29 = vld [vmem:[%s1343_s1 + $0xe4] ss:$16 sps:$4 sm:$0xff]   ;;  %v936_v30 = vld [vmem:[%s1343_s1 + $0xec] ss:$16 sps:$4 sm:$0xff]   ;;  %v938_v31 = vld [vmem:[%s1343_s1 + $0xe0] ss:$16 sps:$4 sm:$0xff]  }
  0x31   :  { %274 = vmatpush1.bf16.msra.mxu0 %v908_v11  ;;  %317 = vmatpush1.bf16.msra.mxu1 %v909_v12  ;;  %v939_v32 = vld [vmem:[%s1343_s1 + $0xe8] ss:$16 sps:$4 sm:$0xff]   ;;  %v1217_v33 = vld [vmem:[%s1342_s0] sm:$0xff]  ;;  %v948_v44 = vld [vmem:[%s1345_s3 + $0x50] sm:$0xff]   ;;  %v90_v5 = vshrl.u32 %v89_v4, 7  ;;  %s1051_s30 = smov [#allocation7]  }
  0x32   :  { %275 = vmatprep.subr.bf16.mxu0 %v910_v13  ;;  %318 = vmatprep.subr.bf16.mxu1 %v912_v14  ;;  %v940_v35 = vld [vmem:[%s1345_s3 + $0x40] sm:$0xff]   ;;  %v54_v38 = vpack.c.bf16 %v1222_v34, %v1217_v33  ;;  %v944_v40 = vld [vmem:[%s1345_s3 + $0x48] sm:$0xff]   ;;  %v949_v45 = vld [vmem:[%s1345_s3 + $0xd0] sm:$0xff]   ;;  %s762_s8 = sshll.u32 %s1051_s30, 4  ;;  %s763_s8 = int_to_ptr.vmem [resolvable:$true] %s762_s8 }
  0x33   :  { %v941_v36 = vld [vmem:[%s1345_s3 + $0xc0] sm:$0xff]   ;;  %v945_v41 = vld [vmem:[%s1345_s3 + $0xc8] sm:$0xff]   ;;  %v950_v46 = vld [vmem:[%s1345_s3 + $0x10] sm:$0xff]   ;;  %v91_v6 = vsub.s32 0, %v90_v5  ;;  %v99_v7 = vsub.s32 2, %v90_v5  ;;  %v95_v9 = vsub.s32 1, %v90_v5  ;;  %p1025_p3 = scmp.lt.s32.totalorder %s763_s8, %s763_s8 }
  0x34   :  { %v942_v37 = vld [vmem:[%s1345_s3] sm:$0xff]   ;;  %v946_v42 = vld [vmem:[%s1345_s3 + $0x8] sm:$0xff]   ;;  %v951_v47 = vld [vmem:[%s1345_s3 + $0x90] sm:$0xff]   ;;  %v103_v10 = vsub.s32 3, %v90_v5  ;;  %s1020_s4 = scalar_lea.vmem %s763_s8, 256 }
  0x35   :  { %276 = vmatpush1.bf16.msra.mxu0 %v914_v15  ;;  %319 = vmatpush1.bf16.msra.mxu1 %v915_v16  ;;  %v943_v39 = vld [vmem:[%s1345_s3 + $0x80] sm:$0xff]   ;;  %v947_v43 = vld [vmem:[%s1345_s3 + $0x88] sm:$0xff]   ;;  %v952_v48 = vld [vmem:[%s1345_s3 + $0x58] sm:$0xff]   ;;  %p1021_p2 = scmp.ne.s32.totalorder %s763_s8, %s1020_s4  ;;  %p1026_p4 = scmp.lt.s32.totalorder %s1020_s4, %s1020_s4 }
  0x36   :  { %277 = vmatprep.subr.bf16.mxu0 %v916_v17  ;;  %320 = vmatprep.subr.bf16.mxu1 %v918_v18  ;;  %v953_v49 = vld [vmem:[%s1345_s3 + $0xd8] sm:$0xff]   ;;  %v956_v52 = vld [vmem:[%s1345_s3 + $0x60] sm:$0xff]   ;;  %v960_v56 = vld [vmem:[%s1345_s3 + $0x68] sm:$0xff]  }
  0x37   :  { %v954_v50 = vld [vmem:[%s1345_s3 + $0x18] sm:$0xff]   ;;  %v957_v53 = vld [vmem:[%s1345_s3 + $0xe0] sm:$0xff]   ;;  %v961_v57 = vld [vmem:[%s1345_s3 + $0xe8] sm:$0xff]   ;;  %p1027_p5 = por %p1026_p4, %p1025_p3 }
  0x38   :  { %v955_v51 = vld [vmem:[%s1345_s3 + $0x98] sm:$0xff]   ;;  %v958_v54 = vld [vmem:[%s1345_s3 + $0x20] sm:$0xff]   ;;  %v962_v58 = vld [vmem:[%s1345_s3 + $0x28] sm:$0xff]  }
  0x39   :  { %278 = vmatpush1.bf16.msra.mxu0 %v920_v19  ;;  %321 = vmatpush1.bf16.msra.mxu1 %v921_v20  ;;  %v959_v55 = vld [vmem:[%s1345_s3 + $0xa0] sm:$0xff]   ;;  %v963_v59 = vld [vmem:[%s1345_s3 + $0xa8] sm:$0xff]   ;;  %v964_v60 = vld [vmem:[%s1345_s3 + $0x70] sm:$0xff]   ;;  %p1028_p6 = pnand %p1027_p5, %p1021_p2 }
  0x3a   :  { %279 = vmatprep.subr.bf16.mxu0 %v922_v21  ;;  %322 = vmatprep.subr.bf16.mxu1 %v924_v22  ;;  %v965_v61 = vld [vmem:[%s1345_s3 + $0xf0] sm:$0xff]   ;;  %v968_v0 = vld [vmem:[%s1345_s3 + $0x78] sm:$0xff]   ;;  %v87_v8 = vld [vmem:[#allocation2] sm:$0xf] }
  0x3b   :  { %v966_v62 = vld [vmem:[%s1345_s3 + $0x30] sm:$0xff]   ;;  %v969_v1 = vld [vmem:[%s1345_s3 + $0xf8] sm:$0xff]   ;;  %v92_v11 = vrot.slane %v87_v8, %v91_v6  ;;  %v100_v12 = vrot.slane %v87_v8, %v99_v7  ;;  %v96_v13 = vrot.slane %v87_v8, %v95_v9  ;;  %v104_v14 = vrot.slane %v87_v8, %v103_v10 }
  0x3c   :  { %v967_v63 = vld [vmem:[%s1345_s3 + $0xb0] sm:$0xff]   ;;  %v970_v2 = vld [vmem:[%s1345_s3 + $0x38] sm:$0xff]  }
  0x3d   :  { %280 = vmatpush1.bf16.msra.mxu0 %v926_v23  ;;  %323 = vmatpush1.bf16.msra.mxu1 %v927_v24  ;;  %v971_v3 = vld [vmem:[%s1345_s3 + $0xb8] sm:$0xff]  }
  0x3e   :  { %281 = vmatprep.subr.bf16.mxu0 %v928_v25  ;;  %324 = vmatprep.subr.bf16.mxu1 %v930_v26 }
  0x41   :  { %282 = vmatpush1.bf16.msra.mxu0 %v932_v27  ;;  %325 = vmatpush1.bf16.msra.mxu1 %v933_v28 }
  0x42   :  { %283 = vmatprep.subr.bf16.mxu0 %v934_v29  ;;  %326 = vmatprep.subr.bf16.mxu1 %v936_v30 }
  0x45   :  { %284 = vmatpush1.bf16.msra.mxu0 %v938_v31  ;;  %327 = vmatpush1.bf16.msra.mxu1 %v939_v32 }
  0x46   :  { %842 = vmatprep.subr.bf16.mxu0 %v940_v35  ;;  %864 = vmatprep.subr.bf16.mxu1 %v941_v36 }
  0x48   :  { %302 = vmatmul.mubr.bf16.vlgmr.msra.gmra.mrb[0].mxu0 %v54_v38  ;;  %345 = vmatmul.mubr.bf16.vlgmr.msra.gmra.mrb[0].mxu1 %v54_v38 }
  0x49   :  { %843 = vmatpush3.bf16.msra.mxu0 %v942_v37  ;;  %865 = vmatpush3.bf16.msra.mxu1 %v943_v39 }
  0x4a   :  { %844 = vmatprep.subr.bf16.mxu0 %v944_v40  ;;  %866 = vmatprep.subr.bf16.mxu1 %v945_v41 }
  0x4d   :  { %845 = vmatpush3.bf16.msra.mxu0 %v946_v42  ;;  %867 = vmatpush3.bf16.msra.mxu1 %v947_v43 }
  0x4e   :  { %846 = vmatprep.subr.bf16.mxu0 %v948_v44  ;;  %868 = vmatprep.subr.bf16.mxu1 %v949_v45 }
  0x51   :  { %847 = vmatpush3.bf16.msra.mxu0 %v950_v46  ;;  %869 = vmatpush3.bf16.msra.mxu1 %v951_v47  ;;  %v807_v47 = vld [vmem:[#allocation5] ss:$0 sm:$0xff] }
  0x52   :  { %848 = vmatprep.subr.bf16.mxu0 %v952_v48  ;;  %870 = vmatprep.subr.bf16.mxu1 %v953_v49 }
  0x55   :  { %849 = vmatpush3.bf16.msra.mxu0 %v954_v50  ;;  %871 = vmatpush3.bf16.msra.mxu1 %v955_v51 }
  0x56   :  { %850 = vmatprep.subr.bf16.mxu0 %v956_v52  ;;  %872 = vmatprep.subr.bf16.mxu1 %v957_v53 }
  0x59   :  { %851 = vmatpush3.bf16.msra.mxu0 %v958_v54  ;;  %873 = vmatpush3.bf16.msra.mxu1 %v959_v55 }
  0x5a   :  { %852 = vmatprep.subr.bf16.mxu0 %v960_v56  ;;  %874 = vmatprep.subr.bf16.mxu1 %v961_v57 }
  0x5d   :  { %853 = vmatpush3.bf16.msra.mxu0 %v962_v58  ;;  %875 = vmatpush3.bf16.msra.mxu1 %v963_v59 }
  0x5e   :  { %854 = vmatprep.subr.bf16.mxu0 %v964_v60  ;;  %876 = vmatprep.subr.bf16.mxu1 %v965_v61 }
  0x61   :  { %855 = vmatpush3.bf16.msra.mxu0 %v966_v62  ;;  %877 = vmatpush3.bf16.msra.mxu1 %v967_v63 }
  0x62   :  { %856 = vmatprep.subr.bf16.mxu0 %v968_v0  ;;  %878 = vmatprep.subr.bf16.mxu1 %v969_v1 }
  0x65   :  { %857 = vmatpush3.bf16.msra.mxu0 %v970_v2  ;;  %879 = vmatpush3.bf16.msra.mxu1 %v971_v3 }
 0x11b   :  { %v303_v15 = vpop.f32.mrb[0].mxu0  ;;  %v346_v16 = vpop.f32.mrb[0].mxu1 }
 0x11c   :  { %v304_v17 = vadd.f32 %v303_v15, %v92_v11  ;;  %v347_v18 = vadd.f32 %v346_v16, %v100_v12  ;;  %v305_v19 = vpop.f32.mrb[1].mxu0  ;;  %v348_v20 = vpop.f32.mrb[1].mxu1  ;;  %v841_v15 = vld [vmem:[%s1348_s6] ss:$0 sm:$0xff] }
 0x11d   :  { %v306_v21 = vadd.f32 %v305_v19, %v96_v13  ;;  %v349_v22 = vadd.f32 %v348_v20, %v104_v14  ;;  %v307_v23 = vpop.f32.mrb[2].mxu0  ;;  %v350_v24 = vpop.f32.mrb[2].mxu1 }
 0x11e   :  { %v357_v25 = vmax.f32 %v347_v18, 0.0  ;;  %v308_v26 = vadd.f32 %v307_v23, %v92_v11  ;;  %v351_v27 = vadd.f32 %v350_v24, %v100_v12  ;;  %v309_v28 = vpop.f32.mrb[3].mxu0  ;;  %v352_v29 = vpop.f32.mrb[3].mxu1  ;;  %v355_v35 = vmax.f32 %v304_v17, 0.0 }
 0x11f   :  { %v358_v30 = vmax.f32 %v349_v22, 0.0  ;;  %v310_v31 = vadd.f32 %v309_v28, %v96_v13  ;;  %v353_v32 = vadd.f32 %v352_v29, %v104_v14  ;;  %v356_v38 = vmax.f32 %v306_v21, 0.0  ;;  %v840_v13 = vld [vmem:[%s1347_s5] ss:$0 sm:$0xff] }
 0x120   :  { %v359_v36 = vmax.f32 %v308_v26, 0.0  ;;  %v361_v37 = vmax.f32 %v351_v27, 0.0 }
 0x121   :  { %v360_v39 = vmax.f32 %v310_v31, 0.0  ;;  %v362_v40 = vmax.f32 %v353_v32, 0.0 }
 0x122   :  { %v363_v41 = vpack.c.bf16 %v359_v36, %v355_v35  ;;  %v365_v42 = vpack.c.bf16 %v361_v37, %v357_v25 }
 0x123   :  { %v364_v43 = vpack.c.bf16 %v360_v39, %v356_v38  ;;  %v366_v44 = vpack.c.bf16 %v362_v40, %v358_v30 }
 0x125   :  { %662 = vmatprep.mubr.bf16.mxu0 %v364_v43  ;;  %703 = vmatprep.mubr.bf16.mxu1 %v366_v44 }
 0x126   :  { %663 = vmatmul.mubr.bf16.vlgmr.msra.gmra.mrb[4].mxu0 %v363_v41  ;;  %704 = vmatmul.mubr.bf16.vlgmr.msra.gmra.mrb[4].mxu1 %v365_v42 }
 0x1f9   :  { %v858_v45 = vpop.f32.mrb[4].mxu0  ;;  %v880_v46 = vpop.f32.mrb[4].mxu1 }
 0x1fa   :  { %v859_v48 = vpop.f32.mrb[5].mxu0  ;;  %v881_v49 = vpop.f32.mrb[5].mxu1 }
 0x1fb   :  { %v860_v50 = vadd.f32 %v859_v48, %v858_v45  ;;  %v882_v51 = vadd.f32 %v881_v49, %v880_v46  ;;  %v861_v52 = vpop.f32.mrb[6].mxu0  ;;  %v883_v53 = vpop.f32.mrb[6].mxu1 }
 0x1fc   :  { %v862_v54 = vpop.f32.mrb[7].mxu0  ;;  %v884_v55 = vpop.f32.mrb[7].mxu1 }
 0x1fd   :  { %v665_v56 = vadd.f32 %v860_v50, %v807_v47  ;;  %v863_v57 = vadd.f32 %v862_v54, %v861_v52  ;;  %v885_v58 = vadd.f32 %v884_v55, %v883_v53 }
 0x1ff   :  { %v706_v59 = vadd.f32 %v882_v51, %v665_v56  ;;  %v668_v60 = vadd.f32 %v863_v57, %v807_v47 }
 0x201   :  { %v709_v61 = vadd.f32 %v885_v58, %v668_v60  ;;  %v712_v62 = vadd.f32 %v706_v59, %v1217_v33 }
 0x203   :  { %714 = vadd.xlane.f32.xlu0 %v712_v62  ;;  %v713_v63 = vadd.f32 %v709_v61, %v1222_v34 }
 0x207   :  { %716 = vadd.xlane.f32.xlu0 %v713_v63 }
 0x290   :  { %v715_v0 = vpop.xlane.xlu0 %714 }
 0x291   :  { %v719_v1 = vmul.f32 0.0078125, %v715_v0 }
 0x293   :  { %v721_v2 = vsub.f32 %v712_v62, %v719_v1 }
 0x294   :  { %v717_v3 = vpop.xlane.xlu0 %716 }
 0x295   :  { %v720_v4 = vmul.f32 0.0078125, %v717_v3  ;;  %v723_v5 = vmul.f32 %v721_v2, %v721_v2 }
 0x297   :  { %v722_v6 = vsub.f32 %v713_v63, %v720_v4  ;;  %725 = vadd.xlane.f32.xlu1 %v723_v5 }
 0x299   :  { %v724_v7 = vmul.f32 %v722_v6, %v722_v6 }
 0x29b   :  { %727 = vadd.xlane.f32.xlu1 %v724_v7 }
 0x324   :  { %v726_v8 = vpop.xlane.xlu1 %725 }
 0x325   :  { %v729_v9 = vmul.f32 0.0078125, %v726_v8 }
 0x327   :  { %v731_v10 = vadd.f32 1e-05, %v729_v9 }
 0x328   :  { %v728_v11 = vpop.xlane.xlu1 %727 }
 0x329   :  { %972 = vrsqrt.f32 %v731_v10  ;;  %v730_v33 = vmul.f32 0.0078125, %v728_v11 }
 0x32b   :  { %v732_v12 = vadd.f32 1e-05, %v730_v33 }
 0x32d   :  { %974 = vrsqrt.f32 %v732_v12 }
 0x333   :  { %v973_v34 = vpop.eup %972 }
 0x334   :  { %v735_v14 = vmul.f32 %v973_v34, %v721_v2 }
 0x336   :  { %v744_v16 = vmul.f32 %v840_v13, %v735_v14 }
 0x337   :  { %v975_v17 = vpop.eup %974 }
 0x338   :  { %v736_v18 = vmul.f32 %v975_v17, %v722_v6  ;;  %v753_v19 = vadd.f32 %v841_v15, %v744_v16 }
 0x33a   :  { %v745_v20 = vmul.f32 %v840_v13, %v736_v18  ;;  %755 = vst [vmem:[#allocation7] sm:$0xff] %v753_v19 }
 0x33c   :  { %v754_v21 = vadd.f32 %v841_v15, %v745_v20 }
 0x33e   :  { %756 = vst [vmem:[#allocation7 + $0x8] sm:$0xff] %v754_v21 }
 0x33f   :  { %1031 = shalt.err (!%p1028_p6)
}
 0x340   :  { %s1032_s27 = scalar_lea.hbm %s1349_s7, 256 }
 0x341   :  { %p1033_p7 = scmp.ne.s32.totalorder %s1349_s7, %s1032_s27  ;;  %p1036_p8 = scmp.lt.u32.totalorder %s1032_s27, %s1349_s7 }
 0x343   :  { %p1038_p9 = pnand %p1036_p8, %p1033_p7 }
 0x345   :  { %1041 = shalt.err (!%p1038_p9)
}
 0x346   :  { %s1052_s13 = smov 128   ;;  %s1053_s14 = smov 8  }
 0x347   :  { %768 = dma.vmem_to_hbm [thread:$0]  %s763_s8, 256, %s1349_s7, [#allocation4], %s1052_s13, %s1052_s13, %s1053_s14  }
 0x348   :  { %1046 = dma.done.wait [#allocation4], 256  }
 0x349   :  { %1047 = vsyncadd [#allocation4], 4294967040 }
 0x34a   :  { %772 = vsyncpa [#allocation3], 1 }
 0x34b   :  { %773 = vsyncpa [#allocation6], 1 }
 0x34c   :  { %774 = vsyncpa [#allocation4], 1 }

// kernel: decoder_layer.3
= control target key start
LH: loop header
LB: loop body
LE: loop exit
PB: predicated region body
PF: predicated region fallthrough
CT: control target
= control target key end

     0   :  { %s2525_s0 = inlined_call_operand.vmem [shape: f32[2,8,128], index: 0, kind: input, shape index: {}]   ;;  %s2526_s1 = inlined_call_operand.hbm [shape: bf16[128,128], index: 1, kind: input, shape index: {}]   ;;  %s2527_s2 = inlined_call_operand.hbm [shape: f32[1,128], index: 2, kind: input, shape index: {}]   ;;  %s2528_s3 = inlined_call_operand.hbm [shape: bf16[128,256], index: 3, kind: input, shape index: {}]   ;;  %s2529_s4 = inlined_call_operand.hbm [shape: f32[1,256], index: 4, kind: input, shape index: {}]   ;;  %s2530_s5 = inlined_call_operand.hbm [shape: bf16[128,128], index: 5, kind: input, shape index: {}]   ;;  %s2531_s6 = inlined_call_operand.hbm [shape: f32[1,128], index: 6, kind: input, shape index: {}]   ;;  %s2532_s7 = inlined_call_operand.vmem [shape: f32[1,128], index: 7, kind: input, shape index: {}]   ;;  %s2533_s8 = inlined_call_operand.vmem [shape: f32[1,128], index: 8, kind: input, shape index: {}]   ;;  %s2534_s9 = inlined_call_operand.vmem [shape: bf16[2,8,128], index: 9, kind: output, shape index: {0}]   ;;  %s2535_s10 = inlined_call_operand.vmem [shape: f32[2,8,128], index: 10, kind: output, shape index: {1}]  }
   0x1   :  { %2540 = sst [smem:[#allocation16_spill]] %s2526_s1 }
   0x2   :  { %16 = vsyncpa [#allocation3], 0 }
   0x3   :  { %17 = vsyncpa [#allocation5], 0 }
   0x4   :  { %18 = vsyncpa [#allocation8], 0 }
   0x5   :  { %19 = vsyncpa [#allocation11], 0  ;;  %s2195_s13 = smov 0  }
   0x6 LB: > { %s2123_s14 = smov [#allocation4]   ;;  %s2201_s16 = sadd.s32 4294967295, %s2121_s13   ;;  %s2121_s13 = sphi %s2195_s13, %s25_s13  }
   0x7   : > { %s302_s15 = sshll.u32 %s2123_s14, 4  ;;  %p1588_p0 = scmp.ge.s32.totalorder %s2121_s13, 1  ;;  %s2206_s15 = int_to_ptr.vmem [resolvable:$true] %s302_s15 }
   0x8   : > { %p276_p1 = scmp.lt.s32.totalorder %s2121_s13, 3  ;;  %p2536_p2 = scmp.eq.s32.totalorder %s2201_s16, 0 }
   0x9   : > { %s2124_s18 = smov [#allocation7]   ;;  %s2125_s20 = smov [#allocation2]  }
   0xa   : > { %p2208_p3 = pnand %p1588_p0, %p276_p1  ;;  %s326_s19 = sshll.u32 %s2124_s18, 4  ;;  %s2214_s19 = int_to_ptr.vmem [resolvable:$true] %s326_s19 }
   0xb   : > { %s288_s21 = sshll.u32 %s2125_s20, 4  ;;  %s2126_s23 = smov [#allocation6]   ;;  %s2222_s21 = int_to_ptr.vmem [resolvable:$true] %s288_s21 }
   0xc   : > { %s2541_s17 = scalar_select %p2208_p3, 1, 0 }
   0xd   : > { %p1817_p4 = pneg %p2208_p3  ;;  %s2224_s24 = sshll.u32 %s2126_s23, 4  ;;  %s313_s24 = int_to_ptr.vmem [resolvable:$true] %s2224_s24 }
   0xe   : > { %s1931_s27 = scalar_lea.hbm %s2527_s2, 16 }
   0xf   : > { %p2218_p5 = pnand %p2536_p2, %p1817_p4  ;;  %p1932_p6 = scmp.ne.s32.totalorder %s2527_s2, %s1931_s27 }
  0x10   : > { %p1938_p10 = scmp.lt.u32.totalorder %s1931_s27, %s2527_s2 }
  0x11   : > { %p2234_p7 = pneg %p2218_p5 }
  0x13   : > { %p1934_p8 = pnand %p2234_p7, %p1932_p6 }
  0x15   : > { %p1935_p9 = pneg %p1934_p8 }
  0x17   : > { %p1940_p11 = pnand %p1938_p10, %p1935_p9 }
  0x19   : > { %1943 = shalt.err (!%p1940_p11)
}
  0x1a   : > { %s1944_s14 = scalar_lea.vmem %s2206_s15, 16  ;;  %s1951_s18 = scalar_lea.vmem %s2206_s15, 32 }
  0x1b   : > { %p1945_p12 = scmp.ne.s32.totalorder %s2206_s15, %s1944_s14  ;;  %p1952_p1 = scmp.lt.s32.totalorder %s2206_s15, %s2206_s15 }
  0x1c   : > { %p1953_p4 = scmp.lt.s32.totalorder %s1951_s18, %s1944_s14 }
  0x1d   : > { %p1947_p13 = pnand %p1945_p12, %p2234_p7 }
  0x1e   : > { %p1954_p6 = por %p1953_p4, %p1952_p1 }
  0x1f   : > { %p1948_p0 = pneg %p1947_p13 }
  0x21   : > { %p1955_p8 = pnand %p1954_p6, %p1948_p0 }
  0x23   : > { %1958 = shalt.err (!%p1955_p8)
}
  0x24   : > { %1823 = dma.hbm_to_vmem [thread:$0]  (!%p2218_p5), %s2527_s2, 16, %s2206_s15, [#allocation5]  }
  0x25   : > { %s1959_s27 = scalar_lea.hbm %s2529_s4, 32 }
  0x26   : > { %p1960_p9 = scmp.ne.s32.totalorder %s2529_s4, %s1959_s27  ;;  %p1966_p12 = scmp.lt.u32.totalorder %s1959_s27, %s2529_s4 }
  0x28   : > { %p1962_p10 = pnand %p1960_p9, %p2234_p7 }
  0x2a   : > { %p1963_p11 = pneg %p1962_p10 }
  0x2c   : > { %p1968_p13 = pnand %p1966_p12, %p1963_p11 }
  0x2e   : > { %1971 = shalt.err (!%p1968_p13)
}
  0x2f   : > { %s1972_s15 = scalar_lea.vmem %s2214_s19, 32  ;;  %p1980_p6 = scmp.lt.s32.totalorder %s2214_s19, %s2214_s19 }
  0x30   : > { %p1973_p0 = scmp.ne.s32.totalorder %s2214_s19, %s1972_s15  ;;  %p1981_p8 = scmp.lt.s32.totalorder %s1972_s15, %s1972_s15 }
  0x32   : > { %p1975_p1 = pnand %p1973_p0, %p2234_p7  ;;  %p1982_p9 = por %p1981_p8, %p1980_p6 }
  0x34   : > { %p1976_p4 = pneg %p1975_p1 }
  0x36   : > { %p1983_p10 = pnand %p1982_p9, %p1976_p4 }
  0x38   : > { %1986 = shalt.err (!%p1983_p10)
}
  0x39   : > { %1829 = dma.hbm_to_vmem [thread:$0]  (!%p2218_p5), %s2529_s4, 32, %s2214_s19, [#allocation8]  }
  0x3a   : > { %s2544_s1 = sld [smem:[#allocation16_spill]] }
  0x40   : > { %s1987_s25 = scalar_lea.hbm %s2544_s1, 1024 }
  0x41   : > { %p1988_p11 = scmp.ne.s32.totalorder %s2544_s1, %s1987_s25  ;;  %p1994_p0 = scmp.lt.u32.totalorder %s1987_s25, %s2544_s1 }
  0x43   : > { %p1990_p12 = pnand %p1988_p11, %p2234_p7 }
  0x45   : > { %p1991_p13 = pneg %p1990_p12 }
  0x47   : > { %p1996_p1 = pnand %p1994_p0, %p1991_p13 }
  0x49   : > { %1999 = shalt.err (!%p1996_p1)
}
  0x4a   : > { %s2000_s19 = scalar_lea.vmem %s2222_s21, 1024  ;;  %p2008_p9 = scmp.lt.s32.totalorder %s2222_s21, %s2222_s21 }
  0x4b   : > { %p2001_p4 = scmp.ne.s32.totalorder %s2222_s21, %s2000_s19  ;;  %p2009_p10 = scmp.lt.s32.totalorder %s2000_s19, %s2000_s19 }
  0x4d   : > { %p2003_p6 = pnand %p2001_p4, %p2234_p7  ;;  %p2010_p11 = por %p2009_p10, %p2008_p9 }
  0x4f   : > { %p2004_p8 = pneg %p2003_p6 }
  0x51   : > { %p2011_p12 = pnand %p2010_p11, %p2004_p8 }
  0x53   : > { %2014 = shalt.err (!%p2011_p12)
}
  0x54   : > { %s2538_s11 = smov 64   ;;  %s2539_s12 = smov 4  }
  0x55   : > { %1820 = dma.hbm_to_vmem [thread:$0]  (!%p2218_p5), %s2544_s1, 1024, %s2222_s21, [#allocation3], %s2538_s11, %s2538_s11, %s2539_s12  }
  0x56   : > { %s2015_s23 = scalar_lea.hbm %s2528_s3, 2048 }
  0x57   : > { %p2016_p13 = scmp.ne.s32.totalorder %s2528_s3, %s2015_s23  ;;  %p2022_p4 = scmp.lt.u32.totalorder %s2015_s23, %s2528_s3 }
  0x59   : > { %p2018_p0 = pnand %p2016_p13, %p2234_p7 }
  0x5b   : > { %p2019_p1 = pneg %p2018_p0 }
  0x5d   : > { %p2024_p6 = pnand %p2022_p4, %p2019_p1 }
  0x5f   : > { %2027 = shalt.err (!%p2024_p6)
}
  0x60   : > { %s2028_s29 = scalar_lea.vmem %s313_s24, 2048  ;;  %p2036_p11 = scmp.lt.s32.totalorder %s313_s24, %s313_s24 }
  0x61   : > { %p2029_p8 = scmp.ne.s32.totalorder %s313_s24, %s2028_s29  ;;  %p2037_p12 = scmp.lt.s32.totalorder %s2028_s29, %s2028_s29 }
  0x63   : > { %p2031_p9 = pnand %p2029_p8, %p2234_p7  ;;  %p2038_p2 = por %p2037_p12, %p2036_p11 }
  0x65   : > { %p2032_p10 = pneg %p2031_p9 }
  0x67   : > { %p2039_p3 = pnand %p2038_p2, %p2032_p10 }
  0x69   : > { %2042 = shalt.err (!%p2039_p3)
}
  0x6a   : > { %s2129_s21 = smov 128   ;;  %s2130_s19 = smov 8  }
  0x6b   : > { %1826 = dma.hbm_to_vmem [thread:$0]  (!%p2218_p5), %s2528_s3, 2048, %s313_s24, [#allocation5], %s2129_s21, %s2129_s21, %s2130_s19  }
  0x6c   : > { %s2131_s18 = smov [#allocation9]   ;;  %s2132_s23 = smov [#allocation10]  }
  0x6d   : > { %s336_s20 = sshll.u32 %s2131_s18, 4  ;;  %s350_s25 = sshll.u32 %s2132_s23, 4  ;;  %s337_s20 = int_to_ptr.vmem [resolvable:$true] %s336_s20  ;;  %s351_s25 = int_to_ptr.vmem [resolvable:$true] %s350_s25 }
  0x6e   : > { %s2043_s28 = scalar_lea.hbm %s2530_s5, 1024 }
  0x6f   : > { %p2044_p2 = scmp.ne.s32.totalorder %s2530_s5, %s2043_s28  ;;  %p2050_p0 = scmp.lt.u32.totalorder %s2043_s28, %s2530_s5 }
  0x71   : > { %p2046_p3 = pnand %p2044_p2, %p2234_p7 }
  0x73   : > { %p2047_p13 = pneg %p2046_p3 }
  0x75   : > { %p2052_p1 = pnand %p2050_p0, %p2047_p13 }
  0x77   : > { %2055 = shalt.err (!%p2052_p1)
}
  0x78   : > { %s2056_s24 = scalar_lea.vmem %s337_s20, 1024  ;;  %p2064_p9 = scmp.lt.s32.totalorder %s337_s20, %s337_s20 }
  0x79   : > { %p2057_p4 = scmp.ne.s32.totalorder %s337_s20, %s2056_s24  ;;  %p2065_p10 = scmp.lt.s32.totalorder %s2056_s24, %s2056_s24 }
  0x7b   : > { %p2059_p6 = pnand %p2057_p4, %p2234_p7  ;;  %p2066_p11 = por %p2065_p10, %p2064_p9 }
  0x7d   : > { %p2060_p8 = pneg %p2059_p6 }
  0x7f   : > { %p2067_p12 = pnand %p2066_p11, %p2060_p8 }
  0x81   : > { %2070 = shalt.err (!%p2067_p12)
}
  0x82   : > { %s2545_s11 = smov 4   ;;  %s2546_s21 = smov 64  }
  0x83   : > { %1832 = dma.hbm_to_vmem [thread:$0]  (!%p2218_p5), %s2530_s5, 1024, %s337_s20, [#allocation8], %s2546_s21, %s2546_s21, %s2545_s11  }
  0x84   : > { %s2071_s14 = scalar_lea.hbm %s2531_s6, 16 }
  0x85   : > { %p2072_p2 = scmp.ne.s32.totalorder %s2531_s6, %s2071_s14  ;;  %p2078_p0 = scmp.lt.u32.totalorder %s2071_s14, %s2531_s6 }
  0x87   : > { %p2074_p3 = pnand %p2072_p2, %p2234_p7 }
  0x89   : > { %p2075_p13 = pneg %p2074_p3 }
  0x8b   : > { %p2080_p1 = pnand %p2078_p0, %p2075_p13 }
  0x8d   : > { %2083 = shalt.err (!%p2080_p1)
}
  0x8e   : > { %s2084_s28 = scalar_lea.vmem %s351_s25, 16  ;;  %s2091_s20 = scalar_lea.vmem %s351_s25, 32 }
  0x8f   : > { %p2085_p4 = scmp.ne.s32.totalorder %s351_s25, %s2084_s28  ;;  %p2092_p9 = scmp.lt.s32.totalorder %s351_s25, %s351_s25 }
  0x90   : > { %p2093_p10 = scmp.lt.s32.totalorder %s2091_s20, %s2084_s28 }
  0x91   : > { %p2087_p6 = pnand %p2085_p4, %p2234_p7 }
  0x92   : > { %p2094_p11 = por %p2093_p10, %p2092_p9 }
  0x93   : > { %p2088_p8 = pneg %p2087_p6 }
  0x95   : > { %p2095_p12 = pnand %p2094_p11, %p2088_p8 }
  0x97   : > { %2098 = shalt.err (!%p2095_p12)
}
  0x98   : > { %1835 = dma.hbm_to_vmem [thread:$0]  (!%p2218_p5), %s2531_s6, 16, %s351_s25, [#allocation11]  }
  0x99   : > { %p2547_p2 = scmp.ne.s32.totalorder %s2541_s17, 0 }
  0x9a   : > { %p2548_p3 = scmp.eq.s32.totalorder (!%p2547_p2), %s2201_s16, 0 }
  0x9b   : > { %376 = sbr.rel (%p2547_p2) target bundleno = 3110 (0xc26), region = 56 }
  0xa2   : > { %2104 = dma.done.wait (%p2548_p3), [#allocation3], 1024   ;;  %p2549_p7 = pmov %p2548_p3 }
  0xa3   : > { %p2550_p13 = pmov %p2548_p3 }
  0xa4   : > { %2106 = vsyncadd (%p2549_p7), [#allocation3], 4294966272 }
  0xa5   : > { %2108 = dma.done.wait (%p2550_p13), [#allocation5], 2064   ;;  %p2551_p0 = pmov %p2548_p3 }
  0xa7   : > { %2110 = vsyncadd (%p2551_p0), [#allocation5], 4294965232  ;;  %p2552_p1 = pmov %p2551_p0 }
  0xa8   : > { %p2553_p5 = pmov %p2551_p0 }
  0xa9   : > { %2112 = dma.done.wait (%p2552_p1), [#allocation8], 1056  }
  0xaa   : > { %2114 = vsyncadd (%p2553_p5), [#allocation8], 4294966240  ;;  %p2554_p4 = pmov %p2551_p0 }
  0xab   : > { %p2555_p6 = pmov %p2551_p0 }
  0xac   : > { %2116 = dma.done.wait (%p2554_p4), [#allocation11], 16  }
  0xad   : > { %2118 = vsyncadd (%p2555_p6), [#allocation11], 4294967280  ;;  %v2133_v0 = vmov 0.0   ;;  %v2134_v1 = vmov 0   ;;  %vm2135_vm0 = vmmov 0   ;;  %v1879_v6 = vld [vmem:[#allocation2] sm:$0xff]   ;;  %v580_v28 = vlaneseq }
  0xae   : > { %1693 = vmatprep.subr.bf16.mxu0 %v2133_v0  ;;  %702 = vmatprep.mubr.bf16.mxu1 %v2134_v1  ;;  %v1873_v2 = vld [vmem:[#allocation6 + $0x4] ss:$8 sps:$4 sm:$0xff]   ;;  %v1875_v3 = vld [vmem:[#allocation6] ss:$8 sps:$4 sm:$0xff]   ;;  %v1876_v4 = vld [vmem:[#allocation6 + $0x14] ss:$8 sps:$4 sm:$0xff]  }
  0xaf   : > { %1709 = vmatprep.mubr.msk.bf16.mxu0 %vm2135_vm0, %v2133_v0  ;;  %670 = vmatprep.subr.bf16.mxu1 %v1873_v2  ;;  %v1878_v5 = vld [vmem:[#allocation6 + $0x10] ss:$8 sps:$4 sm:$0xff]   ;;  %v1880_v7 = vld [vmem:[#allocation6 + $0x24] ss:$8 sps:$4 sm:$0xff]   ;;  %v1882_v9 = vld [vmem:[#allocation6 + $0x20] ss:$8 sps:$4 sm:$0xff]  }
  0xb0   : > { %671 = vmatpush1.bf16.msra.mxu1 %v1875_v3  ;;  %1694 = vmatpush3.bf16.msra.mxu0 %v1879_v6  ;;  %v1883_v8 = vld [vmem:[#allocation2 + $0x8] sm:$0xff]   ;;  %v1884_v10 = vld [vmem:[#allocation6 + $0x34] ss:$8 sps:$4 sm:$0xff]   ;;  %v1886_v12 = vld [vmem:[#allocation6 + $0x30] ss:$8 sps:$4 sm:$0xff]   ;;  %p436_p8 = scmp.lt.s32.totalorder %s2201_s16, 1 }
  0xb1   : > { %672 = vmatprep.subr.bf16.mxu1 %v1876_v4  ;;  %1695 = vmatprep.subr.bf16.mxu0 %v2133_v0  ;;  %v1887_v11 = vld [vmem:[#allocation2 + $0x10] sm:$0xff]   ;;  %v1891_v14 = vld [vmem:[#allocation2 + $0x18] sm:$0xff]   ;;  %v1890_v15 = vld [vmem:[#allocation6 + $0x40] ss:$8 sps:$4 sm:$0xff]   ;;  %v581_v29 = vshrl.u32 %v580_v28, 7  ;;  %vm720_vm1 = vcmask 261120  }
  0xb2   : > { %v1888_v13 = vld [vmem:[#allocation6 + $0x44] ss:$8 sps:$4 sm:$0xff]   ;;  %s2557_s16 = smov (!%p436_p8, %s2201_s16), 1  ;;  %v1892_v16 = vld [vmem:[#allocation6 + $0x54] ss:$8 sps:$4 sm:$0xff]   ;;  %vm783_vm2 = vcmask 1043456  }
  0xb3   : > { %v1894_v17 = vld [vmem:[#allocation6 + $0x50] ss:$8 sps:$4 sm:$0xff]   ;;  %v1895_v18 = vld [vmem:[#allocation2 + $0x20] sm:$0xff]   ;;  %v1899_v20 = vld [vmem:[#allocation2 + $0x28] sm:$0xff]   ;;  %s1603_s17 = sshll.u32 %s2557_s16, 3  ;;  %v582_v30 = vsub.s32 0, %v581_v29 }
  0xb4   : > { %673 = vmatpush1.bf16.msra.mxu1 %v1878_v5  ;;  %1696 = vmatpush3.bf16.msra.mxu0 %v1883_v8  ;;  %v1896_v19 = vld [vmem:[#allocation6 + $0x64] ss:$8 sps:$4 sm:$0xff]   ;;  %v1898_v21 = vld [vmem:[#allocation6 + $0x60] ss:$8 sps:$4 sm:$0xff]   ;;  %v1900_v22 = vld [vmem:[#allocation6 + $0x74] ss:$8 sps:$4 sm:$0xff]   ;;  %s439_s25 = scalar_lea.vmem %s2525_s0, %s1603_s17  ;;  %s447_s29 = scalar_lea.vmem %s2535_s10, %s1603_s17 }
  0xb5   : > { %674 = vmatprep.subr.bf16.mxu1 %v1880_v7  ;;  %1697 = vmatprep.subr.bf16.mxu0 %v2133_v0  ;;  %v1903_v23 = vld [vmem:[#allocation2 + $0x30] sm:$0xff]   ;;  %v2400_v25 = vld [vmem:[%s439_s25] sm:$0xff]  ;;  %v1904_v26 = vld [vmem:[#allocation2 + $0x38] sm:$0xff]   ;;  %v586_v32 = vsub.s32 1, %v581_v29  ;;  %s2136_s11 = smov 96   ;;  %v714_v55 = vand.u32 127, %v580_v28 }
  0xb6   : > { %v1902_v24 = vld [vmem:[#allocation6 + $0x70] ss:$8 sps:$4 sm:$0xff]   ;;  %v450_v27 = vpack.c.bf16 %v2400_v25, %v2400_v25  ;;  %v578_v31 = vld [vmem:[#allocation7] sm:$0x3]  ;;  %v1606_v36 = vld [vmem:[#allocation4] ss:$0 sm:$0xff] }
  0xb7   : > { %v583_v33 = vrot.slane %v578_v31, %v582_v30  ;;  %v587_v34 = vrot.slane %v578_v31, %v586_v32  ;;  %vm715_vm3 = vcmp.ge.s32.totalorder %v581_v29, %v714_v55  ;;  %v2137_v56 = vmov -1e+09   ;;  %s2138_s21 = smov 64   ;;  %v1905_v29 = vld [vmem:[#allocation9] sm:$0xff]   ;;  %v1906_v31 = vld [vmem:[#allocation9 + $0x8] sm:$0xff]   ;;  %s2139_s1 = smov 32  }
  0xb8   : > { %675 = vmatpush1.bf16.msra.mxu1 %v1882_v9  ;;  %1698 = vmatpush3.bf16.msra.mxu0 %v1887_v11  ;;  %v2436_v57 = vsel %vm715_vm3, 0.0, %v2137_v56  ;;  %vm767_vm4 = vcmask 64512   ;;  %s1604_s12 = sshll.u32 %s2557_s16, 2 }
  0xb9   : > { %676 = vmatprep.subr.bf16.mxu1 %v1884_v10  ;;  %1699 = vmatprep.subr.bf16.mxu0 %v2133_v0  ;;  %s443_s14 = scalar_lea.vmem %s2534_s9, %s1604_s12 }
  0xbc   : > { %677 = vmatpush1.bf16.msra.mxu1 %v1886_v12  ;;  %1700 = vmatpush3.bf16.msra.mxu0 %v1891_v14 }
  0xbd   : > { %678 = vmatprep.subr.bf16.mxu1 %v1888_v13  ;;  %1701 = vmatprep.subr.bf16.mxu0 %v2133_v0 }
  0xc0   : > { %679 = vmatpush1.bf16.msra.mxu1 %v1890_v15  ;;  %1702 = vmatpush3.bf16.msra.mxu0 %v1895_v18 }
  0xc1   : > { %680 = vmatprep.subr.bf16.mxu1 %v1892_v16  ;;  %1703 = vmatprep.subr.bf16.mxu0 %v2133_v0 }
  0xc4   : > { %681 = vmatpush1.bf16.msra.mxu1 %v1894_v17  ;;  %1704 = vmatpush3.bf16.msra.mxu0 %v1899_v20 }
  0xc5   : > { %682 = vmatprep.subr.bf16.mxu1 %v1896_v19  ;;  %1705 = vmatprep.subr.bf16.mxu0 %v2133_v0 }
  0xc8   : > { %683 = vmatpush1.bf16.msra.mxu1 %v1898_v21  ;;  %1706 = vmatpush3.bf16.msra.mxu0 %v1903_v23  ;;  %v1907_v21 = vld [vmem:[#allocation9 + $0x10] sm:$0xff]  }
  0xc9   : > { %684 = vmatprep.subr.bf16.mxu1 %v1900_v22  ;;  %1707 = vmatprep.subr.bf16.mxu0 %v2133_v0  ;;  %v1908_v22 = vld [vmem:[#allocation9 + $0x18] sm:$0xff]  }
  0xcc   : > { %685 = vmatpush1.bf16.msra.mxu1 %v1902_v24  ;;  %1708 = vmatpush3.bf16.msra.mxu0 %v1904_v26 }
  0xcd   : > { %1719 = vmatprep.subr.bf16.mxu1 %v2133_v0  ;;  %1713 = vmatprep.subr.bf16.mxu0 %v2133_v0 }
  0xcf   : > { %703 = vmatmul.mubr.bf16.vlgmr.msra.gmra.mrb[0].mxu1 %v450_v27  ;;  %1710 = vmatmul.mubr.bf16.vlgmr.msra.gmra.mrb[0].mxu0 %v450_v27 }
  0xd0   : > { %1721 = vmatprep.mubr.msk.bf16.mxu1 %vm2135_vm0, %v2133_v0  ;;  %1715 = vmatprep.mubr.msk.bf16.mxu0 %vm2135_vm0, %v2133_v0 }
 0x1a2   : > { %v704_v35 = vpop.f32.mrb[0].mxu1  ;;  %v556_v41 = vpop.f32.mrb[0].mxu0 }
 0x1a3   : > { %v705_v37 = vadd.f32 %v704_v35, %v583_v33  ;;  %v706_v38 = vpop.f32.mrb[1].mxu1  ;;  %v557_v44 = vadd.f32 %v1606_v36, %v556_v41  ;;  %v1711_v45 = vpop.f32.mrb[1].mxu0 }
 0x1a4   : > { %v707_v39 = vadd.f32 %v706_v38, %v587_v34  ;;  %v708_v40 = vpop.f32.mrb[2].mxu1  ;;  %v559_v47 = vpop.f32.mrb[2].mxu0 }
 0x1a5   : > { %v2411_v42 = vpack.c.bf16 %v705_v37, %v705_v37  ;;  %v709_v43 = vpop.f32.mrb[3].mxu1  ;;  %v2417_v48 = vpack.c.bf16 %v557_v44, %v557_v44  ;;  %v1712_v50 = vpop.f32.mrb[3].mxu0 }
 0x1a6   : > { %v2413_v46 = vpack.c.bf16 %v707_v39, %v707_v39 }
 0x1a7   : > { %836 = vrot.lane.b32.xlu0 %v2411_v42, %s2136_s11  ;;  %v725_v49 = vsel %vm720_vm1, %v2411_v42, 0 }
 0x1a8   : > { %1714 = vmatpush3.bf16.xpose.msra.mxu0 %v725_v49  ;;  %v785_v51 = vsel %vm783_vm2, %v2413_v46, 0 }
 0x1a9   : > { %1720 = vmatpush3.bf16.msra.mxu1 %v785_v51  ;;  %1725 = vmatprep.subr.bf16.mxu0 %v2133_v0 }
 0x1aa   : > { %1731 = vmatprep.subr.bf16.mxu1 %v2133_v0 }
 0x1ab   : > { %833 = vrot.lane.b32.xlu0 %v2417_v48, %s2136_s11 }
 0x1af   : > { %1716 = vmatmul.mubr.msk.bf16.vlgmr.msra.gmra.mrb[4].mxu0 %vm720_vm1, %v2417_v48 }
 0x1b0   : > { %1727 = vmatprep.mubr.msk.bf16.mxu0 %vm2135_vm0, %v2133_v0 }
 0x219   : > { %v837_v52 = vpop.permute.xlu0 %836 }
 0x21a   : > { %v842_v53 = vsel %vm720_vm1, %v837_v52, 0 }
 0x21b   : > { %1726 = vmatpush3.bf16.xpose.msra.mxu0 %v842_v53 }
 0x21c   : > { %1737 = vmatprep.subr.bf16.mxu0 %v2133_v0 }
 0x21d   : > { %v834_v54 = vpop.permute.xlu0 %833 }
 0x222   : > { %1728 = vmatmul.mubr.msk.bf16.vlgmr.msra.gmra.mrb[8].mxu0 %vm720_vm1, %v834_v54 }
 0x223   : > { %1741 = vmatprep.mubr.msk.bf16.mxu0 %vm2135_vm0, %v2133_v0  ;;  %1738 = vmatpush3.bf16.msra.mxu0 %v1907_v21 }
 0x224   : > { %1739 = vmatprep.subr.bf16.mxu0 %v2133_v0 }
 0x227   : > { %1740 = vmatpush3.bf16.msra.mxu0 %v1908_v22 }
 0x228   : > { %1753 = vmatprep.subr.bf16.mxu0 %v2133_v0 }
 0x282   : > { %v761_v58 = vpop.f32.mrb[4].mxu0 }
 0x283   : > { %v762_v59 = vadd.f32 %v761_v58, %v2436_v57  ;;  %v1717_v60 = vpop.f32.mrb[5].mxu0 }
 0x284   : > { %v764_v61 = vpop.f32.mrb[6].mxu0 }
 0x285   : > { %v1718_v62 = vpop.f32.mrb[7].mxu0  ;;  %v768_v63 = vsel %vm767_vm4, %v762_v59, -inf }
 0x286   : > { %769 = vmax.xlane.f32.xlu1 %v768_v63 }
 0x2f5   : > { %v878_v1 = vpop.f32.mrb[8].mxu0 }
 0x2f6   : > { %v879_v2 = vadd.f32 %v878_v1, %v2436_v57  ;;  %v1729_v3 = vpop.f32.mrb[9].mxu0 }
 0x2f7   : > { %v881_v4 = vpop.f32.mrb[10].mxu0 }
 0x2f8   : > { %v1730_v5 = vpop.f32.mrb[11].mxu0  ;;  %v884_v6 = vsel %vm767_vm4, %v879_v2, -inf }
 0x2f9   : > { %885 = vmax.xlane.f32.xlu1 %v884_v6 }
 0x313   : > { %v770_v7 = vpop.xlane.xlu1 %769 }
 0x314   : > { %v771_v8 = vsub.f32 %v762_v59, %v770_v7 }
 0x316   : > { %v772_v9 = vmul.f32 1.442695, %v771_v8  ;;  %v1909_v8 = vld [vmem:[#allocation9 + $0x20] sm:$0xff]  }
 0x318   : > { %1913 = vpow2.f32 %v772_v9 }
 0x322   : > { %v1914_v10 = vpop.eup %1913 }
 0x323   : > { %v774_v11 = vsel %vm767_vm4, %v1914_v10, 0.0 }
 0x324   : > { %775 = vadd.xlane.f32.xlu0 %v774_v11 }
 0x33a   : > { %1122 = vrot.lane.b32.xlu0 %v2413_v46, %s2138_s21 }
 0x386   : > { %v886_v12 = vpop.xlane.xlu1 %885 }
 0x387   : > { %v887_v13 = vsub.f32 %v879_v2, %v886_v12 }
 0x389   : > { %v888_v14 = vmul.f32 1.442695, %v887_v13 }
 0x38b   : > { %1915 = vpow2.f32 %v888_v14 }
 0x395   : > { %v1916_v15 = vpop.eup %1915 }
 0x396   : > { %v890_v16 = vsel %vm767_vm4, %v1916_v15, 0.0 }
 0x397   : > { %891 = vadd.xlane.f32.xlu1 %v890_v16 }
 0x3a8   : > { %897 = vrot.lane.b32.xlu1 %v2413_v46, %s2136_s11 }
 0x3ac   : > { %1062 = vrot.lane.b32.xlu1 %v2411_v42, %s2138_s21 }
 0x3b0   : > { %1060 = vrot.lane.b32.xlu1 %v2417_v48, %s2138_s21 }
 0x3b1   : > { %v776_v17 = vpop.xlane.xlu0 %775 }
 0x3b2   : > { %1917 = vrcp.f32 %v776_v17 }
 0x3b5   : > { %v1123_v32 = vpop.permute.xlu0 %1122 }
 0x3b6   : > { %v1128_v37 = vsel %vm783_vm2, %v1123_v32, 0  ;;  %v1911_v32 = vld [vmem:[#allocation9 + $0x30] sm:$0xff]  }
 0x3bc   : > { %v1918_v18 = vpop.eup %1917 }
 0x3bd   : > { %v778_v19 = vmul.f32 %v1918_v18, %v1914_v10 }
 0x3bf   : > { %v779_v20 = vpack.c.bf16 %v778_v19, %v778_v19 }
 0x3c1   : > { %1722 = vmatmul.mubr.msk.bf16.vlgmr.msra.gmra.mrb[4].mxu1 %vm767_vm4, %v779_v20 }
 0x3c2   : > { %1733 = vmatprep.mubr.msk.bf16.mxu1 %vm2135_vm0, %v2133_v0 }
 0x424   : > { %v892_v23 = vpop.xlane.xlu1 %891 }
 0x425   : > { %1919 = vrcp.f32 %v892_v23 }
 0x428   : > { %v898_v24 = vpop.permute.xlu1 %897 }
 0x429   : > { %v903_v26 = vsel %vm783_vm2, %v898_v24, 0 }
 0x42a   : > { %1732 = vmatpush3.bf16.msra.mxu1 %v903_v26 }
 0x42b   : > { %1745 = vmatprep.subr.bf16.mxu1 %v2133_v0 }
 0x42c   : > { %v1063_v39 = vpop.permute.xlu1 %1062 }
 0x42d   : > { %v1068_v45 = vsel %vm720_vm1, %v1063_v39, 0 }
 0x42f   : > { %v1920_v27 = vpop.eup %1919 }
 0x430   : > { %v894_v28 = vmul.f32 %v1920_v27, %v1916_v15  ;;  %v1061_v49 = vpop.permute.xlu1 %1060 }
 0x432   : > { %v895_v30 = vpack.c.bf16 %v894_v28, %v894_v28 }
 0x434   : > { %1734 = vmatmul.mubr.msk.bf16.vlgmr.msra.gmra.mrb[8].mxu1 %vm767_vm4, %v895_v30 }
 0x435   : > { %1746 = vmatpush3.bf16.msra.mxu1 %v1905_v29  ;;  %1749 = vmatprep.mubr.msk.bf16.mxu1 %vm2135_vm0, %v2133_v0 }
 0x436   : > { %1747 = vmatprep.subr.bf16.mxu1 %v2133_v0 }
 0x439   : > { %1748 = vmatpush3.bf16.msra.mxu1 %v1906_v31 }
 0x43a   : > { %1759 = vmatprep.subr.bf16.mxu1 %v2133_v0 }
 0x494   : > { %v821_v33 = vpop.f32.mrb[4].mxu1 }
 0x495   : > { %v827_v34 = vpack.c.bf16 %v821_v33, %v821_v33  ;;  %v1723_v35 = vpop.f32.mrb[5].mxu1 }
 0x496   : > { %v824_v36 = vpop.f32.mrb[6].mxu1 }
 0x497   : > { %v1724_v38 = vpop.f32.mrb[7].mxu1  ;;  %1750 = vmatmul.mubr.msk.bf16.vlgmr.msra.gmra.mrb[12].mxu1 %vm720_vm1, %v827_v34 }
 0x498   : > { %1760 = vmatpush3.bf16.msra.mxu1 %v1128_v37  ;;  %1761 = vmatprep.mubr.msk.bf16.mxu1 %vm2135_vm0, %v2133_v0 }
 0x499   : > { %1773 = vmatprep.subr.bf16.mxu1 %v2133_v0 }
 0x507   : > { %v939_v40 = vpop.f32.mrb[8].mxu1 }
 0x508   : > { %v945_v41 = vpack.c.bf16 %v939_v40, %v939_v40  ;;  %v1735_v43 = vpop.f32.mrb[9].mxu1 }
 0x509   : > { %v942_v44 = vpop.f32.mrb[10].mxu1  ;;  %v1912_v43 = vld [vmem:[#allocation9 + $0x38] sm:$0xff]  }
 0x50a   : > { %v1736_v47 = vpop.f32.mrb[11].mxu1  ;;  %1742 = vmatmul.mubr.msk.bf16.vlgmr.msra.gmra.mrb[12].mxu0 %vm720_vm1, %v945_v41 }
 0x50b   : > { %1754 = vmatpush3.bf16.xpose.msra.mxu0 %v1068_v45  ;;  %1755 = vmatprep.mubr.msk.bf16.mxu0 %vm2135_vm0, %v2133_v0 }
 0x50c   : > { %1765 = vmatprep.subr.bf16.mxu0 %v2133_v0 }
 0x512   : > { %1756 = vmatmul.mubr.msk.bf16.vlgmr.msra.gmra.mrb[16].mxu0 %vm720_vm1, %v1061_v49 }
 0x513   : > { %1769 = vmatprep.mubr.msk.bf16.mxu0 %vm2135_vm0, %v2133_v0  ;;  %1766 = vmatpush3.bf16.msra.mxu0 %v1909_v8 }
 0x514   : > { %1767 = vmatprep.subr.bf16.mxu0 %v2133_v0 }
 0x56a   : > { %v1054_v50 = vpop.f32.mrb[12].mxu1 }
 0x56b   : > { %v1751_v51 = vpop.f32.mrb[13].mxu1 }
 0x56c   : > { %v1057_v52 = vpop.f32.mrb[14].mxu1  ;;  %v1651_v51 = vld [vmem:[#allocation10] ss:$0 sm:$0xff] }
 0x56d   : > { %v1752_v53 = vpop.f32.mrb[15].mxu1 }
 0x5dd   : > { %v999_v54 = vpop.f32.mrb[12].mxu0 }
 0x5de   : > { %v2474_v55 = vadd.f32 %v1054_v50, %v999_v54  ;;  %v1743_v56 = vpop.f32.mrb[13].mxu0 }
 0x5df   : > { %v1002_v58 = vpop.f32.mrb[14].mxu0 }
 0x5e0   : > { %v1744_v59 = vpop.f32.mrb[15].mxu0 }
 0x5e5   : > { %v1104_v60 = vpop.f32.mrb[16].mxu0 }
 0x5e6   : > { %v1105_v61 = vadd.f32 %v1104_v60, %v2436_v57  ;;  %v1757_v62 = vpop.f32.mrb[17].mxu0 }
 0x5e7   : > { %v1107_v63 = vpop.f32.mrb[18].mxu0 }
 0x5e8   : > { %v1758_v1 = vpop.f32.mrb[19].mxu0  ;;  %v1110_v2 = vsel %vm767_vm4, %v1105_v61, -inf }
 0x5e9   : > { %1111 = vmax.xlane.f32.xlu1 %v1110_v2 }
 0x676   : > { %v1112_v3 = vpop.xlane.xlu1 %1111 }
 0x677   : > { %v1113_v4 = vsub.f32 %v1105_v61, %v1112_v3 }
 0x679   : > { %v1114_v5 = vmul.f32 1.442695, %v1113_v4 }
 0x67b   : > { %1921 = vpow2.f32 %v1114_v5  ;;  %v1652_v5 = vld [vmem:[%s2532_s7] ss:$0 sm:$0xff] }
 0x685   : > { %v1922_v6 = vpop.eup %1921 }
 0x686   : > { %v1116_v7 = vsel %vm767_vm4, %v1922_v6, 0.0 }
 0x687   : > { %1117 = vadd.xlane.f32.xlu0 %v1116_v7 }
 0x69d   : > { %1233 = vrot.lane.b32.xlu0 %v2411_v42, %s2139_s1 }
 0x6a1   : > { %1231 = vrot.lane.b32.xlu0 %v2417_v48, %s2139_s1  ;;  %v1910_v48 = vld [vmem:[#allocation9 + $0x28] sm:$0xff]  }
 0x6a2   : > { %1768 = vmatpush3.bf16.msra.mxu0 %v1910_v48 }
 0x6a3   : > { %1779 = vmatprep.subr.bf16.mxu0 %v2133_v0 }
 0x714   : > { %v1118_v9 = vpop.xlane.xlu0 %1117 }
 0x715   : > { %1923 = vrcp.f32 %v1118_v9 }
 0x718   : > { %v1234_v12 = vpop.permute.xlu0 %1233 }
 0x719   : > { %v1239_v14 = vsel %vm720_vm1, %v1234_v12, 0 }
 0x71c   : > { %v1232_v42 = vpop.permute.xlu0 %1231 }
 0x71f   : > { %v1924_v10 = vpop.eup %1923 }
 0x720   : > { %v1120_v11 = vmul.f32 %v1924_v10, %v1922_v6 }
 0x722   : > { %v1121_v13 = vpack.c.bf16 %v1120_v11, %v1120_v11 }
 0x724   : > { %1762 = vmatmul.mubr.msk.bf16.vlgmr.msra.gmra.mrb[16].mxu1 %vm767_vm4, %v1121_v13 }
 0x725   : > { %1774 = vmatpush3.bf16.xpose.msra.mxu1 %v1239_v14  ;;  %1775 = vmatprep.mubr.msk.bf16.mxu1 %vm2135_vm0, %v2133_v0 }
 0x726   : > { %1785 = vmatprep.subr.bf16.mxu1 %v2133_v0 }
 0x72c   : > { %1776 = vmatmul.mubr.msk.bf16.vlgmr.msra.gmra.mrb[20].mxu1 %vm720_vm1, %v1232_v42 }
 0x72d   : > { %1789 = vmatprep.mubr.msk.bf16.mxu1 %vm2135_vm0, %v2133_v0  ;;  %1786 = vmatpush3.bf16.msra.mxu1 %v1911_v32 }
 0x72e   : > { %1787 = vmatprep.subr.bf16.mxu1 %v2133_v0 }
 0x731   : > { %1788 = vmatpush3.bf16.msra.mxu1 %v1912_v43 }
 0x7f7   : > { %v1164_v15 = vpop.f32.mrb[16].mxu1 }
 0x7f8   : > { %v1170_v16 = vpack.c.bf16 %v1164_v15, %v1164_v15  ;;  %v1763_v17 = vpop.f32.mrb[17].mxu1 }
 0x7f9   : > { %v1167_v18 = vpop.f32.mrb[18].mxu1 }
 0x7fa   : > { %v1764_v19 = vpop.f32.mrb[19].mxu1  ;;  %1770 = vmatmul.mubr.msk.bf16.vlgmr.msra.gmra.mrb[20].mxu0 %vm720_vm1, %v1170_v16 }
 0x7fb   : > { %1781 = vmatprep.mubr.msk.bf16.mxu0 %vm2135_vm0, %v2133_v0 }
 0x7ff   : > { %v1275_v20 = vpop.f32.mrb[20].mxu1 }
 0x800   : > { %v1276_v21 = vadd.f32 %v1275_v20, %v2436_v57  ;;  %v1777_v22 = vpop.f32.mrb[21].mxu1 }
 0x801   : > { %v1278_v23 = vpop.f32.mrb[22].mxu1 }
 0x802   : > { %v1778_v24 = vpop.f32.mrb[23].mxu1  ;;  %v1281_v26 = vsel %vm767_vm4, %v1276_v21, -inf }
 0x803   : > { %1282 = vmax.xlane.f32.xlu0 %v1281_v26 }
 0x890   : > { %v1283_v27 = vpop.xlane.xlu0 %1282 }
 0x891   : > { %v1284_v28 = vsub.f32 %v1276_v21, %v1283_v27 }
 0x893   : > { %v1285_v29 = vmul.f32 1.442695, %v1284_v28 }
 0x895   : > { %1925 = vpow2.f32 %v1285_v29 }
 0x89f   : > { %v1926_v30 = vpop.eup %1925 }
 0x8a0   : > { %v1287_v31 = vsel %vm767_vm4, %v1926_v30, 0.0 }
 0x8a1   : > { %1288 = vadd.xlane.f32.xlu1 %v1287_v31 }
 0x8b2   : > { %1293 = vrot.lane.b32.xlu1 %v2413_v46, %s2139_s1 }
 0x8cd   : > { %v1224_v57 = vpop.f32.mrb[20].mxu0 }
 0x8ce   : > { %v1230_v33 = vadd.f32 %v1224_v57, %v2474_v55  ;;  %v1771_v34 = vpop.f32.mrb[21].mxu0 }
 0x8cf   : > { %v1227_v35 = vpop.f32.mrb[22].mxu0 }
 0x8d0   : > { %v1772_v36 = vpop.f32.mrb[23].mxu0 }
 0x92e   : > { %v1289_v37 = vpop.xlane.xlu1 %1288 }
 0x92f   : > { %1927 = vrcp.f32 %v1289_v37 }
 0x932   : > { %v1294_v38 = vpop.permute.xlu1 %1293 }
 0x933   : > { %v1299_v39 = vsel %vm783_vm2, %v1294_v38, 0 }
 0x934   : > { %1780 = vmatpush3.bf16.msra.mxu0 %v1299_v39 }
 0x939   : > { %v1928_v40 = vpop.eup %1927 }
 0x93a   : > { %v1291_v41 = vmul.f32 %v1928_v40, %v1926_v30 }
 0x93c   : > { %v1292_v46 = vpack.c.bf16 %v1291_v41, %v1291_v41 }
 0x93e   : > { %1782 = vmatmul.mubr.msk.bf16.vlgmr.msra.gmra.mrb[24].mxu0 %vm767_vm4, %v1292_v46 }
 0xa11   : > { %v1335_v0 = vpop.f32.mrb[24].mxu0 }
 0xa12   : > { %v1341_v44 = vpack.c.bf16 %v1335_v0, %v1335_v0  ;;  %v1783_v45 = vpop.f32.mrb[25].mxu0 }
 0xa13   : > { %v1338_v47 = vpop.f32.mrb[26].mxu0 }
 0xa14   : > { %v1784_v49 = vpop.f32.mrb[27].mxu0  ;;  %1790 = vmatmul.mubr.msk.bf16.vlgmr.msra.gmra.mrb[24].mxu1 %vm720_vm1, %v1341_v44 }
 0xae7   : > { %v1395_v50 = vpop.f32.mrb[24].mxu1 }
 0xae8   : > { %v1401_v52 = vadd.f32 %v1395_v50, %v1230_v33  ;;  %v1791_v53 = vpop.f32.mrb[25].mxu1 }
 0xae9   : > { %v1398_v54 = vpop.f32.mrb[26].mxu1 }
 0xaea   : > { %v1409_v55 = vadd.f32 %v1651_v51, %v1401_v52  ;;  %v1792_v56 = vpop.f32.mrb[27].mxu1 }
 0xaec   : > { %v1410_v58 = vpack.c.bf16 %v1409_v55, %v1409_v55  ;;  %v1412_v59 = vadd.f32 %v1409_v55, %v2400_v25  ;;  %v1653_v25 = vld [vmem:[%s2533_s8] ss:$0 sm:$0xff] }
 0xaee   : > { %1411 = vst [vmem:[%s443_s14] sm:$0xf] %v1410_v58  ;;  %1413 = vadd.xlane.f32.xlu1 %v1412_v59 }
 0xb7b   : > { %v1414_v60 = vpop.xlane.xlu1 %1413 }
 0xb7c   : > { %v1416_v61 = vmul.f32 0.0078125, %v1414_v60 }
 0xb7e   : > { %v1417_v62 = vsub.f32 %v1412_v59, %v1416_v61 }
 0xb80   : > { %v1418_v63 = vmul.f32 %v1417_v62, %v1417_v62 }
 0xb82   : > { %1419 = vadd.xlane.f32.xlu0 %v1418_v63 }
 0xc0f   : > { %v1420_v1 = vpop.xlane.xlu0 %1419 }
 0xc10   : > { %v1421_v2 = vmul.f32 0.0078125, %v1420_v1 }
 0xc12   : > { %v1422_v3 = vadd.f32 1e-05, %v1421_v2 }
 0xc14   : > { %1929 = vrsqrt.f32 %v1422_v3 }
 0xc1e   : > { %v1930_v4 = vpop.eup %1929 }
 0xc1f   : > { %v1424_v6 = vmul.f32 %v1930_v4, %v1417_v62 }
 0xc21   : > { %v1432_v7 = vmul.f32 %v1652_v5, %v1424_v6 }
 0xc23   : > { %v1440_v8 = vadd.f32 %v1653_v25, %v1432_v7 }
 0xc25   : > { %1441 = vst [vmem:[%s447_s29] sm:$0xff] %v1440_v8 }
 0xc26 PF: > { %s25_s13 = sadd.s32 1, %s2121_s13  }
 0xc27   : > { %p22_p9 = scmp.ge.s32.totalorder %s25_s13, 4  }
 0xc29   :  { %24 = sbr.rel (!%p22_p9) target bundleno = 6 (0x6), region = 123 }
 0xc30   :  { %1475 = vsyncpa [#allocation3], 1 }
 0xc31   :  { %1477 = vsyncpa [#allocation3 + $0x1], 1 }
 0xc32   :  { %1478 = vsyncpa [#allocation5], 1 }
 0xc33   :  { %1479 = vsyncpa [#allocation8], 1 }
 0xc34   :  { %1480 = vsyncpa [#allocation11], 1 }

</bundles_post_ra>
